<compile_context>
chip_gen: v7x
topology: tpu7x:2x2x1
jax: 0.10.0
libtpu: 0.0.40
codegen_flags: <defaults>
</compile_context>

<pallas_src>
import functools

import jax
import jax.numpy as jnp
from jax.experimental import pallas as pl
from jax.experimental.pallas import tpu as pltpu


# ----------------------------- Pallas kernel -------------------------------


def _layernorm(x, w, b, eps=1e-5):
    mu = jnp.mean(x, axis=-1, keepdims=True)
    var = jnp.mean(jnp.square(x - mu), axis=-1, keepdims=True)
    return (x - mu) * jax.lax.rsqrt(var + eps) * w + b


def _fused_layers_kernel(
    tgt_ref, mem_ref, pmem_ref, qpos_ref,
    w_qkvo_ref, w1_ref, w2_ref, vec_ref, b1_ref,
    out_ref,
    *, nhead, head_dim, pre_norm,
):
    """One (CrossAttentionLayer + FFNLayer) layer for one batch block.

    grid = (batch_blocks [parallel], num_layer [arbitrary]).  The activation
    lives in the output block, which is VMEM-resident across the layer axis
    (its block index depends only on the batch-block index).
    """
    layer = pl.program_id(1)

    # Layer 0: seed the resident activation with the input sequence.
    @pl.when(layer == 0)
    def _():
        out_ref[...] = tgt_ref[...]

    B, Lq, D = out_ref.shape
    Lk = mem_ref.shape[1]
    M, Mk = B * Lq, B * Lk
    f32, bf16 = jnp.float32, jnp.bfloat16

    # ---- per-layer packed weights ----
    w_qkvo = w_qkvo_ref[0]                          # (4, D, D) bf16
    wq, wk, wv, wo = w_qkvo[0], w_qkvo[1], w_qkvo[2], w_qkvo[3]
    w1 = w1_ref[0]                                  # (D, dff)  bf16
    w2 = w2_ref[0]                                  # (dff, D)  bf16
    vec = vec_ref[0]                                # (9, D)    f32
    bq, bk, bv, bo = vec[0:1], vec[1:2], vec[2:3], vec[3:4]
    ln1w, ln1b = vec[4:5], vec[5:6]
    b2 = vec[6:7]
    ln2w, ln2b = vec[7:8], vec[8:9]
    b1 = b1_ref[0]                                  # (1, dff)  f32

    # Fold the batch block into the matmul M dimension for projections / FFN.
    x = out_ref[...].reshape(M, D)                  # resident activation (f32)
    mem = mem_ref[...].reshape(Mk, D)
    pmem = pmem_ref[...].reshape(Mk, D)
    qpos = qpos_ref[...].reshape(M, D)

    # ----- CrossAttentionLayer -----
    attn_src = _layernorm(x, ln1w, ln1b) if pre_norm else x
    q_in = (attn_src + qpos).astype(bf16)           # with_pos_embed(tgt, query_pos)
    k_in = (mem + pmem).astype(bf16)                # with_pos_embed(memory, pos)
    v_in = mem.astype(bf16)                         # value = memory (no pos)

    q = jnp.dot(q_in, wq, preferred_element_type=f32) + bq     # (M, D)
    k = jnp.dot(k_in, wk, preferred_element_type=f32) + bk     # (Mk, D)
    v = jnp.dot(v_in, wv, preferred_element_type=f32) + bv     # (Mk, D)

    scale = 1.0 / float(head_dim) ** 0.5
    q3 = (q * scale).astype(bf16).reshape(B, Lq, D)
    k3 = k.astype(bf16).reshape(B, Lk, D)
    v3 = v.astype(bf16).reshape(B, Lk, D)

    # Per-head attention: batch dim stays inside batched einsums (same pattern
    # as flash-attn), no k.T transpose; head loop is static and small.
    ctx_heads = []
    for h in range(nhead):
        lo, hi = h * head_dim, (h + 1) * head_dim
        s = jnp.einsum('bqd,bkd->bqk', q3[:, :, lo:hi], k3[:, :, lo:hi],
                       preferred_element_type=f32)              # (B, Lq, Lk)
        s = s - jnp.max(s, axis=-1, keepdims=True)
        p = jnp.exp(s)
        p = p * pl.reciprocal(jnp.sum(p, axis=-1, keepdims=True), approx=True)
        ctx_heads.append(
            jnp.einsum('bqk,bkd->bqd', p.astype(bf16), v3[:, :, lo:hi],
                       preferred_element_type=f32))             # (B, Lq, hd)

    # Single output-projection matmul with full contraction depth D.
    ctx = jnp.concatenate(ctx_heads, axis=-1).reshape(M, D)
    attn = jnp.dot(ctx.astype(bf16), wo, preferred_element_type=f32) + bo

    x = x + attn                                                # dropout = 0
    if not pre_norm:
        x = _layernorm(x, ln1w, ln1b)

    # ----- FFNLayer -----
    ffn_src = _layernorm(x, ln2w, ln2b) if pre_norm else x
    h1 = jnp.dot(ffn_src.astype(bf16), w1, preferred_element_type=f32) + b1
    h1 = jnp.maximum(h1, 0.0)                                   # relu
    h2 = jnp.dot(h1.astype(bf16), w2, preferred_element_type=f32) + b2
    y = x + h2                                                  # dropout = 0
    if not pre_norm:
        y = _layernorm(y, ln2w, ln2b)

    out_ref[...] = y.reshape(B, Lq, D)


# ------------------------------- wrapper ------------------------------------


def _pick_batch_block(b_total, lq):
    """Pick how many batches are folded into one grid step: aim for
    M = B_blk * Lq >= 128 MXU rows while leaving >= 2 batch blocks so the
    'parallel' batch axis can be sharded across v7x's two TensorCores."""
    divisors = [d for d in range(1, b_total + 1) if b_total % d == 0]
    multi = [d for d in divisors if b_total // d >= 2] or divisors
    good = [d for d in multi if 128 <= d * lq <= 4096]
    if good:
        return min(good)
    small = [d for d in multi if d * lq <= 4096]
    return max(small) if small else 1


def cross_attn_ffn_stack(tgt, mem, pos_mem, qpos, packed, *, nhead, pre_norm):
    """All num_layer (CrossAttentionLayer + FFNLayer) steps, all batches, in a
    single pallas_call.  Weights are shared across batches/directions exactly
    as in the PyTorch module."""
    B, Lq, D = tgt.shape
    Lk = mem.shape[1]
    num_layer = packed['w_qkvo'].shape[0]
    dff = packed['w1'].shape[-1]
    head_dim = D // nhead
    b_blk = _pick_batch_block(B, Lq)

    kernel = functools.partial(
        _fused_layers_kernel, nhead=nhead, head_dim=head_dim, pre_norm=pre_norm)

    # TODO(synk): at production sizes (D=256, Lk ~ 16k) the whole-(Lk, D)
    # memory blocks + the (Lq, Lk) scores should be tiled over Lk with an
    # online-softmax inner loop to stay inside v7x's 64 MiB VMEM.
    return pl.pallas_call(
        kernel,
        out_shape=jax.ShapeDtypeStruct((B, Lq, D), jnp.float32),
        grid=(B // b_blk, num_layer),
        in_specs=[
            pl.BlockSpec((b_blk, Lq, D), lambda b, l: (b, 0, 0)),    # tgt
            pl.BlockSpec((b_blk, Lk, D), lambda b, l: (b, 0, 0)),    # memory
            pl.BlockSpec((b_blk, Lk, D), lambda b, l: (b, 0, 0)),    # memory pos
            pl.BlockSpec((b_blk, Lq, D), lambda b, l: (b, 0, 0)),    # query pos
            pl.BlockSpec((1, 4, D, D), lambda b, l: (l, 0, 0, 0)),   # wq|wk|wv|wo
            pl.BlockSpec((1, D, dff), lambda b, l: (l, 0, 0)),       # w1
            pl.BlockSpec((1, dff, D), lambda b, l: (l, 0, 0)),       # w2
            pl.BlockSpec((1, 9, D), lambda b, l: (l, 0, 0)),         # packed b/LN vecs
            pl.BlockSpec((1, 1, dff), lambda b, l: (l, 0, 0)),       # b1
        ],
        out_specs=pl.BlockSpec((b_blk, Lq, D), lambda b, l: (b, 0, 0)),
        compiler_params=pltpu.CompilerParams(
            dimension_semantics=("parallel", "arbitrary")),
    )(tgt, mem, pos_mem, qpos,
      packed['w_qkvo'], packed['w1'], packed['w2'], packed['vec'], packed['b1'])


# --------------------------- CrossAT forward (glue) -------------------------


def _to_seq(x):
    # (b, c, h, w) -> (b, h*w, c)  [== flatten(2).permute(2,0,1) per batch]
    b, c, h, w = x.shape
    return x.reshape(b, c, h * w).transpose(0, 2, 1)


def cross_at_forward(out_que, out_sup, pos_que, pos_sup, packed,
                     *, nhead, pre_norm=False, minsize=15):
    bs, c, h, w = out_que.shape
    sh, sw = out_sup.shape[-2:]

    if h > w:
        ow = minsize
        oh = int(1.0 * h * ow / w)
    else:
        oh = minsize
        ow = int(1.0 * w * oh / h)
    if sh > sw:
        osw = minsize
        osh = int(1.0 * sh * osw / sw)
    else:
        osh = minsize
        osw = int(1.0 * sw * osh / sh)

    not_scale = True
    if not (h == minsize or w == minsize):
        # TODO(synk): jax.image.resize(bilinear) is numerically close but not
        # bit-identical to torch F.interpolate(mode='bilinear', align_corners=False).
        def resize(x, size):
            return jax.image.resize(
                x, (x.shape[0], x.shape[1], size[0], size[1]), method="bilinear")
        ori_out_que = _to_seq(resize(out_que, (oh, ow)))
        ori_out_sup = _to_seq(resize(out_sup, (osh, osw)))
        ori_pos_que = _to_seq(resize(pos_que, (oh, ow)))
        ori_pos_sup = _to_seq(resize(pos_sup, (osh, osw)))
        not_scale = False

    que, sup = _to_seq(out_que), _to_seq(out_sup)
    pq, ps = _to_seq(pos_que), _to_seq(pos_sup)
    if not_scale:
        ori_out_que, ori_out_sup = que, sup
        ori_pos_que, ori_pos_sup = pq, ps

    run = functools.partial(cross_attn_ffn_stack, packed=packed,
                            nhead=nhead, pre_norm=pre_norm)

    # Both directions attend to the ORIGINAL (pre-update) features of the other
    # branch with shared weights (as in the PyTorch module), so they are
    # independent; when shapes match they are stacked along the batch axis and
    # run as ONE fused pallas_call.
    if que.shape == sup.shape and ori_out_que.shape == ori_out_sup.shape:
        tgt = jnp.concatenate([que, sup], axis=0)
        mem = jnp.concatenate([ori_out_sup, ori_out_que], axis=0)
        pmem = jnp.concatenate([ori_pos_sup, ori_pos_que], axis=0)
        qpos = jnp.concatenate([pq, ps], axis=0)
        out = run(tgt, mem, pmem, qpos)
        q_out, s_out = out[:bs], out[bs:]
    else:
        q_out = run(que, ori_out_sup, ori_pos_sup, pq)
        s_out = run(sup, ori_out_que, ori_pos_que, ps)

    out_q = q_out.transpose(0, 2, 1).reshape(bs, c, h, w)
    out_s = s_out.transpose(0, 2, 1).reshape(bs, c, sh, sw)
    return out_q, out_s


# ------------------------------- params init --------------------------------


def init_params(key, num_layer, d, dff):
    """Deterministic synthetic weights (Xavier-uniform linears, unit LayerNorm)."""
    def xavier(k, shape):
        lim = (6.0 / (shape[0] + shape[1])) ** 0.5
        return jax.random.uniform(k, shape, jnp.float32, -lim, lim)

    layers = []
    for i in range(num_layer):
        ks = jax.random.split(jax.random.fold_in(key, i), 6)
        layers.append(dict(
            wq=xavier(ks[0], (d, d)), bq=jnp.zeros((1, d), jnp.float32),
            wk=xavier(ks[1], (d, d)), bk=jnp.zeros((1, d), jnp.float32),
            wv=xavier(ks[2], (d, d)), bv=jnp.zeros((1, d), jnp.float32),
            wo=xavier(ks[3], (d, d)), bo=jnp.zeros((1, d), jnp.float32),
            ln1w=jnp.ones((1, d), jnp.float32), ln1b=jnp.zeros((1, d), jnp.float32),
            w1=xavier(ks[4], (d, dff)), b1=jnp.zeros((1, dff), jnp.float32),
            w2=xavier(ks[5], (dff, d)), b2=jnp.zeros((1, d), jnp.float32),
            ln2w=jnp.ones((1, d), jnp.float32), ln2b=jnp.zeros((1, d), jnp.float32),
        ))
    return layers


def pack_params(layer_params):
    """Stack per-layer weights along a leading layer axis and pack the tiny
    (1, D)/(1, dff) vectors so the fused kernel sees 5 operands instead of
    16 * num_layer.  Matrix weights are stored as bf16 for the MXU."""
    bf16 = jnp.bfloat16
    w_qkvo = jnp.stack([jnp.stack([p['wq'], p['wk'], p['wv'], p['wo']])
                        for p in layer_params]).astype(bf16)        # (L, 4, D, D)
    w1 = jnp.stack([p['w1'] for p in layer_params]).astype(bf16)    # (L, D, dff)
    w2 = jnp.stack([p['w2'] for p in layer_params]).astype(bf16)    # (L, dff, D)
    vec = jnp.stack([jnp.concatenate(
        [p['bq'], p['bk'], p['bv'], p['bo'],
         p['ln1w'], p['ln1b'], p['b2'], p['ln2w'], p['ln2b']], axis=0)
        for p in layer_params])                                     # (L, 9, D) f32
    b1 = jnp.stack([p['b1'] for p in layer_params])                 # (L, 1, dff) f32
    return dict(w_qkvo=w_qkvo, w1=w1, w2=w2, vec=vec, b1=b1)


# ----------------------------------- main ------------------------------------


if __name__ == "__main__":
    # Small shapes consistent with the module: hidden_dim == channels.
    bs, c = 2, 32
    h = w = sh = sw = 8
    nhead = 4
    dim_feedforward = 64
    num_layer = 2
    pre_norm = False
    minsize = 8  # h == minsize -> not_scale path (no interpolation)

    key = jax.random.PRNGKey(0)
    k1, k2, k3, k4, kp = jax.random.split(key, 5)
    out_que = jax.random.normal(k1, (bs, c, h, w), jnp.float32)
    out_sup = jax.random.normal(k2, (bs, c, sh, sw), jnp.float32)
    pos_que = jax.random.normal(k3, (bs, c, h, w), jnp.float32)
    pos_sup = jax.random.normal(k4, (bs, c, sh, sw), jnp.float32)

    packed = pack_params(init_params(kp, num_layer, c, dim_feedforward))

    fwd = jax.jit(functools.partial(
        cross_at_forward, nhead=nhead, pre_norm=pre_norm, minsize=minsize))
    oq, osup = fwd(out_que, out_sup, pos_que, pos_sup, packed)
    jax.block_until_ready((oq, osup))

    assert oq.shape == (bs, c, h, w) and osup.shape == (bs, c, sh, sw)
    assert bool(jnp.all(jnp.isfinite(oq))) and bool(jnp.all(jnp.isfinite(osup)))
    print("KERNEL_OK")
</pallas_src>

<mosaic_0001>
module attributes {stable_mosaic.version = 11 : i64} {
  func.func @_fused_layers_kernel(%arg0: i32, %arg1: i32, %arg2: memref<2x64x32xf32, #tpu.memory_space<vmem>>, %arg3: memref<2x64x32xf32, #tpu.memory_space<vmem>>, %arg4: memref<2x64x32xf32, #tpu.memory_space<vmem>>, %arg5: memref<2x64x32xf32, #tpu.memory_space<vmem>>, %arg6: memref<1x4x32x32xbf16, #tpu.memory_space<vmem>>, %arg7: memref<1x32x64xbf16, #tpu.memory_space<vmem>>, %arg8: memref<1x64x32xbf16, #tpu.memory_space<vmem>>, %arg9: memref<1x9x32xf32, #tpu.memory_space<vmem>>, %arg10: memref<1x1x64xf32, #tpu.memory_space<vmem>>, %arg11: memref<2x64x32xf32, #tpu.memory_space<vmem>>) attributes {dimension_semantics = [#tpu.dimension_semantics<parallel>, #tpu.dimension_semantics<arbitrary>], iteration_bounds = array<i64: 2, 2>, scalar_prefetch = 0 : i64, scratch_operands = 0 : i64, tpu.core_type = #tpu.core_type<tc>, window_params = [{transform_indices = @transform_0, window_bounds = array<i64: 2, 64, 32>}, {transform_indices = @transform_1, window_bounds = array<i64: 2, 64, 32>}, {transform_indices = @transform_2, window_bounds = array<i64: 2, 64, 32>}, {transform_indices = @transform_3, window_bounds = array<i64: 2, 64, 32>}, {transform_indices = @transform_4, window_bounds = array<i64: 1, 4, 32, 32>}, {transform_indices = @transform_5, window_bounds = array<i64: 1, 32, 64>}, {transform_indices = @transform_6, window_bounds = array<i64: 1, 64, 32>}, {transform_indices = @transform_7, window_bounds = array<i64: 1, 9, 32>}, {transform_indices = @transform_8, window_bounds = array<i64: 1, 1, 64>}, {transform_indices = @transform_9, window_bounds = array<i64: 2, 64, 32>}]} {
    %c0_i32 = arith.constant 0 : i32
    %0 = arith.cmpi eq, %arg1, %c0_i32 : i32
    %1 = arith.extui %0 : i1 to i32
    %c0_i32_0 = arith.constant 0 : i32
    %2 = arith.cmpi ne, %1, %c0_i32_0 : i32
    scf.if %2 {
      %c0_64 = arith.constant 0 : index
      %c0_65 = arith.constant 0 : index
      %c0_66 = arith.constant 0 : index
      %188 = vector.load %arg2[%c0_64, %c0_65, %c0_66] : memref<2x64x32xf32, #tpu.memory_space<vmem>>, vector<2x64x32xf32>
      %c0_67 = arith.constant 0 : index
      %c0_68 = arith.constant 0 : index
      %c0_69 = arith.constant 0 : index
      %189 = vector.load %arg11[%c0_67, %c0_68, %c0_69] : memref<2x64x32xf32, #tpu.memory_space<vmem>>, vector<2x64x32xf32>
      tpu.vector_store %arg11[%c0_67, %c0_68, %c0_69], %188 {strides = array<i32>} : memref<2x64x32xf32, #tpu.memory_space<vmem>>, vector<2x64x32xf32>,
    } else {
    }
    %c0 = arith.constant 0 : index
    %c0_1 = arith.constant 0 : index
    %c0_2 = arith.constant 0 : index
    %c0_3 = arith.constant 0 : index
    %3 = vector.load %arg6[%c0, %c0_1, %c0_2, %c0_3] : memref<1x4x32x32xbf16, #tpu.memory_space<vmem>>, vector<1x4x32x32xbf16>
    %4 = vector.shape_cast %3 : vector<1x4x32x32xbf16> to vector<4x32x32xbf16>
    %5 = vector.extract_strided_slice %4 {offsets = [0, 0, 0], sizes = [1, 32, 32], strides = [1, 1, 1]} : vector<4x32x32xbf16> to vector<1x32x32xbf16>
    %6 = vector.shape_cast %5 : vector<1x32x32xbf16> to vector<32x32xbf16>
    %7 = vector.extract_strided_slice %4 {offsets = [1, 0, 0], sizes = [1, 32, 32], strides = [1, 1, 1]} : vector<4x32x32xbf16> to vector<1x32x32xbf16>
    %8 = vector.shape_cast %7 : vector<1x32x32xbf16> to vector<32x32xbf16>
    %9 = vector.extract_strided_slice %4 {offsets = [2, 0, 0], sizes = [1, 32, 32], strides = [1, 1, 1]} : vector<4x32x32xbf16> to vector<1x32x32xbf16>
    %10 = vector.shape_cast %9 : vector<1x32x32xbf16> to vector<32x32xbf16>
    %11 = vector.extract_strided_slice %4 {offsets = [3, 0, 0], sizes = [1, 32, 32], strides = [1, 1, 1]} : vector<4x32x32xbf16> to vector<1x32x32xbf16>
    %12 = vector.shape_cast %11 : vector<1x32x32xbf16> to vector<32x32xbf16>
    %c0_4 = arith.constant 0 : index
    %c0_5 = arith.constant 0 : index
    %c0_6 = arith.constant 0 : index
    %13 = vector.load %arg7[%c0_4, %c0_5, %c0_6] : memref<1x32x64xbf16, #tpu.memory_space<vmem>>, vector<1x32x64xbf16>
    %14 = vector.shape_cast %13 : vector<1x32x64xbf16> to vector<32x64xbf16>
    %c0_7 = arith.constant 0 : index
    %c0_8 = arith.constant 0 : index
    %c0_9 = arith.constant 0 : index
    %15 = vector.load %arg8[%c0_7, %c0_8, %c0_9] : memref<1x64x32xbf16, #tpu.memory_space<vmem>>, vector<1x64x32xbf16>
    %16 = vector.shape_cast %15 : vector<1x64x32xbf16> to vector<64x32xbf16>
    %c0_10 = arith.constant 0 : index
    %c0_11 = arith.constant 0 : index
    %c0_12 = arith.constant 0 : index
    %17 = vector.load %arg9[%c0_10, %c0_11, %c0_12] : memref<1x9x32xf32, #tpu.memory_space<vmem>>, vector<1x9x32xf32>
    %18 = vector.shape_cast %17 : vector<1x9x32xf32> to vector<9x32xf32>
    %19 = vector.extract_strided_slice %18 {offsets = [0, 0], sizes = [1, 32], strides = [1, 1]} : vector<9x32xf32> to vector<1x32xf32>
    %20 = vector.extract_strided_slice %18 {offsets = [1, 0], sizes = [1, 32], strides = [1, 1]} : vector<9x32xf32> to vector<1x32xf32>
    %21 = vector.extract_strided_slice %18 {offsets = [2, 0], sizes = [1, 32], strides = [1, 1]} : vector<9x32xf32> to vector<1x32xf32>
    %22 = vector.extract_strided_slice %18 {offsets = [3, 0], sizes = [1, 32], strides = [1, 1]} : vector<9x32xf32> to vector<1x32xf32>
    %23 = vector.extract_strided_slice %18 {offsets = [4, 0], sizes = [1, 32], strides = [1, 1]} : vector<9x32xf32> to vector<1x32xf32>
    %24 = vector.extract_strided_slice %18 {offsets = [5, 0], sizes = [1, 32], strides = [1, 1]} : vector<9x32xf32> to vector<1x32xf32>
    %25 = vector.extract_strided_slice %18 {offsets = [6, 0], sizes = [1, 32], strides = [1, 1]} : vector<9x32xf32> to vector<1x32xf32>
    %26 = vector.extract_strided_slice %18 {offsets = [7, 0], sizes = [1, 32], strides = [1, 1]} : vector<9x32xf32> to vector<1x32xf32>
    %27 = vector.extract_strided_slice %18 {offsets = [8, 0], sizes = [1, 32], strides = [1, 1]} : vector<9x32xf32> to vector<1x32xf32>
    %c0_13 = arith.constant 0 : index
    %c0_14 = arith.constant 0 : index
    %c0_15 = arith.constant 0 : index
    %28 = vector.load %arg10[%c0_13, %c0_14, %c0_15] : memref<1x1x64xf32, #tpu.memory_space<vmem>>, vector<1x1x64xf32>
    %29 = vector.shape_cast %28 : vector<1x1x64xf32> to vector<1x64xf32>
    %c0_16 = arith.constant 0 : index
    %c0_17 = arith.constant 0 : index
    %c0_18 = arith.constant 0 : index
    %30 = vector.load %arg11[%c0_16, %c0_17, %c0_18] : memref<2x64x32xf32, #tpu.memory_space<vmem>>, vector<2x64x32xf32>
    %31 = vector.shape_cast %30 : vector<2x64x32xf32> to vector<128x32xf32>
    %c0_19 = arith.constant 0 : index
    %c0_20 = arith.constant 0 : index
    %c0_21 = arith.constant 0 : index
    %32 = vector.load %arg3[%c0_19, %c0_20, %c0_21] : memref<2x64x32xf32, #tpu.memory_space<vmem>>, vector<2x64x32xf32>
    %33 = vector.shape_cast %32 : vector<2x64x32xf32> to vector<128x32xf32>
    %c0_22 = arith.constant 0 : index
    %c0_23 = arith.constant 0 : index
    %c0_24 = arith.constant 0 : index
    %34 = vector.load %arg4[%c0_22, %c0_23, %c0_24] : memref<2x64x32xf32, #tpu.memory_space<vmem>>, vector<2x64x32xf32>
    %35 = vector.shape_cast %34 : vector<2x64x32xf32> to vector<128x32xf32>
    %c0_25 = arith.constant 0 : index
    %c0_26 = arith.constant 0 : index
    %c0_27 = arith.constant 0 : index
    %36 = vector.load %arg5[%c0_25, %c0_26, %c0_27] : memref<2x64x32xf32, #tpu.memory_space<vmem>>, vector<2x64x32xf32>
    %37 = vector.shape_cast %36 : vector<2x64x32xf32> to vector<128x32xf32>
    %38 = arith.addf %31, %37 : vector<128x32xf32>
    %39 = arith.truncf %38 : vector<128x32xf32> to vector<128x32xbf16>
    %40 = arith.addf %33, %35 : vector<128x32xf32>
    %41 = arith.truncf %40 : vector<128x32xf32> to vector<128x32xbf16>
    %42 = arith.truncf %33 : vector<128x32xf32> to vector<128x32xbf16>
    %cst = arith.constant dense<0.000000e+00> : vector<128x32xf32>
    %43 = tpu.matmul %39, %6, %cst {dimension_numbers = #tpu.dot_dimension_numbers<[1], [0], [0], [1], [0, 0, 1, 1], [], []>} : vector<128x32xbf16>, vector<32x32xbf16>, vector<128x32xf32> -> vector<128x32xf32>
    %44 = vector.broadcast %19 : vector<1x32xf32> to vector<128x32xf32>
    %45 = arith.addf %43, %44 : vector<128x32xf32>
    %cst_28 = arith.constant dense<0.000000e+00> : vector<128x32xf32>
    %46 = tpu.matmul %41, %8, %cst_28 {dimension_numbers = #tpu.dot_dimension_numbers<[1], [0], [0], [1], [0, 0, 1, 1], [], []>} : vector<128x32xbf16>, vector<32x32xbf16>, vector<128x32xf32> -> vector<128x32xf32>
    %47 = vector.broadcast %20 : vector<1x32xf32> to vector<128x32xf32>
    %48 = arith.addf %46, %47 : vector<128x32xf32>
    %cst_29 = arith.constant dense<0.000000e+00> : vector<128x32xf32>
    %49 = tpu.matmul %42, %10, %cst_29 {dimension_numbers = #tpu.dot_dimension_numbers<[1], [0], [0], [1], [0, 0, 1, 1], [], []>} : vector<128x32xbf16>, vector<32x32xbf16>, vector<128x32xf32> -> vector<128x32xf32>
    %50 = vector.broadcast %21 : vector<1x32xf32> to vector<128x32xf32>
    %51 = arith.addf %49, %50 : vector<128x32xf32>
    %cst_30 = arith.constant 0.353553385 : f32
    %52 = vector.broadcast %cst_30 : f32 to vector<128x32xf32>
    %53 = arith.mulf %45, %52 : vector<128x32xf32>
    %54 = arith.truncf %53 : vector<128x32xf32> to vector<128x32xbf16>
    %55 = vector.shape_cast %54 : vector<128x32xbf16> to vector<2x64x32xbf16>
    %56 = arith.truncf %48 : vector<128x32xf32> to vector<128x32xbf16>
    %57 = vector.shape_cast %56 : vector<128x32xbf16> to vector<2x64x32xbf16>
    %58 = arith.truncf %51 : vector<128x32xf32> to vector<128x32xbf16>
    %59 = vector.shape_cast %58 : vector<128x32xbf16> to vector<2x64x32xbf16>
    %60 = vector.extract_strided_slice %55 {offsets = [0, 0, 0], sizes = [2, 64, 8], strides = [1, 1, 1]} : vector<2x64x32xbf16> to vector<2x64x8xbf16>
    %61 = vector.extract_strided_slice %57 {offsets = [0, 0, 0], sizes = [2, 64, 8], strides = [1, 1, 1]} : vector<2x64x32xbf16> to vector<2x64x8xbf16>
    "tpu.trace_start"() <{level = 10 : i32, message = "bqd,bkd->bqk"}> : () -> ()
    %cst_31 = arith.constant dense<0.000000e+00> : vector<2x64x64xf32>
    %62 = tpu.matmul %60, %61, %cst_31 {dimension_numbers = #tpu.dot_dimension_numbers<[2], [2], [1], [1], [0, 0, 0, 1, 1, 1], [0], [0]>} : vector<2x64x8xbf16>, vector<2x64x8xbf16>, vector<2x64x64xf32> -> vector<2x64x64xf32>
    "tpu.trace_stop"() : () -> ()
    %cst_32 = arith.constant dense<0xFF800000> : vector<2x64xf32>
    %63 = vector.multi_reduction <maximumf>, %62, %cst_32 [2] : vector<2x64x64xf32> to vector<2x64xf32>
    %64 = vector.shape_cast %63 : vector<2x64xf32> to vector<2x64x1xf32>
    %65 = vector.broadcast %64 : vector<2x64x1xf32> to vector<2x64x64xf32>
    %66 = arith.subf %62, %65 : vector<2x64x64xf32>
    %67 = math.exp %66 : vector<2x64x64xf32>
    %cst_33 = arith.constant dense<0.000000e+00> : vector<2x64xf32>
    %68 = vector.multi_reduction <add>, %67, %cst_33 [2] : vector<2x64x64xf32> to vector<2x64xf32>
    %69 = vector.shape_cast %68 : vector<2x64xf32> to vector<2x64x1xf32>
    %70 = tpu.reciprocal %69 {approx = true} : vector<2x64x1xf32> -> vector<2x64x1xf32>
    %71 = vector.broadcast %70 : vector<2x64x1xf32> to vector<2x64x64xf32>
    %72 = arith.mulf %67, %71 : vector<2x64x64xf32>
    %73 = arith.truncf %72 : vector<2x64x64xf32> to vector<2x64x64xbf16>
    %74 = vector.extract_strided_slice %59 {offsets = [0, 0, 0], sizes = [2, 64, 8], strides = [1, 1, 1]} : vector<2x64x32xbf16> to vector<2x64x8xbf16>
    "tpu.trace_start"() <{level = 10 : i32, message = "bqk,bkd->bqd"}> : () -> ()
    %cst_34 = arith.constant dense<0.000000e+00> : vector<2x64x8xf32>
    %75 = tpu.matmul %73, %74, %cst_34 {dimension_numbers = #tpu.dot_dimension_numbers<[2], [1], [1], [2], [0, 0, 0, 1, 1, 2], [0], [0]>} : vector<2x64x64xbf16>, vector<2x64x8xbf16>, vector<2x64x8xf32> -> vector<2x64x8xf32>
    "tpu.trace_stop"() : () -> ()
    %76 = vector.extract_strided_slice %55 {offsets = [0, 0, 8], sizes = [2, 64, 8], strides = [1, 1, 1]} : vector<2x64x32xbf16> to vector<2x64x8xbf16>
    %77 = vector.extract_strided_slice %57 {offsets = [0, 0, 8], sizes = [2, 64, 8], strides = [1, 1, 1]} : vector<2x64x32xbf16> to vector<2x64x8xbf16>
    "tpu.trace_start"() <{level = 10 : i32, message = "bqd,bkd->bqk"}> : () -> ()
    %cst_35 = arith.constant dense<0.000000e+00> : vector<2x64x64xf32>
    %78 = tpu.matmul %76, %77, %cst_35 {dimension_numbers = #tpu.dot_dimension_numbers<[2], [2], [1], [1], [0, 0, 0, 1, 1, 1], [0], [0]>} : vector<2x64x8xbf16>, vector<2x64x8xbf16>, vector<2x64x64xf32> -> vector<2x64x64xf32>
    "tpu.trace_stop"() : () -> ()
    %cst_36 = arith.constant dense<0xFF800000> : vector<2x64xf32>
    %79 = vector.multi_reduction <maximumf>, %78, %cst_36 [2] : vector<2x64x64xf32> to vector<2x64xf32>
    %80 = vector.shape_cast %79 : vector<2x64xf32> to vector<2x64x1xf32>
    %81 = vector.broadcast %80 : vector<2x64x1xf32> to vector<2x64x64xf32>
    %82 = arith.subf %78, %81 : vector<2x64x64xf32>
    %83 = math.exp %82 : vector<2x64x64xf32>
    %cst_37 = arith.constant dense<0.000000e+00> : vector<2x64xf32>
    %84 = vector.multi_reduction <add>, %83, %cst_37 [2] : vector<2x64x64xf32> to vector<2x64xf32>
    %85 = vector.shape_cast %84 : vector<2x64xf32> to vector<2x64x1xf32>
    %86 = tpu.reciprocal %85 {approx = true} : vector<2x64x1xf32> -> vector<2x64x1xf32>
    %87 = vector.broadcast %86 : vector<2x64x1xf32> to vector<2x64x64xf32>
    %88 = arith.mulf %83, %87 : vector<2x64x64xf32>
    %89 = arith.truncf %88 : vector<2x64x64xf32> to vector<2x64x64xbf16>
    %90 = vector.extract_strided_slice %59 {offsets = [0, 0, 8], sizes = [2, 64, 8], strides = [1, 1, 1]} : vector<2x64x32xbf16> to vector<2x64x8xbf16>
    "tpu.trace_start"() <{level = 10 : i32, message = "bqk,bkd->bqd"}> : () -> ()
    %cst_38 = arith.constant dense<0.000000e+00> : vector<2x64x8xf32>
    %91 = tpu.matmul %89, %90, %cst_38 {dimension_numbers = #tpu.dot_dimension_numbers<[2], [1], [1], [2], [0, 0, 0, 1, 1, 2], [0], [0]>} : vector<2x64x64xbf16>, vector<2x64x8xbf16>, vector<2x64x8xf32> -> vector<2x64x8xf32>
    "tpu.trace_stop"() : () -> ()
    %92 = vector.extract_strided_slice %55 {offsets = [0, 0, 16], sizes = [2, 64, 8], strides = [1, 1, 1]} : vector<2x64x32xbf16> to vector<2x64x8xbf16>
    %93 = vector.extract_strided_slice %57 {offsets = [0, 0, 16], sizes = [2, 64, 8], strides = [1, 1, 1]} : vector<2x64x32xbf16> to vector<2x64x8xbf16>
    "tpu.trace_start"() <{level = 10 : i32, message = "bqd,bkd->bqk"}> : () -> ()
    %cst_39 = arith.constant dense<0.000000e+00> : vector<2x64x64xf32>
    %94 = tpu.matmul %92, %93, %cst_39 {dimension_numbers = #tpu.dot_dimension_numbers<[2], [2], [1], [1], [0, 0, 0, 1, 1, 1], [0], [0]>} : vector<2x64x8xbf16>, vector<2x64x8xbf16>, vector<2x64x64xf32> -> vector<2x64x64xf32>
    "tpu.trace_stop"() : () -> ()
    %cst_40 = arith.constant dense<0xFF800000> : vector<2x64xf32>
    %95 = vector.multi_reduction <maximumf>, %94, %cst_40 [2] : vector<2x64x64xf32> to vector<2x64xf32>
    %96 = vector.shape_cast %95 : vector<2x64xf32> to vector<2x64x1xf32>
    %97 = vector.broadcast %96 : vector<2x64x1xf32> to vector<2x64x64xf32>
    %98 = arith.subf %94, %97 : vector<2x64x64xf32>
    %99 = math.exp %98 : vector<2x64x64xf32>
    %cst_41 = arith.constant dense<0.000000e+00> : vector<2x64xf32>
    %100 = vector.multi_reduction <add>, %99, %cst_41 [2] : vector<2x64x64xf32> to vector<2x64xf32>
    %101 = vector.shape_cast %100 : vector<2x64xf32> to vector<2x64x1xf32>
    %102 = tpu.reciprocal %101 {approx = true} : vector<2x64x1xf32> -> vector<2x64x1xf32>
    %103 = vector.broadcast %102 : vector<2x64x1xf32> to vector<2x64x64xf32>
    %104 = arith.mulf %99, %103 : vector<2x64x64xf32>
    %105 = arith.truncf %104 : vector<2x64x64xf32> to vector<2x64x64xbf16>
    %106 = vector.extract_strided_slice %59 {offsets = [0, 0, 16], sizes = [2, 64, 8], strides = [1, 1, 1]} : vector<2x64x32xbf16> to vector<2x64x8xbf16>
    "tpu.trace_start"() <{level = 10 : i32, message = "bqk,bkd->bqd"}> : () -> ()
    %cst_42 = arith.constant dense<0.000000e+00> : vector<2x64x8xf32>
    %107 = tpu.matmul %105, %106, %cst_42 {dimension_numbers = #tpu.dot_dimension_numbers<[2], [1], [1], [2], [0, 0, 0, 1, 1, 2], [0], [0]>} : vector<2x64x64xbf16>, vector<2x64x8xbf16>, vector<2x64x8xf32> -> vector<2x64x8xf32>
    "tpu.trace_stop"() : () -> ()
    %108 = vector.extract_strided_slice %55 {offsets = [0, 0, 24], sizes = [2, 64, 8], strides = [1, 1, 1]} : vector<2x64x32xbf16> to vector<2x64x8xbf16>
    %109 = vector.extract_strided_slice %57 {offsets = [0, 0, 24], sizes = [2, 64, 8], strides = [1, 1, 1]} : vector<2x64x32xbf16> to vector<2x64x8xbf16>
    "tpu.trace_start"() <{level = 10 : i32, message = "bqd,bkd->bqk"}> : () -> ()
    %cst_43 = arith.constant dense<0.000000e+00> : vector<2x64x64xf32>
    %110 = tpu.matmul %108, %109, %cst_43 {dimension_numbers = #tpu.dot_dimension_numbers<[2], [2], [1], [1], [0, 0, 0, 1, 1, 1], [0], [0]>} : vector<2x64x8xbf16>, vector<2x64x8xbf16>, vector<2x64x64xf32> -> vector<2x64x64xf32>
    "tpu.trace_stop"() : () -> ()
    %cst_44 = arith.constant dense<0xFF800000> : vector<2x64xf32>
    %111 = vector.multi_reduction <maximumf>, %110, %cst_44 [2] : vector<2x64x64xf32> to vector<2x64xf32>
    %112 = vector.shape_cast %111 : vector<2x64xf32> to vector<2x64x1xf32>
    %113 = vector.broadcast %112 : vector<2x64x1xf32> to vector<2x64x64xf32>
    %114 = arith.subf %110, %113 : vector<2x64x64xf32>
    %115 = math.exp %114 : vector<2x64x64xf32>
    %cst_45 = arith.constant dense<0.000000e+00> : vector<2x64xf32>
    %116 = vector.multi_reduction <add>, %115, %cst_45 [2] : vector<2x64x64xf32> to vector<2x64xf32>
    %117 = vector.shape_cast %116 : vector<2x64xf32> to vector<2x64x1xf32>
    %118 = tpu.reciprocal %117 {approx = true} : vector<2x64x1xf32> -> vector<2x64x1xf32>
    %119 = vector.broadcast %118 : vector<2x64x1xf32> to vector<2x64x64xf32>
    %120 = arith.mulf %115, %119 : vector<2x64x64xf32>
    %121 = arith.truncf %120 : vector<2x64x64xf32> to vector<2x64x64xbf16>
    %122 = vector.extract_strided_slice %59 {offsets = [0, 0, 24], sizes = [2, 64, 8], strides = [1, 1, 1]} : vector<2x64x32xbf16> to vector<2x64x8xbf16>
    "tpu.trace_start"() <{level = 10 : i32, message = "bqk,bkd->bqd"}> : () -> ()
    %cst_46 = arith.constant dense<0.000000e+00> : vector<2x64x8xf32>
    %123 = tpu.matmul %121, %122, %cst_46 {dimension_numbers = #tpu.dot_dimension_numbers<[2], [1], [1], [2], [0, 0, 0, 1, 1, 2], [0], [0]>} : vector<2x64x64xbf16>, vector<2x64x8xbf16>, vector<2x64x8xf32> -> vector<2x64x8xf32>
    "tpu.trace_stop"() : () -> ()
    %124 = tpu.concatenate %75, %91, %107, %123 in 2 : vector<2x64x8xf32>, vector<2x64x8xf32>, vector<2x64x8xf32>, vector<2x64x8xf32> -> vector<2x64x32xf32>
    %125 = vector.shape_cast %124 : vector<2x64x32xf32> to vector<128x32xf32>
    %126 = arith.truncf %125 : vector<128x32xf32> to vector<128x32xbf16>
    %cst_47 = arith.constant dense<0.000000e+00> : vector<128x32xf32>
    %127 = tpu.matmul %126, %12, %cst_47 {dimension_numbers = #tpu.dot_dimension_numbers<[1], [0], [0], [1], [0, 0, 1, 1], [], []>} : vector<128x32xbf16>, vector<32x32xbf16>, vector<128x32xf32> -> vector<128x32xf32>
    %128 = vector.broadcast %22 : vector<1x32xf32> to vector<128x32xf32>
    %129 = arith.addf %127, %128 : vector<128x32xf32>
    %130 = arith.addf %31, %129 : vector<128x32xf32>
    %cst_48 = arith.constant dense<0.000000e+00> : vector<128xf32>
    %131 = vector.multi_reduction <add>, %130, %cst_48 [1] : vector<128x32xf32> to vector<128xf32>
    %132 = vector.shape_cast %131 : vector<128xf32> to vector<128x1xf32>
    %cst_49 = arith.constant 3.200000e+01 : f32
    %133 = vector.broadcast %cst_49 : f32 to vector<128x1xf32>
    %134 = arith.divf %132, %133 : vector<128x1xf32>
    %135 = vector.broadcast %134 : vector<128x1xf32> to vector<128x32xf32>
    %136 = arith.subf %130, %135 : vector<128x32xf32>
    %137 = arith.mulf %136, %136 : vector<128x32xf32>
    %cst_50 = arith.constant dense<0.000000e+00> : vector<128xf32>
    %138 = vector.multi_reduction <add>, %137, %cst_50 [1] : vector<128x32xf32> to vector<128xf32>
    %139 = vector.shape_cast %138 : vector<128xf32> to vector<128x1xf32>
    %cst_51 = arith.constant 3.200000e+01 : f32
    %140 = vector.broadcast %cst_51 : f32 to vector<128x1xf32>
    %141 = arith.divf %139, %140 : vector<128x1xf32>
    %142 = vector.broadcast %134 : vector<128x1xf32> to vector<128x32xf32>
    %143 = arith.subf %130, %142 : vector<128x32xf32>
    %cst_52 = arith.constant 9.99999974E-6 : f32
    %144 = vector.broadcast %cst_52 : f32 to vector<128x1xf32>
    %145 = arith.addf %141, %144 : vector<128x1xf32>
    %146 = math.rsqrt %145 : vector<128x1xf32>
    %147 = vector.broadcast %146 : vector<128x1xf32> to vector<128x32xf32>
    %148 = arith.mulf %143, %147 : vector<128x32xf32>
    %149 = vector.broadcast %23 : vector<1x32xf32> to vector<128x32xf32>
    %150 = arith.mulf %148, %149 : vector<128x32xf32>
    %151 = vector.broadcast %24 : vector<1x32xf32> to vector<128x32xf32>
    %152 = arith.addf %150, %151 : vector<128x32xf32>
    %153 = arith.truncf %152 : vector<128x32xf32> to vector<128x32xbf16>
    %cst_53 = arith.constant dense<0.000000e+00> : vector<128x64xf32>
    %154 = tpu.matmul %153, %14, %cst_53 {dimension_numbers = #tpu.dot_dimension_numbers<[1], [0], [0], [1], [0, 0, 1, 1], [], []>} : vector<128x32xbf16>, vector<32x64xbf16>, vector<128x64xf32> -> vector<128x64xf32>
    %155 = vector.broadcast %29 : vector<1x64xf32> to vector<128x64xf32>
    %156 = arith.addf %154, %155 : vector<128x64xf32>
    %cst_54 = arith.constant 0.000000e+00 : f32
    %157 = vector.broadcast %cst_54 : f32 to vector<128x64xf32>
    %158 = arith.maximumf %156, %157 : vector<128x64xf32>
    %159 = arith.truncf %158 : vector<128x64xf32> to vector<128x64xbf16>
    %cst_55 = arith.constant dense<0.000000e+00> : vector<128x32xf32>
    %160 = tpu.matmul %159, %16, %cst_55 {dimension_numbers = #tpu.dot_dimension_numbers<[1], [0], [0], [1], [0, 0, 1, 1], [], []>} : vector<128x64xbf16>, vector<64x32xbf16>, vector<128x32xf32> -> vector<128x32xf32>
    %161 = vector.broadcast %25 : vector<1x32xf32> to vector<128x32xf32>
    %162 = arith.addf %160, %161 : vector<128x32xf32>
    %163 = arith.addf %152, %162 : vector<128x32xf32>
    %cst_56 = arith.constant dense<0.000000e+00> : vector<128xf32>
    %164 = vector.multi_reduction <add>, %163, %cst_56 [1] : vector<128x32xf32> to vector<128xf32>
    %165 = vector.shape_cast %164 : vector<128xf32> to vector<128x1xf32>
    %cst_57 = arith.constant 3.200000e+01 : f32
    %166 = vector.broadcast %cst_57 : f32 to vector<128x1xf32>
    %167 = arith.divf %165, %166 : vector<128x1xf32>
    %168 = vector.broadcast %167 : vector<128x1xf32> to vector<128x32xf32>
    %169 = arith.subf %163, %168 : vector<128x32xf32>
    %170 = arith.mulf %169, %169 : vector<128x32xf32>
    %cst_58 = arith.constant dense<0.000000e+00> : vector<128xf32>
    %171 = vector.multi_reduction <add>, %170, %cst_58 [1] : vector<128x32xf32> to vector<128xf32>
    %172 = vector.shape_cast %171 : vector<128xf32> to vector<128x1xf32>
    %cst_59 = arith.constant 3.200000e+01 : f32
    %173 = vector.broadcast %cst_59 : f32 to vector<128x1xf32>
    %174 = arith.divf %172, %173 : vector<128x1xf32>
    %175 = vector.broadcast %167 : vector<128x1xf32> to vector<128x32xf32>
    %176 = arith.subf %163, %175 : vector<128x32xf32>
    %cst_60 = arith.constant 9.99999974E-6 : f32
    %177 = vector.broadcast %cst_60 : f32 to vector<128x1xf32>
    %178 = arith.addf %174, %177 : vector<128x1xf32>
    %179 = math.rsqrt %178 : vector<128x1xf32>
    %180 = vector.broadcast %179 : vector<128x1xf32> to vector<128x32xf32>
    %181 = arith.mulf %176, %180 : vector<128x32xf32>
    %182 = vector.broadcast %26 : vector<1x32xf32> to vector<128x32xf32>
    %183 = arith.mulf %181, %182 : vector<128x32xf32>
    %184 = vector.broadcast %27 : vector<1x32xf32> to vector<128x32xf32>
    %185 = arith.addf %183, %184 : vector<128x32xf32>
    %186 = vector.shape_cast %185 : vector<128x32xf32> to vector<2x64x32xf32>
    %c0_61 = arith.constant 0 : index
    %c0_62 = arith.constant 0 : index
    %c0_63 = arith.constant 0 : index
    %187 = vector.load %arg11[%c0_61, %c0_62, %c0_63] : memref<2x64x32xf32, #tpu.memory_space<vmem>>, vector<2x64x32xf32>
    tpu.vector_store %arg11[%c0_61, %c0_62, %c0_63], %186 {strides = array<i32>} : memref<2x64x32xf32, #tpu.memory_space<vmem>>, vector<2x64x32xf32>,
    return
  }
  func.func @transform_0(%arg0: i32, %arg1: i32) -> (i32, i32, i32) {
    %c0_i32 = arith.constant 0 : i32
    %c0_i32_0 = arith.constant 0 : i32
    %c0_i32_1 = arith.constant 0 : i32
    return %arg0, %c0_i32, %c0_i32_0 : i32, i32, i32
  }
  func.func @transform_1(%arg0: i32, %arg1: i32) -> (i32, i32, i32) {
    %c0_i32 = arith.constant 0 : i32
    %c0_i32_0 = arith.constant 0 : i32
    %c0_i32_1 = arith.constant 0 : i32
    return %arg0, %c0_i32, %c0_i32_0 : i32, i32, i32
  }
  func.func @transform_2(%arg0: i32, %arg1: i32) -> (i32, i32, i32) {
    %c0_i32 = arith.constant 0 : i32
    %c0_i32_0 = arith.constant 0 : i32
    %c0_i32_1 = arith.constant 0 : i32
    return %arg0, %c0_i32, %c0_i32_0 : i32, i32, i32
  }
  func.func @transform_3(%arg0: i32, %arg1: i32) -> (i32, i32, i32) {
    %c0_i32 = arith.constant 0 : i32
    %c0_i32_0 = arith.constant 0 : i32
    %c0_i32_1 = arith.constant 0 : i32
    return %arg0, %c0_i32, %c0_i32_0 : i32, i32, i32
  }
  func.func @transform_4(%arg0: i32, %arg1: i32) -> (i32, i32, i32, i32) {
    %c0_i32 = arith.constant 0 : i32
    %c0_i32_0 = arith.constant 0 : i32
    %c0_i32_1 = arith.constant 0 : i32
    %c0_i32_2 = arith.constant 0 : i32
    return %arg1, %c0_i32, %c0_i32_0, %c0_i32_1 : i32, i32, i32, i32
  }
  func.func @transform_5(%arg0: i32, %arg1: i32) -> (i32, i32, i32) {
    %c0_i32 = arith.constant 0 : i32
    %c0_i32_0 = arith.constant 0 : i32
    %c0_i32_1 = arith.constant 0 : i32
    return %arg1, %c0_i32, %c0_i32_0 : i32, i32, i32
  }
  func.func @transform_6(%arg0: i32, %arg1: i32) -> (i32, i32, i32) {
    %c0_i32 = arith.constant 0 : i32
    %c0_i32_0 = arith.constant 0 : i32
    %c0_i32_1 = arith.constant 0 : i32
    return %arg1, %c0_i32, %c0_i32_0 : i32, i32, i32
  }
  func.func @transform_7(%arg0: i32, %arg1: i32) -> (i32, i32, i32) {
    %c0_i32 = arith.constant 0 : i32
    %c0_i32_0 = arith.constant 0 : i32
    %c0_i32_1 = arith.constant 0 : i32
    return %arg1, %c0_i32, %c0_i32_0 : i32, i32, i32
  }
  func.func @transform_8(%arg0: i32, %arg1: i32) -> (i32, i32, i32) {
    %c0_i32 = arith.constant 0 : i32
    %c0_i32_0 = arith.constant 0 : i32
    %c0_i32_1 = arith.constant 0 : i32
    return %arg1, %c0_i32, %c0_i32_0 : i32, i32, i32
  }
  func.func @transform_9(%arg0: i32, %arg1: i32) -> (i32, i32, i32) {
    %c0_i32 = arith.constant 0 : i32
    %c0_i32_0 = arith.constant 0 : i32
    %c0_i32_1 = arith.constant 0 : i32
    return %arg0, %c0_i32, %c0_i32_0 : i32, i32, i32
  }
}

</mosaic_0001>

<bundles_post_ra>
// kernel: cross_at_forward.1
= control target key start
LH: loop header
LB: loop body
LE: loop exit
PB: predicated region body
PF: predicated region fallthrough
CT: control target
= control target key end

     0   :  { %s6224_s30 = smov 0   ;;  %s6226_s10 = smov 0   ;;  %s8374_s0 = inlined_call_operand.vmem [shape: f32[4,64,32], index: 0, kind: input, shape index: {}]   ;;  %s8375_s1 = inlined_call_operand.vmem [shape: f32[4,64,32], index: 1, kind: input, shape index: {}]   ;;  %s8376_s2 = inlined_call_operand.vmem [shape: f32[4,64,32], index: 2, kind: input, shape index: {}]   ;;  %s8377_s3 = inlined_call_operand.vmem [shape: f32[4,64,32], index: 3, kind: input, shape index: {}]   ;;  %s8378_s4 = inlined_call_operand.vmem [shape: bf16[2,4,32,32], index: 4, kind: input, shape index: {}]   ;;  %s8379_s5 = inlined_call_operand.vmem [shape: bf16[2,32,64], index: 5, kind: input, shape index: {}]   ;;  %s8380_s6 = inlined_call_operand.vmem [shape: bf16[2,64,32], index: 6, kind: input, shape index: {}]   ;;  %s8381_s7 = inlined_call_operand.vmem [shape: f32[2,9,32], index: 7, kind: input, shape index: {}]   ;;  %s8382_s8 = inlined_call_operand.vmem [shape: f32[2,1,64], index: 8, kind: input, shape index: {}]   ;;  %s8383_s9 = inlined_call_operand.vmem [shape: f32[4,64,32], index: 9, kind: output, shape index: {}]  }
   0x1   :  { %8394 = sst [smem:[#allocation29_spill]] %s8374_s0  ;;  %s6228_s11 = smov 0  }
   0x2   :  { %8395 = sst [smem:[#allocation30_spill]] %s8375_s1  ;;  %s6230_s12 = smov 0  }
   0x3   :  { %8396 = sst [smem:[#allocation31_spill]] %s8376_s2  ;;  %s6232_s13 = smov 0  }
   0x4   :  { %8397 = sst [smem:[#allocation32_spill]] %s8377_s3 }
   0x5   :  { %8398 = sst [smem:[#allocation33_spill]] %s8378_s4 }
   0x6 LB: > { %8399 = sst [smem:[#allocation2_spill]] %s6162_s12  ;;  %s28_s14 = sadd.s32 1, %s6158_s11  ;;  %s6166_s13 = sphi %s6232_s13, %s19_s13   ;;  %s6162_s12 = sphi %s6230_s12, %s8473_s12   ;;  %s6158_s11 = sphi %s6228_s11, %s8475_s11   ;;  %s6154_s10 = sphi %s6226_s10, %s8471_s10   ;;  %s6150_s30 = sphi %s6224_s30, %s8474_s30  }
   0x7   : > { %s31_s15 = sadd.s32 1, %s6162_s12  ;;  %p29_p0 = scmp.ge.s32.totalorder %s28_s14, 2 }
   0x8   : > { %p4840_p1 = scmp.ge.s32.totalorder %s6166_s13, 1  ;;  %p385_p2 = scmp.lt.s32.totalorder %s6166_s13, 5 }
   0x9   : > { %s8477_s14 = smov (%p29_p0, %s28_s14), 0  ;;  %s8479_s15 = smov (!%p29_p0, %s31_s15), %s6162_s12 }
   0xa   : > { %8400 = sst [smem:[#allocation3_spill]] %s8477_s14  ;;  %p386_p3 = pnand %p4840_p1, %p385_p2 }
   0xb   : > { %p33_p4 = scmp.ge.s32.totalorder %s8479_s15, 2 }
   0xc   : > { %389 = sbr.rel (%p386_p3) target bundleno = 4876 (0x130c), region = 56 }
   0xd   : > { %s8481_s15 = smov (%p33_p4, %s8479_s15), 0 }
   0xe   : > { %8401 = sst [smem:[#allocation4_spill]] %s8481_s15 }
  0x13   : > { %s4841_s16 = sshll.u32 %s6154_s10, 1  ;;  %p492_p5 = scmp.lt.s32.totalorder %s6150_s30, 1 }
  0x14   : > { %p465_p6 = scmp.lt.s32.totalorder %s4841_s16, 3  ;;  %s8402_s4 = sld [smem:[#allocation33_spill]] }
  0x15   : > { %s6258_s17 = scalar_select %p492_p5, %s6150_s30, 1 }
  0x16   : > { %s8483_s16 = smov (!%p465_p6, %s4841_s16), 3  ;;  %s8403_s0 = sld [smem:[#allocation29_spill]] }
  0x17   : > { %s4999_s18 = sshll.u32 %s6258_s17, 6  ;;  %s5000_s19 = sshll.u32 %s6258_s17, 4 }
  0x18   : > { %s4995_s20 = sshll.u32 %s8483_s16, 6  ;;  %s8404_s1 = sld [smem:[#allocation30_spill]] }
  0x19   : > { %s8405_s2 = sld [smem:[#allocation31_spill]]  ;;  %s8406_s3 = sld [smem:[#allocation32_spill]] }
  0x1a   : > { %s6265_s23 = scalar_lea.vmem %s8402_s4, %s4999_s18  ;;  %s6290_s24 = scalar_lea.vmem %s8379_s5, %s5000_s19 }
  0x1b   : > { %s5001_s25 = sshll.u32 %s6258_s17, 5  ;;  %s6301_s10 = scalar_lea.vmem %s8381_s7, %s5000_s19 }
  0x1c   : > { %s6270_s26 = scalar_lea.vmem %s8403_s0, %s4995_s20  ;;  %s6296_s28 = scalar_lea.vmem %s8380_s6, %s5001_s25 }
  0x1d   : > { %s514_s16 = scalar_lea.vmem %s8382_s8, %s6258_s17  ;;  %s6310_s21 = scalar_lea.vmem %s8383_s9, %s4995_s20 }
  0x1e   : > { %s6275_s29 = scalar_lea.vmem %s8404_s1, %s4995_s20  ;;  %p4864_p7 = scmp.ne.s32.totalorder %s6150_s30, 0 }
  0x1f   : > { %s6280_s14 = scalar_lea.vmem %s8405_s2, %s4995_s20  ;;  %s6285_s18 = scalar_lea.vmem %s8406_s3, %s4995_s20  ;;  %v527_v0 = vld [vmem:[%s6270_s26] sm:$0xff] (!%p4864_p7)  ;;  %vm543_vm0 = vcmask (!%p4864_p7), 261120   ;;  %v528_v1 = vld [vmem:[%s6270_s26 + $0x8] sm:$0xff] (!%p4864_p7)  ;;  %v529_v2 = vld [vmem:[%s6270_s26 + $0x10] sm:$0xff] (!%p4864_p7) }
  0x20   : > { %526 = sbr.rel (%p4864_p7) target bundleno = 40 (0x28), region = 60  ;;  %544 = vst.msk [vmem:[%s6310_s21] sm:$0xff] (!%p4864_p7), %vm543_vm0, %v527_v0  ;;  %545 = vst.msk [vmem:[%s6310_s21 + $0x8] sm:$0xff] (!%p4864_p7), %vm543_vm0, %v528_v1  ;;  %v530_v3 = vld [vmem:[%s6270_s26 + $0x18] sm:$0xff] (!%p4864_p7)  ;;  %v531_v4 = vld [vmem:[%s6270_s26 + $0x20] sm:$0xff] (!%p4864_p7) }
  0x21   : > { %546 = vst.msk [vmem:[%s6310_s21 + $0x10] sm:$0xff] (!%p4864_p7), %vm543_vm0, %v529_v2  ;;  %v532_v5 = vld [vmem:[%s6270_s26 + $0x28] sm:$0xff] (!%p4864_p7)  ;;  %547 = vst.msk [vmem:[%s6310_s21 + $0x18] sm:$0xff] (!%p4864_p7), %vm543_vm0, %v530_v3  ;;  %v533_v6 = vld [vmem:[%s6270_s26 + $0x30] sm:$0xff] (!%p4864_p7) }
  0x22   : > { %548 = vst.msk [vmem:[%s6310_s21 + $0x20] sm:$0xff] (!%p4864_p7), %vm543_vm0, %v531_v4  ;;  %549 = vst.msk [vmem:[%s6310_s21 + $0x28] sm:$0xff] (!%p4864_p7), %vm543_vm0, %v532_v5  ;;  %v534_v7 = vld [vmem:[%s6270_s26 + $0x38] sm:$0xff] (!%p4864_p7)  ;;  %v535_v8 = vld [vmem:[%s6270_s26 + $0x40] sm:$0xff] (!%p4864_p7) }
  0x23   : > { %550 = vst.msk [vmem:[%s6310_s21 + $0x30] sm:$0xff] (!%p4864_p7), %vm543_vm0, %v533_v6  ;;  %551 = vst.msk [vmem:[%s6310_s21 + $0x38] sm:$0xff] (!%p4864_p7), %vm543_vm0, %v534_v7  ;;  %v536_v9 = vld [vmem:[%s6270_s26 + $0x48] sm:$0xff] (!%p4864_p7)  ;;  %v537_v10 = vld [vmem:[%s6270_s26 + $0x50] sm:$0xff] (!%p4864_p7) }
  0x24   : > { %552 = vst.msk [vmem:[%s6310_s21 + $0x40] sm:$0xff] (!%p4864_p7), %vm543_vm0, %v535_v8  ;;  %v538_v11 = vld [vmem:[%s6270_s26 + $0x58] sm:$0xff] (!%p4864_p7)  ;;  %553 = vst.msk [vmem:[%s6310_s21 + $0x48] sm:$0xff] (!%p4864_p7), %vm543_vm0, %v536_v9  ;;  %v539_v12 = vld [vmem:[%s6270_s26 + $0x60] sm:$0xff] (!%p4864_p7) }
  0x25   : > { %554 = vst.msk [vmem:[%s6310_s21 + $0x50] sm:$0xff] (!%p4864_p7), %vm543_vm0, %v537_v10  ;;  %555 = vst.msk [vmem:[%s6310_s21 + $0x58] sm:$0xff] (!%p4864_p7), %vm543_vm0, %v538_v11  ;;  %v540_v13 = vld [vmem:[%s6270_s26 + $0x68] sm:$0xff] (!%p4864_p7)  ;;  %v541_v14 = vld [vmem:[%s6270_s26 + $0x70] sm:$0xff] (!%p4864_p7) }
  0x26   : > { %556 = vst.msk [vmem:[%s6310_s21 + $0x60] sm:$0xff] (!%p4864_p7), %vm543_vm0, %v539_v12  ;;  %557 = vst.msk [vmem:[%s6310_s21 + $0x68] sm:$0xff] (!%p4864_p7), %vm543_vm0, %v540_v13  ;;  %v542_v15 = vld [vmem:[%s6270_s26 + $0x78] sm:$0xff] (!%p4864_p7) }
  0x27   : > { %558 = vst.msk [vmem:[%s6310_s21 + $0x70] sm:$0xff] %vm543_vm0, %v541_v14  ;;  %559 = vst.msk [vmem:[%s6310_s21 + $0x78] sm:$0xff] %vm543_vm0, %v542_v15 }
  0x28 PF: > { %v5776_v16 = vld [vmem:[%s6265_s23] sm:$0xff]   ;;  %v5777_v17 = vld [vmem:[%s6265_s23 + $0x8] sm:$0xff]   ;;  %v649_v26 = vld [vmem:[%s6285_s18 + $0x50] sm:$0xff]  ;;  %vm727_vm1 = vcmask 261120   ;;  %vm1163_vm2 = vcmask 64512   ;;  %s6168_s0 = smov 120  }
  0x29   : > { %5574 = vmatprep.subr.bf16.mxu1 %v5776_v16  ;;  %v647_v20 = vld [vmem:[%s6285_s18 + $0x40] sm:$0xff]  ;;  %5194 = vmatprep.subr.bf16.mxu0 %v5776_v16  ;;  %v648_v21 = vld [vmem:[%s6285_s18 + $0x48] sm:$0xff]  ;;  %v650_v27 = vld [vmem:[%s6285_s18 + $0x58] sm:$0xff]  ;;  %vm1342_vm3 = vcmask 523264   ;;  %s6169_s1 = smov 112   ;;  %s6170_s2 = smov 104  }
  0x2a   : > { %5576 = vmatpush3.bf16.msra.mxu1 %v5776_v16  ;;  %5195 = vmatpush3.bf16.msra.mxu0 %v5776_v16  ;;  %v5778_v30 = vld [vmem:[%s6265_s23 + $0x10] sm:$0xff]   ;;  %v651_v34 = vld [vmem:[%s6285_s18 + $0x60] sm:$0xff]  ;;  %v652_v35 = vld [vmem:[%s6285_s18 + $0x68] sm:$0xff]  ;;  %s6171_s3 = smov 8   ;;  %s6172_s4 = smov 16   ;;  %vm3629_vm4 = vcmask 130048  }
  0x2b   : > { %5575 = vmatprep.subr.bf16.mxu1 %v5777_v17  ;;  %5196 = vmatprep.subr.bf16.mxu0 %v5777_v17  ;;  %v653_v41 = vld [vmem:[%s6285_s18 + $0x70] sm:$0xff]  ;;  %v654_v42 = vld [vmem:[%s6285_s18 + $0x78] sm:$0xff]  ;;  %v6383_v45 = vld [vmem:[%s6275_s29] sm:$0xff]  ;;  %s6173_s30 = smov 24   ;;  %vm3646_vm5 = vcmask 195584  }
  0x2c   : > { %v599_v18 = vld [vmem:[%s6310_s21 + $0x40] sm:$0xff]  ;;  %v600_v19 = vld [vmem:[%s6310_s21 + $0x48] sm:$0xff]  ;;  %v5779_v44 = vld [vmem:[%s6265_s23 + $0x18] sm:$0xff]  }
  0x2d   : > { %v663_v22 = vadd.f32 %v647_v20, %v599_v18  ;;  %v601_v23 = vld [vmem:[%s6310_s21 + $0x50] sm:$0xff]  ;;  %v602_v24 = vld [vmem:[%s6310_s21 + $0x58] sm:$0xff]  ;;  %v664_v25 = vadd.f32 %v648_v21, %v600_v19  ;;  %v6386_v46 = vld [vmem:[%s6275_s29 + $0x8] sm:$0xff] }
  0x2e   : > { %v665_v28 = vadd.f32 %v649_v26, %v601_v23  ;;  %v666_v29 = vadd.f32 %v650_v27, %v602_v24  ;;  %v603_v31 = vld [vmem:[%s6310_s21 + $0x60] sm:$0xff]  ;;  %v604_v33 = vld [vmem:[%s6310_s21 + $0x68] sm:$0xff]  ;;  %5577 = vmatpush3.bf16.msra.mxu1 %v5777_v17  ;;  %v605_v39 = vld [vmem:[%s6310_s21 + $0x70] sm:$0xff]  ;;  %5197 = vmatpush3.bf16.msra.mxu0 %v5777_v17 }
  0x2f   : > { %v675_v32 = vpack.c.bf16 %v664_v25, %v663_v22  ;;  %v667_v37 = vadd.f32 %v651_v34, %v603_v31  ;;  %v668_v38 = vadd.f32 %v652_v35, %v604_v33  ;;  %v606_v40 = vld [vmem:[%s6310_s21 + $0x78] sm:$0xff]  ;;  %5214 = vmatprep.subr.bf16.mxu1 %v5778_v30  ;;  %v669_v47 = vadd.f32 %v653_v41, %v605_v39  ;;  %v623_v49 = vld [vmem:[%s6280_s14] sm:$0xff]  ;;  %v624_v50 = vld [vmem:[%s6280_s14 + $0x8] sm:$0xff] }
  0x30   : > { %v676_v36 = vpack.c.bf16 %v666_v29, %v665_v28  ;;  %v670_v48 = vadd.f32 %v654_v42, %v606_v40  ;;  %v679_v51 = vadd.f32 %v623_v49, %v6383_v45  ;;  %v680_v52 = vadd.f32 %v624_v50, %v6386_v46  ;;  %v6395_v54 = vld [vmem:[%s6275_s29 + $0x10] sm:$0xff]  ;;  %v6398_v55 = vld [vmem:[%s6275_s29 + $0x18] sm:$0xff]  ;;  %v6403_v59 = vld [vmem:[%s6275_s29 + $0x20] sm:$0xff] }
  0x31   : > { %5206 = vmatprep.mubr.msk.bf16.mxu1 %vm727_vm1, %v675_v32  ;;  %v677_v43 = vpack.c.bf16 %v668_v38, %v667_v37  ;;  %v625_v57 = vld [vmem:[%s6280_s14 + $0x10] sm:$0xff]  ;;  %v626_v58 = vld [vmem:[%s6280_s14 + $0x18] sm:$0xff]  ;;  %v6406_v60 = vld [vmem:[%s6275_s29 + $0x28] sm:$0xff] }
  0x32   : > { %5207 = vmatmul.mubr.msk.bf16.vlgmr.msra.gmra.mrb[0].mxu1 %vm727_vm1, %v676_v36  ;;  %v678_v53 = vpack.c.bf16 %v670_v48, %v669_v47  ;;  %v695_v56 = vpack.c.bf16 %v680_v52, %v679_v51  ;;  %v627_v61 = vld [vmem:[%s6280_s14 + $0x20] sm:$0xff]  ;;  %v628_v62 = vld [vmem:[%s6280_s14 + $0x28] sm:$0xff]  ;;  %v681_v1 = vadd.f32 %v625_v57, %v6395_v54  ;;  %v682_v2 = vadd.f32 %v626_v58, %v6398_v55  ;;  %v593_v5 = vld [vmem:[%s6310_s21 + $0x10] sm:$0xff] }
  0x33   : > { %5215 = vmatpush3.bf16.msra.mxu1 %v5778_v30  ;;  %5210 = vmatprep.mubr.msk.bf16.mxu1 %vm727_vm1, %v677_v43  ;;  %v591_v63 = vld [vmem:[%s6310_s21] sm:$0xff]  ;;  %v592_v0 = vld [vmem:[%s6310_s21 + $0x8] sm:$0xff]  ;;  %v683_v6 = vadd.f32 %v627_v61, %v6403_v59  ;;  %v684_v7 = vadd.f32 %v628_v62, %v6406_v60  ;;  %v594_v10 = vld [vmem:[%s6310_s21 + $0x18] sm:$0xff] }
  0x34   : > { %5216 = vmatprep.subr.bf16.mxu1 %v5779_v44  ;;  %v639_v3 = vld [vmem:[%s6285_s18] sm:$0xff]  ;;  %v640_v4 = vld [vmem:[%s6285_s18 + $0x8] sm:$0xff]  ;;  %v641_v11 = vld [vmem:[%s6285_s18 + $0x10] sm:$0xff]  ;;  %v696_v20 = vpack.c.bf16 %v682_v2, %v681_v1  ;;  %v704_v2 = vpack.c.bf16 %v6398_v55, %v6395_v54 }
  0x35   : > { %v655_v8 = vadd.f32 %v639_v3, %v591_v63  ;;  %v656_v9 = vadd.f32 %v640_v4, %v592_v0  ;;  %v642_v12 = vld [vmem:[%s6285_s18 + $0x18] sm:$0xff]  ;;  %v657_v13 = vadd.f32 %v641_v11, %v593_v5  ;;  %v6425_v15 = vld [vmem:[%s6275_s29 + $0x30] sm:$0xff]  ;;  %v6433_v21 = vld [vmem:[%s6275_s29 + $0x40] sm:$0xff]  ;;  %v697_v27 = vpack.c.bf16 %v684_v7, %v683_v6 }
  0x36   : > { %v658_v14 = vadd.f32 %v642_v12, %v594_v10  ;;  %v6428_v16 = vld [vmem:[%s6275_s29 + $0x38] sm:$0xff]  ;;  %v629_v17 = vld [vmem:[%s6280_s14 + $0x30] sm:$0xff]  ;;  %v6436_v22 = vld [vmem:[%s6275_s29 + $0x48] sm:$0xff]  ;;  %v705_v3 = vpack.c.bf16 %v6406_v60, %v6403_v59 }
  0x37   : > { %5217 = vmatpush3.bf16.msra.mxu1 %v5779_v44  ;;  %v630_v18 = vld [vmem:[%s6280_s14 + $0x38] sm:$0xff]  ;;  %v671_v19 = vpack.c.bf16 %v656_v9, %v655_v8  ;;  %v631_v23 = vld [vmem:[%s6280_s14 + $0x40] sm:$0xff]  ;;  %v632_v24 = vld [vmem:[%s6280_s14 + $0x48] sm:$0xff]  ;;  %v685_v38 = vadd.f32 %v629_v17, %v6425_v15  ;;  %v706_v54 = vpack.c.bf16 %v6428_v16, %v6425_v15  ;;  %v707_v59 = vpack.c.bf16 %v6436_v22, %v6433_v21 }
  0x38   : > { %v672_v25 = vpack.c.bf16 %v658_v14, %v657_v13  ;;  %v595_v26 = vld [vmem:[%s6310_s21 + $0x20] sm:$0xff]  ;;  %v596_v28 = vld [vmem:[%s6310_s21 + $0x28] sm:$0xff]  ;;  %v597_v33 = vld [vmem:[%s6310_s21 + $0x30] sm:$0xff]  ;;  %v686_v39 = vadd.f32 %v630_v18, %v6428_v16  ;;  %v687_v43 = vadd.f32 %v631_v23, %v6433_v21  ;;  %v688_v44 = vadd.f32 %v632_v24, %v6436_v22 }
  0x39   : > { %5198 = vmatprep.mubr.msk.bf16.mxu0 %vm727_vm1, %v671_v19  ;;  %v643_v29 = vld [vmem:[%s6285_s18 + $0x20] sm:$0xff]  ;;  %v644_v30 = vld [vmem:[%s6285_s18 + $0x28] sm:$0xff]  ;;  %v598_v34 = vld [vmem:[%s6310_s21 + $0x38] sm:$0xff]  ;;  %v711_v14 = vlaneseq }
  0x3a   : > { %5211 = vmatmul.mubr.msk.bf16.gmra.mrb[4].mxu1 %vm727_vm1, %v678_v53  ;;  %5199 = vmatmul.mubr.msk.bf16.vlgmr.msra.gmra.mrb[0].mxu0 %vm727_vm1, %v672_v25  ;;  %v659_v31 = vadd.f32 %v643_v29, %v595_v26  ;;  %v660_v32 = vadd.f32 %v644_v30, %v596_v28  ;;  %v645_v35 = vld [vmem:[%s6285_s18 + $0x30] sm:$0xff]  ;;  %v646_v36 = vld [vmem:[%s6285_s18 + $0x38] sm:$0xff]  ;;  %v5780_v42 = vld [vmem:[%s6265_s23 + $0x20] sm:$0xff]   ;;  %v703_v53 = vpack.c.bf16 %v6386_v46, %v6383_v45 }
  0x3b   : > { %5218 = vmatprep.mubr.msk.bf16.mxu1 %vm727_vm1, %v695_v56  ;;  %v661_v37 = vadd.f32 %v645_v35, %v597_v33  ;;  %v662_v41 = vadd.f32 %v646_v36, %v598_v34  ;;  %v5781_v47 = vld [vmem:[%s6265_s23 + $0x28] sm:$0xff]   ;;  %5234 = vmatprep.subr.bf16.mxu0 %v5780_v42  ;;  %v617_v49 = vld [vmem:[%s6275_s29 + $0x50] sm:$0xff]  ;;  %v618_v50 = vld [vmem:[%s6275_s29 + $0x58] sm:$0xff]  ;;  %v698_v56 = vpack.c.bf16 %v686_v39, %v685_v38  ;;  %v6495_v15 = vshrl.u32 %v711_v14, 7 }
  0x3c   : > { %v673_v40 = vpack.c.bf16 %v660_v32, %v659_v31  ;;  %v633_v51 = vld [vmem:[%s6280_s14 + $0x50] sm:$0xff]  ;;  %v634_v52 = vld [vmem:[%s6280_s14 + $0x58] sm:$0xff]  ;;  %5235 = vmatpush3.bf16.msra.mxu0 %v5780_v42  ;;  %v619_v57 = vld [vmem:[%s6275_s29 + $0x60] sm:$0xff]  ;;  %v699_v63 = vpack.c.bf16 %v688_v44, %v687_v43  ;;  %v708_v60 = vpack.c.bf16 %v618_v50, %v617_v49 }
  0x3d   : > { %v674_v48 = vpack.c.bf16 %v662_v41, %v661_v37  ;;  %v620_v58 = vld [vmem:[%s6275_s29 + $0x68] sm:$0xff]  ;;  %v635_v61 = vld [vmem:[%s6280_s14 + $0x60] sm:$0xff]  ;;  %5236 = vmatprep.subr.bf16.mxu0 %v5781_v47  ;;  %v689_v0 = vadd.f32 %v633_v51, %v617_v49  ;;  %v690_v45 = vadd.f32 %v634_v52, %v618_v50  ;;  %v621_v5 = vld [vmem:[%s6275_s29 + $0x70] sm:$0xff]  ;;  %8407 = vst [vmem:[#allocation5_spill] sm:$0xff] %v6495_v15  ;;  %v713_v16 = vsub.s32 0, %v6495_v15 }
  0x3e   : > { %5202 = vmatprep.mubr.msk.bf16.mxu0 %vm727_vm1, %v673_v40  ;;  %v636_v62 = vld [vmem:[%s6280_s14 + $0x68] sm:$0xff]  ;;  %v691_v46 = vadd.f32 %v635_v61, %v619_v57  ;;  %v622_v7 = vld [vmem:[%s6275_s29 + $0x78] sm:$0xff]  ;;  %v637_v8 = vld [vmem:[%s6280_s14 + $0x70] sm:$0xff]  ;;  %v709_v12 = vpack.c.bf16 %v620_v58, %v619_v57  ;;  %v851_v40 = vsub.s32 1, %v6495_v15 }
  0x3f   : > { %v692_v1 = vadd.f32 %v636_v62, %v620_v58  ;;  %v700_v4 = vpack.c.bf16 %v690_v45, %v689_v0  ;;  %v638_v9 = vld [vmem:[%s6280_s14 + $0x78] sm:$0xff]  ;;  %v693_v10 = vadd.f32 %v637_v8, %v621_v5  ;;  %v710_v13 = vpack.c.bf16 %v622_v7, %v621_v5  ;;  %v6499_v17 = vld [vmem:[%s6301_s10] sm:$0xff] }
  0x40   : > { %5237 = vmatpush3.bf16.msra.mxu0 %v5781_v47  ;;  %v694_v11 = vadd.f32 %v638_v9, %v622_v7  ;;  %v6502_v18 = vrot.slane %v6499_v17, %v713_v16  ;;  %v6522_v50 = vrot.slane %v6499_v17, %v851_v40 }
  0x41   : > { %v701_v6 = vpack.c.bf16 %v692_v1, %v691_v46 }
  0x42   : > { %5219 = vmatmul.mubr.msk.bf16.vlgmr.msra.gmra.mrb[8].mxu1 %vm727_vm1, %v696_v20  ;;  %5203 = vmatmul.mubr.msk.bf16.gmra.mrb[4].mxu0 %vm727_vm1, %v674_v48  ;;  %v702_v55 = vpack.c.bf16 %v694_v11, %v693_v10 }
  0x43   : > { %5222 = vmatprep.mubr.msk.bf16.mxu1 %vm727_vm1, %v697_v27  ;;  %5238 = vmatprep.mubr.msk.bf16.mxu0 %vm727_vm1, %v703_v53 }
  0x4a   : > { %5223 = vmatmul.mubr.msk.bf16.gmra.mrb[12].mxu1 %vm727_vm1, %v698_v56  ;;  %5239 = vmatmul.mubr.msk.bf16.vlgmr.msra.gmra.mrb[8].mxu0 %vm727_vm1, %v704_v2 }
  0x4b   : > { %5226 = vmatprep.mubr.msk.bf16.mxu1 %vm727_vm1, %v699_v63  ;;  %5242 = vmatprep.mubr.msk.bf16.mxu0 %vm727_vm1, %v705_v3 }
  0x52   : > { %5227 = vmatmul.mubr.msk.bf16.gmra.mrb[16].mxu1 %vm727_vm1, %v700_v4  ;;  %5243 = vmatmul.mubr.msk.bf16.gmra.mrb[12].mxu0 %vm727_vm1, %v706_v54 }
  0x53   : > { %5230 = vmatprep.mubr.msk.bf16.mxu1 %vm727_vm1, %v701_v6  ;;  %5246 = vmatprep.mubr.msk.bf16.mxu0 %vm727_vm1, %v707_v59 }
  0x5a   : > { %5231 = vmatmul.mubr.msk.bf16.gmra.mrb[20].mxu1 %vm727_vm1, %v702_v55  ;;  %5247 = vmatmul.mubr.msk.bf16.gmra.mrb[16].mxu0 %vm727_vm1, %v708_v60 }
  0x5b   : > { %5250 = vmatprep.mubr.msk.bf16.mxu0 %vm727_vm1, %v709_v12 }
  0x62   : > { %5251 = vmatmul.mubr.msk.bf16.gmra.mrb[20].mxu0 %vm727_vm1, %v710_v13 }
 0x105   : > { %v5208_v19 = vpop.f32.mrb[0].mxu1 }
 0x106   : > { %v827_v20 = vadd.f32 %v5208_v19, %v6502_v18  ;;  %v818_v21 = vpop.f32.mrb[1].mxu1 }
 0x107   : > { %v819_v22 = vadd.f32 %v818_v21, %v6502_v18  ;;  %v5209_v23 = vpop.f32.mrb[2].mxu1 }
 0x108   : > { %v830_v24 = vadd.f32 %v5209_v23, %v6502_v18  ;;  %v821_v25 = vpop.f32.mrb[3].mxu1  ;;  %v1133_v27 = vmul.f32 0.35355338, %v827_v20 }
 0x109   : > { %v822_v26 = vadd.f32 %v821_v25, %v6502_v18  ;;  %v1131_v29 = vmul.f32 0.35355338, %v819_v22 }
 0x10a   : > { %v1134_v28 = vmul.f32 0.35355338, %v830_v24 }
 0x10b   : > { %v1132_v30 = vmul.f32 0.35355338, %v822_v26 }
 0x10c   : > { %v6508_v31 = vpack.c.bf16 %v1134_v28, %v1133_v27 }
 0x10d   : > { %v6510_v32 = vpack.c.bf16 %v1132_v30, %v1131_v29  ;;  %v5212_v33 = vpop.f32.mrb[4].mxu1  ;;  %v5200_v48 = vpop.f32.mrb[0].mxu0 }
 0x10e   : > { %v843_v34 = vadd.f32 %v5212_v33, %v6502_v18  ;;  %v834_v35 = vpop.f32.mrb[5].mxu1  ;;  %v795_v51 = vadd.f32 %v5200_v48, %v6502_v18  ;;  %v786_v52 = vpop.f32.mrb[1].mxu0 }
 0x10f   : > { %v835_v36 = vadd.f32 %v834_v35, %v6502_v18  ;;  %v5213_v37 = vpop.f32.mrb[6].mxu1  ;;  %5278 = vmatprep.mubr.msk.bf16.mxu0 %vm1163_vm2, %v6510_v32  ;;  %v787_v57 = vadd.f32 %v786_v52, %v6502_v18  ;;  %v5201_v58 = vpop.f32.mrb[2].mxu0 }
 0x110   : > { %v846_v38 = vadd.f32 %v5213_v37, %v6502_v18  ;;  %v837_v39 = vpop.f32.mrb[7].mxu1  ;;  %v1137_v42 = vmul.f32 0.35355338, %v843_v34  ;;  %v1125_v62 = vmul.f32 0.35355338, %v795_v51  ;;  %v798_v63 = vadd.f32 %v5201_v58, %v6502_v18  ;;  %v789_v0 = vpop.f32.mrb[3].mxu0 }
 0x111   : > { %v838_v41 = vadd.f32 %v837_v39, %v6502_v18  ;;  %v1135_v44 = vmul.f32 0.35355338, %v835_v36  ;;  %v1123_v46 = vmul.f32 0.35355338, %v787_v57  ;;  %v790_v1 = vadd.f32 %v789_v0, %v6502_v18 }
 0x112   : > { %v1138_v43 = vmul.f32 0.35355338, %v846_v38  ;;  %v1126_v5 = vmul.f32 0.35355338, %v798_v63 }
 0x113   : > { %v1136_v47 = vmul.f32 0.35355338, %v838_v41  ;;  %v1124_v8 = vmul.f32 0.35355338, %v790_v1 }
 0x114   : > { %v6519_v49 = vpack.c.bf16 %v1138_v43, %v1137_v42  ;;  %v6536_v10 = vpack.c.bf16 %v1126_v5, %v1125_v62 }
 0x115   : > { %v6525_v53 = vpack.c.bf16 %v1136_v47, %v1135_v44  ;;  %v5220_v56 = vpop.f32.mrb[8].mxu1  ;;  %v6540_v54 = vpack.c.bf16 %v1124_v8, %v1123_v46  ;;  %v5204_v55 = vpop.f32.mrb[4].mxu0  ;;  %v988_v8 = vsub.s32 2, %v6495_v15 }
 0x116   : > { %v923_v61 = vpop.f32.mrb[9].mxu1  ;;  %v932_v2 = vadd.f32 %v5220_v56, %v6522_v50  ;;  %v811_v59 = vadd.f32 %v5204_v55, %v6502_v18  ;;  %v802_v60 = vpop.f32.mrb[5].mxu0 }
 0x117   : > { %v5221_v45 = vpop.f32.mrb[10].mxu1  ;;  %v924_v6 = vadd.f32 %v923_v61, %v6522_v50  ;;  %v803_v14 = vadd.f32 %v802_v60, %v6502_v18  ;;  %v5205_v16 = vpop.f32.mrb[6].mxu0  ;;  %5262 = vmatprep.mubr.msk.bf16.mxu1 %vm1163_vm2, %v6540_v54  ;;  %v989_v55 = vrot.slane %v6499_v17, %v988_v8 }
 0x118   : > { %v935_v3 = vadd.f32 %v5221_v45, %v6522_v50  ;;  %v926_v4 = vpop.f32.mrb[11].mxu1  ;;  %v1129_v21 = vmul.f32 0.35355338, %v811_v59  ;;  %v814_v22 = vadd.f32 %v5205_v16, %v6502_v18  ;;  %v805_v23 = vpop.f32.mrb[7].mxu0 }
 0x119   : > { %v927_v7 = vadd.f32 %v926_v4, %v6522_v50  ;;  %v1127_v26 = vmul.f32 0.35355338, %v803_v14  ;;  %v806_v27 = vadd.f32 %v805_v23, %v6502_v18 }
 0x11a   : > { %v6534_v9 = vpack.c.bf16 %v935_v3, %v932_v2  ;;  %v1130_v30 = vmul.f32 0.35355338, %v814_v22 }
 0x11b   : > { %v6538_v11 = vpack.c.bf16 %v927_v7, %v924_v6  ;;  %v1128_v34 = vmul.f32 0.35355338, %v806_v27 }
 0x11c   : > { %1699 = vrot.lane.b32.xlu1 %v6534_v9, %s6168_s0  ;;  %v6564_v36 = vpack.c.bf16 %v1130_v30, %v1129_v21  ;;  %v1180_v18 = vsel %vm1163_vm2, %v6534_v9, 0 }
 0x11d   : > { %1697 = vrot.lane.b32.xlu0 %v6538_v11, %s6168_s0  ;;  %5578 = vmatprep.subr.msk.bf16.mxu1 %vm1163_vm2, %v6538_v11  ;;  %v1177_v12 = vsel %vm1163_vm2, %v6538_v11, 0  ;;  %v5224_v13 = vpop.f32.mrb[12].mxu1  ;;  %v6568_v38 = vpack.c.bf16 %v1128_v34, %v1127_v26  ;;  %v5240_v39 = vpop.f32.mrb[8].mxu0 }
 0x11e   : > { %5255 = vmatpush3.bf16.xpose.msra.mxu1 %v1177_v12  ;;  %v948_v19 = vadd.f32 %v5224_v13, %v6522_v50  ;;  %v939_v20 = vpop.f32.mrb[13].mxu1  ;;  %v1069_v12 = vadd.f32 %v5240_v39, %v989_v55  ;;  %v1060_v13 = vpop.f32.mrb[9].mxu0 }
 0x11f   : > { %5579 = vmatprep.subr.msk.bf16.mxu1 %vm1163_vm2, %v6534_v9  ;;  %v940_v24 = vadd.f32 %v939_v20, %v6522_v50  ;;  %v5225_v25 = vpop.f32.mrb[14].mxu1  ;;  %v1061_v16 = vadd.f32 %v1060_v13, %v989_v55 }
 0x120   : > { %v951_v28 = vadd.f32 %v5225_v25, %v6522_v50  ;;  %v942_v29 = vpop.f32.mrb[15].mxu1 }
 0x121   : > { %v943_v33 = vadd.f32 %v942_v29, %v6522_v50 }
 0x122   : > { %v6562_v35 = vpack.c.bf16 %v951_v28, %v948_v19  ;;  %v5241_v19 = vpop.f32.mrb[10].mxu0 }
 0x123   : > { %v6566_v37 = vpack.c.bf16 %v943_v33, %v940_v24  ;;  %v1072_v20 = vadd.f32 %v5241_v19, %v989_v55  ;;  %v1063_v21 = vpop.f32.mrb[11].mxu0 }
 0x124   : > { %v1186_v6 = vsel %vm1163_vm2, %v6562_v35, 0  ;;  %v1064_v22 = vadd.f32 %v1063_v21, %v989_v55 }
 0x125   : > { %v5228_v40 = vpop.f32.mrb[16].mxu1  ;;  %v1183_v57 = vsel %vm1163_vm2, %v6566_v37, 0  ;;  %v5244_v23 = vpop.f32.mrb[12].mxu0  ;;  %v6629_v24 = vpack.c.bf16 %v1072_v20, %v1069_v12 }
 0x126   : > { %v964_v41 = vadd.f32 %v5228_v40, %v6522_v50  ;;  %v955_v42 = vpop.f32.mrb[17].mxu1  ;;  %5257 = vmatpush3.bf16.xpose.msra.mxu1 %v1180_v18  ;;  %v1085_v17 = vadd.f32 %v5244_v23, %v989_v55  ;;  %v1076_v25 = vpop.f32.mrb[13].mxu0  ;;  %v6631_v26 = vpack.c.bf16 %v1064_v22, %v1061_v16 }
 0x127   : > { %v956_v43 = vadd.f32 %v955_v42, %v6522_v50  ;;  %v5229_v44 = vpop.f32.mrb[18].mxu1  ;;  %5580 = vmatprep.subr.msk.bf16.mxu1 %vm1163_vm2, %v6566_v37  ;;  %v1077_v27 = vadd.f32 %v1076_v25, %v989_v55  ;;  %v5245_v28 = vpop.f32.mrb[14].mxu0 }
 0x128   : > { %v967_v47 = vadd.f32 %v5229_v44, %v6522_v50  ;;  %v958_v48 = vpop.f32.mrb[19].mxu1  ;;  %v1088_v29 = vadd.f32 %v5245_v28, %v989_v55  ;;  %v1079_v30 = vpop.f32.mrb[15].mxu0 }
 0x129   : > { %v959_v51 = vadd.f32 %v958_v48, %v6522_v50  ;;  %v1080_v33 = vadd.f32 %v1079_v30, %v989_v55 }
 0x12a   : > { %v6578_v52 = vpack.c.bf16 %v967_v47, %v964_v41  ;;  %v6635_v40 = vpack.c.bf16 %v1088_v29, %v1085_v17 }
 0x12b   : > { %v6580_v56 = vpack.c.bf16 %v959_v51, %v956_v43  ;;  %v6638_v42 = vpack.c.bf16 %v1080_v33, %v1077_v27 }
 0x12c   : > { %v1269_v4 = vsel %vm1163_vm2, %v6578_v52, 0 }
 0x12d   : > { %5582 = vmatprep.subr.msk.bf16.mxu0 %vm1163_vm2, %v6580_v56  ;;  %v1266_v58 = vsel %vm1163_vm2, %v6580_v56, 0  ;;  %v5232_v61 = vpop.f32.mrb[20].mxu1  ;;  %v5248_v34 = vpop.f32.mrb[16].mxu0 }
 0x12e   : > { %5259 = vmatpush3.bf16.xpose.msra.mxu1 %v1183_v57  ;;  %5271 = vmatpush3.bf16.xpose.msra.mxu0 %v1266_v58  ;;  %v980_v62 = vadd.f32 %v5232_v61, %v6522_v50  ;;  %v971_v63 = vpop.f32.mrb[21].mxu1  ;;  %v1101_v18 = vadd.f32 %v5248_v34, %v989_v55  ;;  %v1092_v41 = vpop.f32.mrb[17].mxu0 }
 0x12f   : > { %5581 = vmatprep.subr.msk.bf16.mxu1 %vm1163_vm2, %v6562_v35  ;;  %5583 = vmatprep.subr.msk.bf16.mxu0 %vm1163_vm2, %v6578_v52  ;;  %v972_v0 = vadd.f32 %v971_v63, %v6522_v50  ;;  %v5233_v45 = vpop.f32.mrb[22].mxu1  ;;  %v1093_v43 = vadd.f32 %v1092_v41, %v989_v55  ;;  %v5249_v44 = vpop.f32.mrb[18].mxu0 }
 0x130   : > { %v983_v46 = vadd.f32 %v5233_v45, %v6522_v50  ;;  %v974_v1 = vpop.f32.mrb[23].mxu1  ;;  %v1104_v47 = vadd.f32 %v5249_v44, %v989_v55  ;;  %v1095_v48 = vpop.f32.mrb[19].mxu0 }
 0x131   : > { %v975_v2 = vadd.f32 %v974_v1, %v6522_v50  ;;  %v1096_v51 = vadd.f32 %v1095_v48, %v989_v55 }
 0x132   : > { %v6596_v3 = vpack.c.bf16 %v983_v46, %v980_v62  ;;  %v6641_v58 = vpack.c.bf16 %v1104_v47, %v1101_v18 }
 0x133   : > { %v6600_v5 = vpack.c.bf16 %v975_v2, %v972_v0  ;;  %v6644_v63 = vpack.c.bf16 %v1096_v51, %v1093_v43 }
 0x134   : > { %v1275_v50 = vsel %vm1163_vm2, %v6596_v3, 0 }
 0x135   : > { %v1272_v7 = vsel %vm1163_vm2, %v6600_v5, 0  ;;  %v5252_v57 = vpop.f32.mrb[20].mxu0 }
 0x136   : > { %5261 = vmatpush3.bf16.xpose.msra.mxu1 %v1186_v6  ;;  %5273 = vmatpush3.bf16.xpose.msra.mxu0 %v1269_v4  ;;  %v1117_v61 = vadd.f32 %v5252_v57, %v989_v55  ;;  %v1108_v62 = vpop.f32.mrb[21].mxu0 }
 0x137   : > { %5584 = vmatprep.subr.msk.bf16.mxu0 %vm1163_vm2, %v6600_v5  ;;  %5286 = vmatprep.subr.bf16.mxu1 %v6631_v26  ;;  %v1109_v0 = vadd.f32 %v1108_v62, %v989_v55  ;;  %v5253_v45 = vpop.f32.mrb[22].mxu0 }
 0x138   : > { %v1120_v46 = vadd.f32 %v5253_v45, %v989_v55  ;;  %v1111_v1 = vpop.f32.mrb[23].mxu0 }
 0x139   : > { %v1112_v2 = vadd.f32 %v1111_v1, %v989_v55 }
 0x13a   : > { %v6647_v4 = vpack.c.bf16 %v1120_v46, %v1117_v61 }
 0x13b   : > { %v6650_v6 = vpack.c.bf16 %v1112_v2, %v1109_v0 }
 0x13d   : > { %5263 = vmatmul.mubr.msk.bf16.vlgmr.msra.gmra.mrb[24].mxu1 %vm1163_vm2, %v6536_v10 }
 0x13e   : > { %5275 = vmatpush3.bf16.xpose.msra.mxu0 %v1272_v7  ;;  %5266 = vmatprep.mubr.msk.bf16.mxu1 %vm1163_vm2, %v6568_v38 }
 0x13f   : > { %5585 = vmatprep.subr.msk.bf16.mxu0 %vm1163_vm2, %v6596_v3  ;;  %5287 = vmatpush3.bf16.msra.mxu1 %v6631_v26 }
 0x140   : > { %5288 = vmatprep.subr.bf16.mxu1 %v6629_v24 }
 0x143   : > { %5289 = vmatpush3.bf16.msra.mxu1 %v6629_v24 }
 0x144   : > { %5290 = vmatprep.subr.bf16.mxu1 %v6638_v42 }
 0x145   : > { %5267 = vmatmul.mubr.msk.bf16.gmra.mrb[28].mxu1 %vm1163_vm2, %v6564_v36 }
 0x146   : > { %5277 = vmatpush3.bf16.xpose.msra.mxu0 %v1275_v50 }
 0x147   : > { %5291 = vmatpush3.bf16.msra.mxu1 %v6638_v42 }
 0x148   : > { %5292 = vmatprep.subr.bf16.mxu1 %v6635_v40 }
 0x14b   : > { %5293 = vmatpush3.bf16.msra.mxu1 %v6635_v40 }
 0x14c   : > { %5302 = vmatprep.subr.bf16.mxu1 %v6644_v63 }
 0x14d   : > { %5279 = vmatmul.mubr.msk.bf16.vlgmr.msra.gmra.mrb[24].mxu0 %vm1163_vm2, %v6508_v31 }
 0x14e   : > { %5282 = vmatprep.mubr.msk.bf16.mxu0 %vm1163_vm2, %v6525_v53 }
 0x155   : > { %5283 = vmatmul.mubr.msk.bf16.gmra.mrb[28].mxu0 %vm1163_vm2, %v6519_v49 }
 0x18e   : > { %v1700_v14 = vpop.permute.xlu1 %1699 }
 0x18f   : > { %v1698_v59 = vpop.permute.xlu0 %1697  ;;  %v1721_v39 = vsel %vm1163_vm2, %v1700_v14, 0 }
 0x190   : > { %5586 = vmatprep.subr.msk.bf16.mxu0 %vm1163_vm2, %v1698_v59  ;;  %v1718_v60 = vsel %vm1163_vm2, %v1698_v59, 0 }
 0x191   : > { %5319 = vmatpush3.bf16.xpose.msra.mxu0 %v1718_v60 }
 0x192   : > { %5587 = vmatprep.subr.msk.bf16.mxu0 %vm1163_vm2, %v1700_v14 }
 0x199   : > { %5321 = vmatpush3.bf16.xpose.msra.mxu0 %v1721_v39 }
 0x210   : > { %v5264_v7 = vpop.f32.mrb[24].mxu1 }
 0x211   : > { %v1222_v50 = vpop.f32.mrb[25].mxu1  ;;  %v1349_v8 = vsel %vm1342_vm3, %v5264_v7, -inf }
 0x212   : > { %1350 = vmax.xlane.f32.xlu1 %v1349_v8  ;;  %v5265_v59 = vpop.f32.mrb[26].mxu1  ;;  %v1343_v55 = vsel %vm1342_vm3, %v1222_v50, -inf }
 0x213   : > { %1344 = vmax.xlane.f32.xlu0 %v1343_v55  ;;  %v1225_v60 = vpop.f32.mrb[27].mxu1  ;;  %v1352_v12 = vsel %vm1342_vm3, %v5265_v59, -inf }
 0x214   : > { %v1346_v13 = vsel %vm1342_vm3, %v1225_v60, -inf }
 0x216   : > { %1353 = vmax.xlane.f32.xlu1 %v1352_v12 }
 0x217   : > { %1347 = vmax.xlane.f32.xlu0 %v1346_v13 }
 0x218   : > { %v5268_v14 = vpop.f32.mrb[28].mxu1 }
 0x219   : > { %v6659_v16 = vpop.f32.mrb[29].mxu1  ;;  %v1361_v19 = vsel %vm1342_vm3, %v5268_v14, -inf }
 0x21a   : > { %v5269_v20 = vpop.f32.mrb[30].mxu1  ;;  %v1355_v23 = vsel %vm1342_vm3, %v6659_v16, -inf }
 0x21b   : > { %1362 = vmax.xlane.f32.xlu0 %v1361_v19  ;;  %v6662_v21 = vpop.f32.mrb[31].mxu1  ;;  %v1364_v22 = vsel %vm1342_vm3, %v5269_v20, -inf }
 0x21c   : > { %1365 = vmax.xlane.f32.xlu1 %v1364_v22  ;;  %v1358_v17 = vsel %vm1342_vm3, %v6662_v21, -inf }
 0x21f   : > { %1356 = vmax.xlane.f32.xlu0 %v1355_v23 }
 0x220   : > { %v6669_v25 = vpop.f32.mrb[24].mxu0  ;;  %1359 = vmax.xlane.f32.xlu1 %v1358_v17 }
 0x221   : > { %v6671_v27 = vpop.f32.mrb[25].mxu0  ;;  %v1373_v28 = vsel %vm1342_vm3, %v6669_v25, -inf }
 0x222   : > { %v6675_v29 = vpop.f32.mrb[26].mxu0  ;;  %v1367_v33 = vsel %vm1342_vm3, %v6671_v27, -inf }
 0x223   : > { %v6677_v30 = vpop.f32.mrb[27].mxu0  ;;  %1374 = vmax.xlane.f32.xlu0 %v1373_v28  ;;  %v1376_v43 = vsel %vm1342_vm3, %v6675_v29, -inf }
 0x224   : > { %v1370_v47 = vsel %vm1342_vm3, %v6677_v30, -inf }
 0x227   : > { %1368 = vmax.xlane.f32.xlu0 %v1367_v33 }
 0x228   : > { %v6681_v34 = vpop.f32.mrb[28].mxu0 }
 0x229   : > { %v6683_v39 = vpop.f32.mrb[29].mxu0  ;;  %v1385_v44 = vsel %vm1342_vm3, %v6681_v34, -inf }
 0x22a   : > { %v6685_v18 = vpop.f32.mrb[30].mxu0  ;;  %v1379_v48 = vsel %vm1342_vm3, %v6683_v39, -inf }
 0x22b   : > { %v6687_v41 = vpop.f32.mrb[31].mxu0  ;;  %v1388_v51 = vsel %vm1342_vm3, %v6685_v18, -inf }
 0x22c   : > { %v1382_v57 = vsel %vm1342_vm3, %v6687_v41, -inf }
 0x231   : > { %1810 = vrot.lane.b32.xlu1 %v6580_v56, %s6168_s0 }
 0x235   : > { %1703 = vrot.lane.b32.xlu1 %v6562_v35, %s6168_s0 }
 0x23d   : > { %1701 = vrot.lane.b32.xlu0 %v6566_v37, %s6168_s0 }
 0x259   : > { %1377 = vmax.xlane.f32.xlu1 %v1376_v43 }
 0x25c   : > { %1386 = vmax.xlane.f32.xlu0 %v1385_v44 }
 0x25d   : > { %1371 = vmax.xlane.f32.xlu1 %v1370_v47 }
 0x260   : > { %1380 = vmax.xlane.f32.xlu0 %v1379_v48 }
 0x261   : > { %1389 = vmax.xlane.f32.xlu1 %v1388_v51 }
 0x265   : > { %1383 = vmax.xlane.f32.xlu1 %v1382_v57 }
 0x276   : > { %1812 = vrot.lane.b32.xlu1 %v6578_v52, %s6168_s0 }
 0x29f   : > { %v1351_v61 = vpop.xlane.xlu1 %1350 }
 0x2a0   : > { %v1393_v62 = vsub.f32 %v5264_v7, %v1351_v61  ;;  %v1345_v0 = vpop.xlane.xlu0 %1344 }
 0x2a1   : > { %v1391_v45 = vsub.f32 %v1222_v50, %v1345_v0 }
 0x2a2   : > { %v1411_v46 = vmul.f32 1.442695, %v1393_v62 }
 0x2a3   : > { %v1407_v1 = vmul.f32 1.442695, %v1391_v45  ;;  %v1354_v2 = vpop.xlane.xlu1 %1353 }
 0x2a4   : > { %5790 = vpow2.f32 %v1411_v46  ;;  %v1394_v8 = vsub.f32 %v5265_v59, %v1354_v2  ;;  %v1348_v55 = vpop.xlane.xlu0 %1347 }
 0x2a5   : > { %v1392_v12 = vsub.f32 %v1225_v60, %v1348_v55  ;;  %5792 = vpow2.f32 %v1407_v1 }
 0x2a6   : > { %v1413_v13 = vmul.f32 1.442695, %v1394_v8 }
 0x2a7   : > { %v1409_v19 = vmul.f32 1.442695, %v1392_v12 }
 0x2a8   : > { %5794 = vpow2.f32 %v1413_v13  ;;  %v1363_v22 = vpop.xlane.xlu0 %1362 }
 0x2a9   : > { %v1397_v23 = vsub.f32 %v5268_v14, %v1363_v22  ;;  %v1366_v17 = vpop.xlane.xlu1 %1365  ;;  %5796 = vpow2.f32 %v1409_v19 }
 0x2aa   : > { %v1398_v28 = vsub.f32 %v5269_v20, %v1366_v17 }
 0x2ab   : > { %v1419_v33 = vmul.f32 1.442695, %v1397_v23 }
 0x2ac   : > { %v1421_v7 = vmul.f32 1.442695, %v1398_v28  ;;  %v1357_v43 = vpop.xlane.xlu0 %1356 }
 0x2ad   : > { %5798 = vpow2.f32 %v1419_v33  ;;  %v1395_v50 = vsub.f32 %v6659_v16, %v1357_v43  ;;  %v1360_v44 = vpop.xlane.xlu1 %1359 }
 0x2ae   : > { %v6710_v47 = vpop.eup %5790  ;;  %5800 = vpow2.f32 %v1421_v7  ;;  %v1396_v59 = vsub.f32 %v6662_v21, %v1360_v44 }
 0x2af   : > { %v1415_v60 = vmul.f32 1.442695, %v1395_v50  ;;  %v1445_v48 = vsel %vm1342_vm3, %v6710_v47, 0.0  ;;  %v6715_v14 = vpop.eup %5792 }
 0x2b0   : > { %v1417_v51 = vmul.f32 1.442695, %v1396_v59  ;;  %1446 = vadd.xlane.f32.xlu0 %v1445_v48  ;;  %v1375_v20 = vpop.xlane.xlu0 %1374  ;;  %v1439_v62 = vsel %vm1342_vm3, %v6715_v14, 0.0 }
 0x2b1   : > { %5802 = vpow2.f32 %v1415_v60  ;;  %v1401_v57 = vsub.f32 %v6669_v25, %v1375_v20  ;;  %v6726_v45 = vpop.permute.xlu1 %1810 }
 0x2b2   : > { %v6718_v61 = vpop.eup %5794  ;;  %5804 = vpow2.f32 %v1417_v51 }
 0x2b3   : > { %v1427_v16 = vmul.f32 1.442695, %v1401_v57  ;;  %v1448_v21 = vsel %vm1342_vm3, %v6718_v61, 0.0  ;;  %v6724_v0 = vpop.eup %5796 }
 0x2b4   : > { %1440 = vadd.xlane.f32.xlu0 %v1439_v62  ;;  %v1369_v46 = vpop.xlane.xlu0 %1368  ;;  %1449 = vadd.xlane.f32.xlu1 %v1448_v21  ;;  %v1442_v8 = vsel %vm1342_vm3, %v6724_v0, 0.0 }
 0x2b5   : > { %5806 = vpow2.f32 %v1427_v16  ;;  %v1399_v25 = vsub.f32 %v6671_v27, %v1369_v46  ;;  %v1704_v27 = vpop.permute.xlu1 %1703 }
 0x2b6   : > { %v1727_v50 = vsel %vm1163_vm2, %v1704_v27, 0 }
 0x2b7   : > { %v6729_v1 = vpop.eup %5798  ;;  %v1423_v2 = vmul.f32 1.442695, %v1399_v25 }
 0x2b8   : > { %v6733_v55 = vpop.eup %5800  ;;  %v1702_v12 = vpop.permute.xlu0 %1701  ;;  %1443 = vadd.xlane.f32.xlu1 %v1442_v8  ;;  %v1457_v13 = vsel %vm1342_vm3, %v6729_v1, 0.0 }
 0x2b9   : > { %5808 = vpow2.f32 %v1423_v2  ;;  %1458 = vadd.xlane.f32.xlu0 %v1457_v13  ;;  %5588 = vmatprep.subr.msk.bf16.mxu0 %vm1163_vm2, %v1702_v12  ;;  %v1724_v19 = vsel %vm1163_vm2, %v1702_v12, 0  ;;  %v1460_v23 = vsel %vm1342_vm3, %v6733_v55, 0.0 }
 0x2ba   : > { %5323 = vmatpush3.bf16.xpose.msra.mxu0 %v1724_v19 }
 0x2bb   : > { %v6739_v22 = vpop.eup %5802  ;;  %5589 = vmatprep.subr.msk.bf16.mxu0 %vm1163_vm2, %v1704_v27 }
 0x2bc   : > { %v6744_v17 = vpop.eup %5804  ;;  %1461 = vadd.xlane.f32.xlu1 %v1460_v23  ;;  %v1451_v28 = vsel %vm1342_vm3, %v6739_v22, 0.0 }
 0x2bd   : > { %1452 = vadd.xlane.f32.xlu0 %v1451_v28  ;;  %v1454_v7 = vsel %vm1342_vm3, %v6744_v17, 0.0 }
 0x2bf   : > { %v6748_v33 = vpop.eup %5806 }
 0x2c0   : > { %1455 = vadd.xlane.f32.xlu1 %v1454_v7  ;;  %v1469_v43 = vsel %vm1342_vm3, %v6748_v33, 0.0 }
 0x2c1   : > { %1470 = vadd.xlane.f32.xlu0 %v1469_v43 }
 0x2c2   : > { %5325 = vmatpush3.bf16.xpose.msra.mxu0 %v1727_v50 }
 0x2c3   : > { %v6755_v44 = vpop.eup %5808 }
 0x2c4   : > { %v1463_v59 = vsel %vm1342_vm3, %v6755_v44, 0.0 }
 0x2c5   : > { %1464 = vadd.xlane.f32.xlu0 %v1463_v59 }
 0x2db   : > { %1685 = vrot.lane.b32.xlu0 %v6540_v54, %s6168_s0 }
 0x2e6   : > { %v1378_v60 = vpop.xlane.xlu1 %1377 }
 0x2e7   : > { %v1402_v48 = vsub.f32 %v6675_v29, %v1378_v60 }
 0x2e9   : > { %v1429_v51 = vmul.f32 1.442695, %v1402_v48  ;;  %v1387_v20 = vpop.xlane.xlu0 %1386 }
 0x2ea   : > { %v1405_v57 = vsub.f32 %v6681_v34, %v1387_v20  ;;  %v1372_v16 = vpop.xlane.xlu1 %1371 }
 0x2eb   : > { %5810 = vpow2.f32 %v1429_v51  ;;  %v1400_v62 = vsub.f32 %v6677_v30, %v1372_v16 }
 0x2ec   : > { %v1435_v21 = vmul.f32 1.442695, %v1405_v57 }
 0x2ed   : > { %v1425_v46 = vmul.f32 1.442695, %v1400_v62  ;;  %v1381_v28 = vpop.xlane.xlu0 %1380 }
 0x2ee   : > { %5812 = vpow2.f32 %v1435_v21  ;;  %v1390_v25 = vpop.xlane.xlu1 %1389  ;;  %v1403_v7 = vsub.f32 %v6683_v39, %v1381_v28 }
 0x2ef   : > { %5814 = vpow2.f32 %v1425_v46  ;;  %v1406_v50 = vsub.f32 %v6685_v18, %v1390_v25 }
 0x2f0   : > { %v1431_v43 = vmul.f32 1.442695, %v1403_v7 }
 0x2f1   : > { %v1437_v59 = vmul.f32 1.442695, %v1406_v50 }
 0x2f2   : > { %v1384_v2 = vpop.xlane.xlu1 %1383 }
 0x2f3   : > { %v1404_v8 = vsub.f32 %v6687_v41, %v1384_v2 }
 0x2f5   : > { %v6765_v12 = vpop.eup %5810  ;;  %v1433_v13 = vmul.f32 1.442695, %v1404_v8 }
 0x2f6   : > { %v1472_v29 = vsel %vm1342_vm3, %v6765_v12, 0.0  ;;  %v6801_v51 = vpop.permute.xlu1 %1812 }
 0x2f7   : > { %5816 = vpow2.f32 %v1433_v13  ;;  %1473 = vadd.xlane.f32.xlu1 %v1472_v29 }
 0x2f8   : > { %v6769_v34 = vpop.eup %5812  ;;  %5818 = vpow2.f32 %v1431_v43 }
 0x2f9   : > { %v6771_v19 = vpop.eup %5814  ;;  %v1481_v30 = vsel %vm1342_vm3, %v6769_v34, 0.0  ;;  %5820 = vpow2.f32 %v1437_v59 }
 0x2fa   : > { %1482 = vadd.xlane.f32.xlu0 %v1481_v30  ;;  %v1466_v27 = vsel %vm1342_vm3, %v6771_v19, 0.0 }
 0x2fb   : > { %1467 = vadd.xlane.f32.xlu1 %v1466_v27 }
 0x301   : > { %v6777_v41 = vpop.eup %5816 }
 0x302   : > { %v1478_v23 = vsel %vm1342_vm3, %v6777_v41, 0.0  ;;  %v6793_v60 = vpop.eup %5818 }
 0x303   : > { %1479 = vadd.xlane.f32.xlu0 %v1478_v23  ;;  %v1475_v39 = vsel %vm1342_vm3, %v6793_v60, 0.0  ;;  %v6797_v48 = vpop.eup %5820 }
 0x304   : > { %v1484_v18 = vsel %vm1342_vm3, %v6797_v48, 0.0 }
 0x30c   : > { %1687 = vrot.lane.b32.xlu1 %v6536_v10, %s6168_s0 }
 0x319   : > { %1814 = vrot.lane.b32.xlu0 %v6600_v5, %s6168_s0 }
 0x31d   : > { %1798 = vrot.lane.b32.xlu0 %v6510_v32, %s6168_s0 }
 0x321   : > { %1689 = vrot.lane.b32.xlu0 %v6568_v38, %s6168_s0 }
 0x325   : > { %1802 = vrot.lane.b32.xlu0 %v6525_v53, %s6168_s0 }
 0x330   : > { %1476 = vadd.xlane.f32.xlu1 %v1475_v39 }
 0x334   : > { %1485 = vadd.xlane.f32.xlu1 %v1484_v18 }
 0x33d   : > { %v1447_v20 = vpop.xlane.xlu0 %1446 }
 0x341   : > { %v1441_v57 = vpop.xlane.xlu0 %1440  ;;  %v1450_v16 = vpop.xlane.xlu1 %1449 }
 0x342   : > { %5822 = vrcp.f32 %v1450_v16 }
 0x343   : > { %5824 = vrcp.f32 %v1441_v57 }
 0x344   : > { %5826 = vrcp.f32 %v1447_v20 }
 0x345   : > { %1816 = vrot.lane.b32.xlu1 %v6596_v3, %s6168_s0  ;;  %v1444_v62 = vpop.xlane.xlu1 %1443 }
 0x346   : > { %5828 = vrcp.f32 %v1444_v62  ;;  %v1459_v21 = vpop.xlane.xlu0 %1458 }
 0x349   : > { %1800 = vrot.lane.b32.xlu1 %v6508_v31, %s6168_s0  ;;  %v1462_v46 = vpop.xlane.xlu1 %1461 }
 0x34a   : > { %v1453_v25 = vpop.xlane.xlu0 %1452  ;;  %5830 = vrcp.f32 %v1462_v46 }
 0x34b   : > { %5832 = vrcp.f32 %v1453_v25 }
 0x34c   : > { %v5823_v2 = vpop.eup %5822  ;;  %5834 = vrcp.f32 %v1459_v21 }
 0x34d   : > { %1691 = vrot.lane.b32.xlu1 %v6564_v36, %s6168_s0  ;;  %v1456_v8 = vpop.xlane.xlu1 %1455  ;;  %v5825_v13 = vpop.eup %5824  ;;  %v1506_v23 = vmul.f32 %v5823_v2, %v6718_v61 }
 0x34e   : > { %5836 = vrcp.f32 %v1456_v8  ;;  %v1471_v29 = vpop.xlane.xlu0 %1470  ;;  %v5827_v30 = vpop.eup %5826  ;;  %v1503_v28 = vmul.f32 %v5825_v13, %v6715_v14 }
 0x34f   : > { %v1505_v43 = vmul.f32 %v5827_v30, %v6710_v47 }
 0x350   : > { %v5829_v27 = vpop.eup %5828 }
 0x351   : > { %1804 = vrot.lane.b32.xlu1 %v6519_v49, %s6168_s0  ;;  %v1504_v7 = vmul.f32 %v5829_v27, %v6724_v0  ;;  %v1520_v39 = vpack.c.bf16 %v1506_v23, %v1505_v43 }
 0x352   : > { %v1465_v50 = vpop.xlane.xlu0 %1464 }
 0x353   : > { %v1519_v59 = vpack.c.bf16 %v1504_v7, %v1503_v28 }
 0x354   : > { %v5831_v18 = vpop.eup %5830 }
 0x355   : > { %5294 = vmatprep.mubr.msk.bf16.mxu1 %vm1342_vm3, %v1519_v59  ;;  %v5833_v20 = vpop.eup %5832  ;;  %v1510_v47 = vmul.f32 %v5831_v18, %v6733_v55 }
 0x356   : > { %v1686_v57 = vpop.permute.xlu0 %1685  ;;  %5295 = vmatmul.mubr.msk.bf16.vlgmr.msra.gmra.mrb[32].mxu1 %vm1342_vm3, %v1520_v39  ;;  %v5835_v61 = vpop.eup %5834  ;;  %v1507_v0 = vmul.f32 %v5833_v20, %v6739_v22  ;;  %v1831_v39 = vsel %vm1163_vm2, %v6726_v45, 0 }
 0x357   : > { %5303 = vmatpush3.bf16.msra.mxu1 %v6644_v63  ;;  %5326 = vmatprep.mubr.msk.bf16.mxu0 %vm1163_vm2, %v1686_v57  ;;  %v1509_v62 = vmul.f32 %v5835_v61, %v6729_v1 }
 0x358   : > { %v5837_v14 = vpop.eup %5836  ;;  %5304 = vmatprep.subr.bf16.mxu1 %v6641_v58 }
 0x359   : > { %v1508_v16 = vmul.f32 %v5837_v14, %v6744_v17  ;;  %v1522_v46 = vpack.c.bf16 %v1510_v47, %v1509_v62 }
 0x35b   : > { %5305 = vmatpush3.bf16.msra.mxu1 %v6641_v58  ;;  %v1521_v21 = vpack.c.bf16 %v1508_v16, %v1507_v0 }
 0x35c   : > { %5306 = vmatprep.subr.bf16.mxu1 %v6650_v6 }
 0x35d   : > { %5298 = vmatprep.mubr.msk.bf16.mxu1 %vm1342_vm3, %v1521_v21 }
 0x35e   : > { %5299 = vmatmul.mubr.msk.bf16.gmra.mrb[36].mxu1 %vm1342_vm3, %v1522_v46 }
 0x35f   : > { %5307 = vmatpush3.bf16.msra.mxu1 %v6650_v6 }
 0x360   : > { %5308 = vmatprep.subr.bf16.mxu1 %v6647_v4 }
 0x363   : > { %5309 = vmatpush3.bf16.msra.mxu1 %v6647_v4 }
 0x364   : > { %5590 = vmatprep.subr.msk.bf16.mxu1 %vm1163_vm2, %v6726_v45 }
 0x384   : > { %v1474_v1 = vpop.xlane.xlu1 %1473 }
 0x385   : > { %5838 = vrcp.f32 %v1474_v1 }
 0x386   : > { %5840 = vrcp.f32 %v1465_v50 }
 0x387   : > { %5842 = vrcp.f32 %v1471_v29  ;;  %v1483_v22 = vpop.xlane.xlu0 %1482 }
 0x388   : > { %v1468_v55 = vpop.xlane.xlu1 %1467 }
 0x389   : > { %5844 = vrcp.f32 %v1468_v55 }
 0x38c   : > { %v1688_v17 = vpop.permute.xlu1 %1687 }
 0x38d   : > { %5327 = vmatmul.mubr.msk.bf16.vlgmr.msra.gmra.mrb[32].mxu0 %vm1163_vm2, %v1688_v17 }
 0x38f   : > { %v5839_v25 = vpop.eup %5838 }
 0x390   : > { %v1480_v2 = vpop.xlane.xlu0 %1479  ;;  %v5841_v8 = vpop.eup %5840  ;;  %v1514_v27 = vmul.f32 %v5839_v25, %v6765_v12 }
 0x391   : > { %v5843_v13 = vpop.eup %5842  ;;  %v1511_v28 = vmul.f32 %v5841_v8, %v6755_v44  ;;  %5846 = vrcp.f32 %v1480_v2 }
 0x392   : > { %v1513_v29 = vmul.f32 %v5843_v13, %v6748_v33  ;;  %v1834_v33 = vsel %vm1163_vm2, %v6801_v51, 0 }
 0x393   : > { %v5845_v30 = vpop.eup %5844 }
 0x394   : > { %v1815_v23 = vpop.permute.xlu0 %1814  ;;  %v1512_v7 = vmul.f32 %v5845_v30, %v6771_v19  ;;  %v1524_v50 = vpack.c.bf16 %v1514_v27, %v1513_v29 }
 0x395   : > { %v1837_v44 = vsel %vm1163_vm2, %v1815_v23, 0 }
 0x396   : > { %v1523_v43 = vpack.c.bf16 %v1512_v7, %v1511_v28 }
 0x398   : > { %v1799_v59 = vpop.permute.xlu0 %1798  ;;  %5310 = vmatprep.mubr.msk.bf16.mxu1 %vm1342_vm3, %v1523_v43 }
 0x399   : > { %5311 = vmatmul.mubr.msk.bf16.vlgmr.msra.gmra.mrb[40].mxu1 %vm1342_vm3, %v1524_v50 }
 0x39a   : > { %5335 = vmatpush3.bf16.xpose.msra.mxu1 %v1831_v39 }
 0x39b   : > { %5591 = vmatprep.subr.msk.bf16.mxu1 %vm1163_vm2, %v6801_v51  ;;  %v5847_v20 = vpop.eup %5846 }
 0x39c   : > { %v1690_v12 = vpop.permute.xlu0 %1689  ;;  %v1516_v47 = vmul.f32 %v5847_v20, %v6777_v41 }
 0x39d   : > { %5330 = vmatprep.mubr.msk.bf16.mxu0 %vm1163_vm2, %v1690_v12 }
 0x3a2   : > { %5337 = vmatpush3.bf16.xpose.msra.mxu1 %v1834_v33 }
 0x3a3   : > { %5592 = vmatprep.subr.msk.bf16.mxu1 %vm1163_vm2, %v1815_v23 }
 0x3aa   : > { %5339 = vmatpush3.bf16.xpose.msra.mxu1 %v1837_v44 }
 0x3bd   : > { %v1477_v19 = vpop.xlane.xlu1 %1476 }
 0x3be   : > { %5848 = vrcp.f32 %v1477_v19 }
 0x3bf   : > { %5850 = vrcp.f32 %v1483_v22 }
 0x3c1   : > { %v1486_v45 = vpop.xlane.xlu1 %1485 }
 0x3c2   : > { %5852 = vrcp.f32 %v1486_v45 }
 0x3c5   : > { %v1817_v18 = vpop.permute.xlu1 %1816 }
 0x3c6   : > { %5593 = vmatprep.subr.msk.bf16.mxu1 %vm1163_vm2, %v1817_v18  ;;  %v1840_v57 = vsel %vm1163_vm2, %v1817_v18, 0 }
 0x3c7   : > { %5341 = vmatpush3.bf16.xpose.msra.mxu1 %v1840_v57 }
 0x3c8   : > { %v5849_v51 = vpop.eup %5848 }
 0x3c9   : > { %v1801_v61 = vpop.permute.xlu1 %1800  ;;  %v1515_v14 = vmul.f32 %v5849_v51, %v6793_v60  ;;  %v5851_v0 = vpop.eup %5850 }
 0x3ca   : > { %v1517_v46 = vmul.f32 %v5851_v0, %v6769_v34  ;;  %v1803_v60 = vpop.permute.xlu0 %1802 }
 0x3cb   : > { %v1525_v16 = vpack.c.bf16 %v1516_v47, %v1515_v14 }
 0x3cc   : > { %v5853_v62 = vpop.eup %5852 }
 0x3cd   : > { %5314 = vmatprep.mubr.msk.bf16.mxu1 %vm1342_vm3, %v1525_v16  ;;  %v1692_v21 = vpop.permute.xlu1 %1691  ;;  %v1518_v1 = vmul.f32 %v5853_v62, %v6797_v48 }
 0x3ce   : > { %5331 = vmatmul.mubr.msk.bf16.gmra.mrb[36].mxu0 %vm1163_vm2, %v1692_v21 }
 0x3cf   : > { %v1526_v55 = vpack.c.bf16 %v1518_v1, %v1517_v46 }
 0x3d1   : > { %5315 = vmatmul.mubr.msk.bf16.gmra.mrb[44].mxu1 %vm1342_vm3, %v1526_v55  ;;  %v1805_v41 = vpop.permute.xlu1 %1804 }
 0x3d2   : > { %5342 = vmatprep.mubr.msk.bf16.mxu1 %vm1163_vm2, %v1799_v59 }
 0x3d9   : > { %5343 = vmatmul.mubr.msk.bf16.vlgmr.msra.gmra.mrb[48].mxu1 %vm1163_vm2, %v1801_v61 }
 0x3da   : > { %5346 = vmatprep.mubr.msk.bf16.mxu1 %vm1163_vm2, %v1803_v60 }
 0x3e1   : > { %5347 = vmatmul.mubr.msk.bf16.gmra.mrb[52].mxu1 %vm1163_vm2, %v1805_v41 }
 0x429   : > { %v6862_v22 = vpop.f32.mrb[32].mxu1 }
 0x42a   : > { %8408 = vst [vmem:[#allocation6_spill] sm:$0xff] %v6862_v22  ;;  %v6864_v34 = vpop.f32.mrb[33].mxu1 }
 0x42b   : > { %8409 = vst [vmem:[#allocation7_spill] sm:$0xff] %v6864_v34  ;;  %v6866_v48 = vpop.f32.mrb[34].mxu1 }
 0x42c   : > { %8410 = vst [vmem:[#allocation8_spill] sm:$0xff] %v6866_v48  ;;  %v6868_v17 = vpop.f32.mrb[35].mxu1 }
 0x42d   : > { %8411 = vst [vmem:[#allocation9_spill] sm:$0xff] %v6868_v17 }
 0x431   : > { %v6870_v25 = vpop.f32.mrb[36].mxu1 }
 0x432   : > { %8412 = vst [vmem:[#allocation10_spill] sm:$0xff] %v6870_v25  ;;  %v6872_v2 = vpop.f32.mrb[37].mxu1 }
 0x433   : > { %8413 = vst [vmem:[#allocation11_spill] sm:$0xff] %v6872_v2  ;;  %v6874_v8 = vpop.f32.mrb[38].mxu1 }
 0x434   : > { %8414 = vst [vmem:[#allocation12_spill] sm:$0xff] %v6874_v8  ;;  %v6876_v13 = vpop.f32.mrb[39].mxu1 }
 0x435   : > { %8415 = vst [vmem:[#allocation13_spill] sm:$0xff] %v6876_v13 }
 0x460   : > { %v5328_v30 = vpop.f32.mrb[32].mxu0 }
 0x461   : > { %v1763_v27 = vpop.f32.mrb[33].mxu0  ;;  %v1913_v43 = vsel %vm1342_vm3, %v5328_v30, -inf }
 0x462   : > { %v5329_v23 = vpop.f32.mrb[34].mxu0  ;;  %v1907_v28 = vsel %vm1342_vm3, %v1763_v27, -inf }
 0x463   : > { %1908 = vmax.xlane.f32.xlu0 %v1907_v28  ;;  %v1766_v7 = vpop.f32.mrb[35].mxu0  ;;  %v1916_v50 = vsel %vm1342_vm3, %v5329_v23, -inf }
 0x464   : > { %v1910_v29 = vsel %vm1342_vm3, %v1766_v7, -inf }
 0x465   : > { %1911 = vmax.xlane.f32.xlu1 %v1910_v29 }
 0x467   : > { %1914 = vmax.xlane.f32.xlu0 %v1913_v43 }
 0x46b   : > { %1917 = vmax.xlane.f32.xlu0 %v1916_v50 }
 0x46c   : > { %v6882_v59 = vpop.f32.mrb[40].mxu1 }
 0x46d   : > { %8416 = vst [vmem:[#allocation14_spill] sm:$0xff] %v6882_v59  ;;  %v6884_v39 = vpop.f32.mrb[41].mxu1 }
 0x46e   : > { %8417 = vst [vmem:[#allocation15_spill] sm:$0xff] %v6884_v39  ;;  %v6886_v12 = vpop.f32.mrb[42].mxu1 }
 0x46f   : > { %8418 = vst [vmem:[#allocation16_spill] sm:$0xff] %v6886_v12  ;;  %v6888_v33 = vpop.f32.mrb[43].mxu1 }
 0x470   : > { %8419 = vst [vmem:[#allocation17_spill] sm:$0xff] %v6888_v33 }
 0x4a1   : > { %v6890_v44 = vpop.f32.mrb[36].mxu0 }
 0x4a2   : > { %v6892_v19 = vpop.f32.mrb[37].mxu0  ;;  %v1925_v0 = vsel %vm1342_vm3, %v6890_v44, -inf }
 0x4a3   : > { %v6894_v45 = vpop.f32.mrb[38].mxu0  ;;  %v1919_v18 = vsel %vm1342_vm3, %v6892_v19, -inf }
 0x4a4   : > { %v6898_v20 = vpop.f32.mrb[44].mxu1  ;;  %1920 = vmax.xlane.f32.xlu0 %v1919_v18  ;;  %v1782_v57 = vpop.f32.mrb[39].mxu0  ;;  %v1928_v16 = vsel %vm1342_vm3, %v6894_v45, -inf }
 0x4a5   : > { %8420 = vst [vmem:[#allocation18_spill] sm:$0xff] %v6898_v20  ;;  %v6900_v51 = vpop.f32.mrb[45].mxu1  ;;  %v1922_v61 = vsel %vm1342_vm3, %v1782_v57, -inf }
 0x4a6   : > { %8421 = vst [vmem:[#allocation19_spill] sm:$0xff] %v6900_v51  ;;  %v6903_v14 = vpop.f32.mrb[46].mxu1  ;;  %1923 = vmax.xlane.f32.xlu1 %v1922_v61 }
 0x4a7   : > { %8422 = vst [vmem:[#allocation20_spill] sm:$0xff] %v6903_v14  ;;  %v6905_v47 = vpop.f32.mrb[47].mxu1 }
 0x4a8   : > { %8423 = vst [vmem:[#allocation21_spill] sm:$0xff] %v6905_v47  ;;  %1926 = vmax.xlane.f32.xlu0 %v1925_v0 }
 0x4aa   : > { %1929 = vmax.xlane.f32.xlu1 %v1928_v16 }
 0x4ac   : > { %v6911_v62 = vpop.f32.mrb[48].mxu1 }
 0x4ad   : > { %v6913_v21 = vpop.f32.mrb[49].mxu1 }
 0x4ae   : > { %v6915_v46 = vpop.f32.mrb[50].mxu1 }
 0x4af   : > { %v6917_v1 = vpop.f32.mrb[51].mxu1 }
 0x4b4   : > { %v6919_v55 = vpop.f32.mrb[52].mxu1 }
 0x4b5   : > { %v6921_v60 = vpop.f32.mrb[53].mxu1 }
 0x4b6   : > { %v6923_v41 = vpop.f32.mrb[54].mxu1 }
 0x4b7   : > { %v6925_v28 = vpop.f32.mrb[55].mxu1 }
 0x4bb   : > { %2097 = vrot.lane.b32.xlu1 %v6629_v24, %s6168_s0 }
 0x4be   : > { %2095 = vrot.lane.b32.xlu0 %v6631_v26, %s6168_s0 }
 0x4bf   : > { %2101 = vrot.lane.b32.xlu1 %v6635_v40, %s6168_s0 }
 0x4c2   : > { %2099 = vrot.lane.b32.xlu0 %v6638_v42, %s6168_s0 }
 0x4c3   : > { %2190 = vrot.lane.b32.xlu1 %v6641_v58, %s6168_s0 }
 0x4c6   : > { %2188 = vrot.lane.b32.xlu0 %v6644_v63, %s6168_s0 }
 0x4c7   : > { %2285 = vrot.lane.b32.xlu1 %v6538_v11, %s6169_s1 }
 0x4ca   : > { %2194 = vrot.lane.b32.xlu0 %v6647_v4, %s6168_s0 }
 0x4cb   : > { %2192 = vrot.lane.b32.xlu1 %v6650_v6, %s6168_s0 }
 0x4cf   : > { %2287 = vrot.lane.b32.xlu1 %v6534_v9, %s6169_s1 }
 0x4f0   : > { %v1909_v29 = vpop.xlane.xlu0 %1908 }
 0x4f1   : > { %v1955_v43 = vsub.f32 %v1763_v27, %v1909_v29 }
 0x4f2   : > { %v1912_v50 = vpop.xlane.xlu1 %1911 }
 0x4f3   : > { %v1971_v0 = vmul.f32 1.442695, %v1955_v43  ;;  %v1956_v16 = vsub.f32 %v1766_v7, %v1912_v50 }
 0x4f4   : > { %v1915_v18 = vpop.xlane.xlu0 %1914 }
 0x4f5   : > { %v1957_v61 = vsub.f32 %v5328_v30, %v1915_v18  ;;  %v1973_v20 = vmul.f32 1.442695, %v1956_v16 }
 0x4f7   : > { %v1975_v15 = vmul.f32 1.442695, %v1957_v61 }
 0x4f8   : > { %v1918_v51 = vpop.xlane.xlu0 %1917 }
 0x4f9   : > { %5854 = vpow2.f32 %v1975_v15  ;;  %v1958_v47 = vsub.f32 %v5329_v23, %v1918_v51 }
 0x4fa   : > { %5856 = vpow2.f32 %v1971_v0 }
 0x4fb   : > { %v1977_v14 = vmul.f32 1.442695, %v1958_v47 }
 0x4fd   : > { %5858 = vpow2.f32 %v1977_v14 }
 0x4fe   : > { %5860 = vpow2.f32 %v1973_v20 }
 0x503   : > { %v6947_v39 = vpop.eup %5854 }
 0x504   : > { %v2009_v33 = vsel %vm1342_vm3, %v6947_v39, 0.0  ;;  %v6951_v27 = vpop.eup %5856 }
 0x505   : > { %2010 = vadd.xlane.f32.xlu0 %v2009_v33  ;;  %v2003_v7 = vsel %vm1342_vm3, %v6951_v27, 0.0 }
 0x507   : > { %v6953_v30 = vpop.eup %5858 }
 0x508   : > { %v2012_v15 = vsel %vm1342_vm3, %v6953_v30, 0.0  ;;  %v6959_v23 = vpop.eup %5860 }
 0x509   : > { %2004 = vadd.xlane.f32.xlu0 %v2003_v7  ;;  %2013 = vadd.xlane.f32.xlu1 %v2012_v15  ;;  %v2006_v20 = vsel %vm1342_vm3, %v6959_v23, 0.0 }
 0x50d   : > { %2007 = vadd.xlane.f32.xlu1 %v2006_v20 }
 0x531   : > { %v1921_v51 = vpop.xlane.xlu0 %1920 }
 0x532   : > { %v1959_v33 = vsub.f32 %v6892_v19, %v1921_v51 }
 0x533   : > { %v1924_v14 = vpop.xlane.xlu1 %1923 }
 0x534   : > { %v1960_v47 = vsub.f32 %v1782_v57, %v1924_v14  ;;  %v1979_v61 = vmul.f32 1.442695, %v1959_v33 }
 0x535   : > { %v1927_v29 = vpop.xlane.xlu0 %1926 }
 0x536   : > { %v1981_v43 = vmul.f32 1.442695, %v1960_v47  ;;  %v1961_v50 = vsub.f32 %v6890_v44, %v1927_v29 }
 0x537   : > { %v1930_v18 = vpop.xlane.xlu1 %1929 }
 0x538   : > { %5862 = vpow2.f32 %v1981_v43  ;;  %v1983_v0 = vmul.f32 1.442695, %v1961_v50  ;;  %v1962_v16 = vsub.f32 %v6894_v45, %v1930_v18  ;;  %v1940_v50 = vsel %vm1342_vm3, %v6915_v46, -inf }
 0x539   : > { %v2096_v7 = vpop.permute.xlu0 %2095 }
 0x53a   : > { %5864 = vpow2.f32 %v1983_v0  ;;  %5350 = vmatprep.subr.bf16.mxu0 %v2096_v7  ;;  %v1985_v20 = vmul.f32 1.442695, %v1962_v16  ;;  %v1934_v16 = vsel %vm1342_vm3, %v6917_v1, -inf }
 0x53b   : > { %5351 = vmatpush3.bf16.msra.mxu0 %v2096_v7  ;;  %v2098_v15 = vpop.permute.xlu1 %2097  ;;  %5866 = vpow2.f32 %v1979_v61 }
 0x53c   : > { %5352 = vmatprep.subr.bf16.mxu0 %v2098_v15  ;;  %5868 = vpow2.f32 %v1985_v20  ;;  %v1937_v20 = vsel %vm1342_vm3, %v6911_v62, -inf }
 0x53d   : > { %v2100_v19 = vpop.permute.xlu0 %2099 }
 0x53f   : > { %5353 = vmatpush3.bf16.msra.mxu0 %v2098_v15  ;;  %v2102_v57 = vpop.permute.xlu1 %2101 }
 0x540   : > { %5354 = vmatprep.subr.bf16.mxu0 %v2100_v19 }
 0x541   : > { %v2189_v44 = vpop.permute.xlu0 %2188 }
 0x542   : > { %v6966_v51 = vpop.eup %5862  ;;  %5366 = vmatprep.subr.bf16.mxu1 %v2189_v44 }
 0x543   : > { %5355 = vmatpush3.bf16.msra.mxu0 %v2100_v19  ;;  %5367 = vmatpush3.bf16.msra.mxu1 %v2189_v44  ;;  %v2191_v45 = vpop.permute.xlu1 %2190  ;;  %v2018_v14 = vsel %vm1342_vm3, %v6966_v51, 0.0  ;;  %v1931_v19 = vsel %vm1342_vm3, %v6913_v21, -inf  ;;  %v1943_v44 = vsel %vm1342_vm3, %v6921_v60, -inf }
 0x544   : > { %v6970_v33 = vpop.eup %5864  ;;  %2019 = vadd.xlane.f32.xlu1 %v2018_v14  ;;  %5356 = vmatprep.subr.bf16.mxu0 %v2102_v57  ;;  %v1946_v14 = vsel %vm1342_vm3, %v6925_v28, -inf }
 0x545   : > { %5368 = vmatprep.subr.bf16.mxu1 %v2191_v45  ;;  %v2021_v47 = vsel %vm1342_vm3, %v6970_v33, 0.0  ;;  %v6974_v29 = vpop.eup %5866  ;;  %v2195_v7 = vpop.permute.xlu0 %2194 }
 0x546   : > { %2022 = vadd.xlane.f32.xlu0 %v2021_v47  ;;  %v2015_v18 = vsel %vm1342_vm3, %v6974_v29, 0.0  ;;  %v6981_v61 = vpop.eup %5868 }
 0x547   : > { %5357 = vmatpush3.bf16.msra.mxu0 %v2102_v57  ;;  %5369 = vmatpush3.bf16.msra.mxu1 %v2191_v45  ;;  %v2286_v43 = vpop.permute.xlu1 %2285  ;;  %v2024_v15 = vsel %vm1342_vm3, %v6981_v61, 0.0  ;;  %v1949_v57 = vsel %vm1342_vm3, %v6919_v55, -inf  ;;  %v1952_v45 = vsel %vm1342_vm3, %v6923_v41, -inf }
 0x548   : > { %1941 = vmax.xlane.f32.xlu1 %v1940_v50  ;;  %5594 = vmatprep.subr.msk.bf16.mxu0 %vm1163_vm2, %v2286_v43 }
 0x54a   : > { %2016 = vadd.xlane.f32.xlu0 %v2015_v18 }
 0x54b   : > { %v2193_v0 = vpop.permute.xlu1 %2192 }
 0x54c   : > { %1935 = vmax.xlane.f32.xlu1 %v1934_v16  ;;  %5370 = vmatprep.subr.bf16.mxu1 %v2193_v0 }
 0x54d   : > { %5371 = vmatpush3.bf16.msra.mxu1 %v2193_v0 }
 0x54e   : > { %2025 = vadd.xlane.f32.xlu0 %v2024_v15  ;;  %5372 = vmatprep.subr.bf16.mxu1 %v2195_v7 }
 0x54f   : > { %v2288_v47 = vpop.permute.xlu1 %2287 }
 0x551   : > { %5373 = vmatpush3.bf16.msra.mxu1 %v2195_v7 }
 0x552   : > { %1938 = vmax.xlane.f32.xlu0 %v1937_v20 }
 0x556   : > { %1932 = vmax.xlane.f32.xlu0 %v1931_v19 }
 0x55a   : > { %1950 = vmax.xlane.f32.xlu0 %v1949_v57 }
 0x55d   : > { %2390 = vrot.lane.b32.xlu1 %v6580_v56, %s6169_s1 }
 0x55e   : > { %1944 = vmax.xlane.f32.xlu0 %v1943_v44 }
 0x561   : > { %2291 = vrot.lane.b32.xlu1 %v6562_v35, %s6169_s1 }
 0x574   : > { %2289 = vrot.lane.b32.xlu0 %v6566_v37, %s6169_s1 }
 0x585   : > { %1953 = vmax.xlane.f32.xlu1 %v1952_v45 }
 0x589   : > { %1947 = vmax.xlane.f32.xlu1 %v1946_v14 }
 0x592   : > { %v2011_v50 = vpop.xlane.xlu0 %2010 }
 0x596   : > { %v2005_v18 = vpop.xlane.xlu0 %2004  ;;  %v2014_v0 = vpop.xlane.xlu1 %2013 }
 0x597   : > { %5870 = vrcp.f32 %v2014_v0 }
 0x598   : > { %5872 = vrcp.f32 %v2005_v18 }
 0x599   : > { %5874 = vrcp.f32 %v2011_v50  ;;  %v2306_v50 = vsel %vm1163_vm2, %v2286_v43, 0 }
 0x59a   : > { %2392 = vrot.lane.b32.xlu1 %v6578_v52, %s6169_s1  ;;  %v2008_v16 = vpop.xlane.xlu1 %2007 }
 0x59b   : > { %5876 = vrcp.f32 %v2008_v16  ;;  %v2309_v16 = vsel %vm1163_vm2, %v2288_v47, 0 }
 0x5a1   : > { %v5871_v7 = vpop.eup %5870 }
 0x5a2   : > { %v5873_v15 = vpop.eup %5872  ;;  %v2070_v57 = vmul.f32 %v5871_v7, %v6953_v30 }
 0x5a3   : > { %v5875_v20 = vpop.eup %5874  ;;  %v2067_v44 = vmul.f32 %v5873_v15, %v6951_v27 }
 0x5a4   : > { %v2069_v14 = vmul.f32 %v5875_v20, %v6947_v39 }
 0x5a5   : > { %v5877_v19 = vpop.eup %5876 }
 0x5a6   : > { %v2068_v45 = vmul.f32 %v5877_v19, %v6959_v23  ;;  %v2084_v18 = vpack.c.bf16 %v2070_v57, %v2069_v14 }
 0x5a8   : > { %v2083_v0 = vpack.c.bf16 %v2068_v45, %v2067_v44 }
 0x5aa   : > { %5358 = vmatprep.mubr.msk.bf16.mxu0 %vm1342_vm3, %v2083_v0 }
 0x5ab   : > { %5359 = vmatmul.mubr.msk.bf16.vlgmr.msra.gmra.mrb[40].mxu0 %vm1342_vm3, %v2084_v18 }
 0x5ac   : > { %5383 = vmatpush3.bf16.xpose.msra.mxu0 %v2306_v50 }
 0x5ad   : > { %5595 = vmatprep.subr.msk.bf16.mxu0 %vm1163_vm2, %v2288_v47 }
 0x5b4   : > { %5385 = vmatpush3.bf16.xpose.msra.mxu0 %v2309_v16 }
 0x5d1   : > { %v2020_v30 = vpop.xlane.xlu1 %2019 }
 0x5d2   : > { %5878 = vrcp.f32 %v2020_v30 }
 0x5d3   : > { %v2023_v27 = vpop.xlane.xlu0 %2022 }
 0x5d5   : > { %v1942_v7 = vpop.xlane.xlu1 %1941 }
 0x5d6   : > { %v1966_v14 = vsub.f32 %v6915_v46, %v1942_v7 }
 0x5d7   : > { %v2017_v23 = vpop.xlane.xlu0 %2016 }
 0x5d8   : > { %5880 = vrcp.f32 %v2017_v23 }
 0x5d9   : > { %v1936_v39 = vpop.xlane.xlu1 %1935  ;;  %5882 = vrcp.f32 %v2023_v27 }
 0x5da   : > { %v1964_v15 = vsub.f32 %v6917_v1, %v1936_v39  ;;  %v1993_v39 = vmul.f32 1.442695, %v1966_v14 }
 0x5db   : > { %v2026_v20 = vpop.xlane.xlu0 %2025 }
 0x5dc   : > { %v1989_v19 = vmul.f32 1.442695, %v1964_v15  ;;  %5884 = vrcp.f32 %v2026_v20  ;;  %v5879_v57 = vpop.eup %5878 }
 0x5dd   : > { %v7017_v43 = vpop.permute.xlu1 %2390  ;;  %v2072_v50 = vmul.f32 %v5879_v57, %v6966_v51 }
 0x5de   : > { %5886 = vpow2.f32 %v1989_v19  ;;  %5598 = vmatprep.subr.msk.bf16.mxu1 %vm1163_vm2, %v7017_v43 }
 0x5df   : > { %v1939_v47 = vpop.xlane.xlu0 %1938 }
 0x5e0   : > { %v1965_v44 = vsub.f32 %v6911_v62, %v1939_v47 }
 0x5e1   : > { %v2292_v57 = vpop.permute.xlu1 %2291 }
 0x5e2   : > { %v5881_v45 = vpop.eup %5880  ;;  %v1991_v0 = vmul.f32 1.442695, %v1965_v44 }
 0x5e3   : > { %v1933_v18 = vpop.xlane.xlu0 %1932  ;;  %v2071_v1 = vmul.f32 %v5881_v45, %v6974_v29  ;;  %v5883_v16 = vpop.eup %5882 }
 0x5e4   : > { %5888 = vpow2.f32 %v1991_v0  ;;  %v1963_v30 = vsub.f32 %v6913_v21, %v1933_v18  ;;  %v2073_v62 = vmul.f32 %v5883_v16, %v6970_v33  ;;  %v2315_v18 = vsel %vm1163_vm2, %v2292_v57, 0 }
 0x5e5   : > { %v2085_v27 = vpack.c.bf16 %v2072_v50, %v2071_v1 }
 0x5e6   : > { %v5885_v23 = vpop.eup %5884  ;;  %v1987_v15 = vmul.f32 1.442695, %v1963_v30 }
 0x5e7   : > { %v1951_v20 = vpop.xlane.xlu0 %1950  ;;  %5362 = vmatprep.mubr.msk.bf16.mxu0 %vm1342_vm3, %v2085_v27  ;;  %v2074_v46 = vmul.f32 %v5885_v23, %v6981_v61 }
 0x5e8   : > { %v7029_v7 = vpop.eup %5886  ;;  %5890 = vpow2.f32 %v1987_v15  ;;  %v1969_v1 = vsub.f32 %v6919_v55, %v1951_v20 }
 0x5e9   : > { %v2030_v51 = vsel %vm1342_vm3, %v7029_v7, 0.0  ;;  %v2086_v29 = vpack.c.bf16 %v2074_v46, %v2073_v62  ;;  %5892 = vpow2.f32 %v1993_v39 }
 0x5ea   : > { %2031 = vadd.xlane.f32.xlu0 %v2030_v51  ;;  %v1999_v50 = vmul.f32 1.442695, %v1969_v1 }
 0x5eb   : > { %v1945_v21 = vpop.xlane.xlu0 %1944  ;;  %5363 = vmatmul.mubr.msk.bf16.gmra.mrb[44].mxu0 %vm1342_vm3, %v2086_v29 }
 0x5ec   : > { %v1967_v16 = vsub.f32 %v6921_v60, %v1945_v21  ;;  %5894 = vpow2.f32 %v1999_v50 }
 0x5ee   : > { %v7034_v19 = vpop.eup %5888  ;;  %v1995_v30 = vmul.f32 1.442695, %v1967_v16 }
 0x5ef   : > { %v2290_v47 = vpop.permute.xlu0 %2289  ;;  %v2033_v33 = vsel %vm1342_vm3, %v7034_v19, 0.0 }
 0x5f0   : > { %2034 = vadd.xlane.f32.xlu1 %v2033_v33  ;;  %5596 = vmatprep.subr.msk.bf16.mxu0 %vm1163_vm2, %v2290_v47  ;;  %v2312_v61 = vsel %vm1163_vm2, %v2290_v47, 0  ;;  %5896 = vpow2.f32 %v1995_v30 }
 0x5f1   : > { %5387 = vmatpush3.bf16.xpose.msra.mxu0 %v2312_v61 }
 0x5f2   : > { %v7040_v44 = vpop.eup %5890  ;;  %5597 = vmatprep.subr.msk.bf16.mxu0 %vm1163_vm2, %v2292_v57 }
 0x5f3   : > { %v2027_v45 = vsel %vm1342_vm3, %v7040_v44, 0.0  ;;  %v7045_v14 = vpop.eup %5892 }
 0x5f4   : > { %2028 = vadd.xlane.f32.xlu1 %v2027_v45  ;;  %v2036_v0 = vsel %vm1342_vm3, %v7045_v14, 0.0 }
 0x5f6   : > { %v7058_v46 = vpop.eup %5894 }
 0x5f7   : > { %v2045_v20 = vsel %vm1342_vm3, %v7058_v46, 0.0 }
 0x5f8   : > { %2037 = vadd.xlane.f32.xlu1 %v2036_v0 }
 0x5f9   : > { %5389 = vmatpush3.bf16.xpose.msra.mxu0 %v2315_v18 }
 0x5fa   : > { %v7062_v51 = vpop.eup %5896 }
 0x5fb   : > { %v2039_v60 = vsel %vm1342_vm3, %v7062_v51, 0.0 }
 0x600   : > { %2277 = vrot.lane.b32.xlu0 %v6540_v54, %s6169_s1 }
 0x609   : > { %2279 = vrot.lane.b32.xlu1 %v6536_v10, %s6169_s1 }
 0x612   : > { %v1954_v27 = vpop.xlane.xlu1 %1953 }
 0x613   : > { %v1970_v23 = vsub.f32 %v6923_v41, %v1954_v27 }
 0x615   : > { %v2001_v39 = vmul.f32 1.442695, %v1970_v23 }
 0x616   : > { %v1948_v15 = vpop.xlane.xlu1 %1947 }
 0x617   : > { %v1968_v62 = vsub.f32 %v6925_v28, %v1948_v15  ;;  %5898 = vpow2.f32 %v2001_v39 }
 0x619   : > { %v1997_v55 = vmul.f32 1.442695, %v1968_v62 }
 0x61a   : > { %v2393_v33 = vpop.permute.xlu1 %2392 }
 0x61b   : > { %5900 = vpow2.f32 %v1997_v55 }
 0x61f   : > { %2046 = vadd.xlane.f32.xlu0 %v2045_v20 }
 0x621   : > { %v7066_v41 = vpop.eup %5898 }
 0x622   : > { %v2048_v28 = vsel %vm1342_vm3, %v7066_v41, 0.0 }
 0x623   : > { %2040 = vadd.xlane.f32.xlu0 %v2039_v60 }
 0x625   : > { %v7070_v29 = vpop.eup %5900 }
 0x626   : > { %v2042_v21 = vsel %vm1342_vm3, %v7070_v29, 0.0 }
 0x627   : > { %2049 = vadd.xlane.f32.xlu0 %v2048_v28 }
 0x62d   : > { %2043 = vadd.xlane.f32.xlu1 %v2042_v21 }
 0x63d   : > { %2394 = vrot.lane.b32.xlu0 %v6600_v5, %s6169_s1 }
 0x63e   : > { %2396 = vrot.lane.b32.xlu1 %v6596_v3, %s6169_s1 }
 0x641   : > { %2382 = vrot.lane.b32.xlu0 %v6510_v32, %s6169_s1 }
 0x642   : > { %2384 = vrot.lane.b32.xlu1 %v6508_v31, %s6169_s1 }
 0x645   : > { %2281 = vrot.lane.b32.xlu0 %v6568_v38, %s6169_s1 }
 0x646   : > { %2283 = vrot.lane.b32.xlu1 %v6564_v36, %s6169_s1 }
 0x649   : > { %2386 = vrot.lane.b32.xlu0 %v6525_v53, %s6169_s1 }
 0x64a   : > { %2388 = vrot.lane.b32.xlu1 %v6519_v49, %s6169_s1 }
 0x677   : > { %v2032_v47 = vpop.xlane.xlu0 %2031 }
 0x678   : > { %5902 = vrcp.f32 %v2032_v47 }
 0x67b   : > { %v2278_v61 = vpop.permute.xlu0 %2277 }
 0x67c   : > { %5390 = vmatprep.mubr.msk.bf16.mxu0 %vm1163_vm2, %v2278_v61 }
 0x67d   : > { %v2035_v57 = vpop.xlane.xlu1 %2034 }
 0x67e   : > { %v7091_v45 = vpop.f32.mrb[40].mxu0 }
 0x67f   : > { %v7093_v0 = vpop.f32.mrb[41].mxu0 }
 0x680   : > { %v7095_v18 = vpop.f32.mrb[42].mxu0 }
 0x681   : > { %v7099_v50 = vpop.f32.mrb[43].mxu0  ;;  %v2029_v16 = vpop.xlane.xlu1 %2028 }
 0x682   : > { %5904 = vrcp.f32 %v2029_v16  ;;  %v5903_v39 = vpop.eup %5902 }
 0x683   : > { %5906 = vrcp.f32 %v2035_v57  ;;  %v2076_v55 = vmul.f32 %v5903_v39, %v7029_v7  ;;  %v2411_v57 = vsel %vm1163_vm2, %v7017_v43, 0  ;;  %v2414_v7 = vsel %vm1163_vm2, %v2393_v33, 0 }
 0x685   : > { %v2038_v27 = vpop.xlane.xlu1 %2037 }
 0x686   : > { %5908 = vrcp.f32 %v2038_v27 }
 0x689   : > { %v2280_v23 = vpop.permute.xlu1 %2279 }
 0x68a   : > { %5391 = vmatmul.mubr.msk.bf16.vlgmr.msra.gmra.mrb[48].mxu0 %vm1163_vm2, %v2280_v23 }
 0x68c   : > { %v5905_v15 = vpop.eup %5904 }
 0x68d   : > { %v2075_v62 = vmul.f32 %v5905_v15, %v7040_v44  ;;  %v5907_v20 = vpop.eup %5906 }
 0x68e   : > { %v2077_v21 = vmul.f32 %v5907_v20, %v7034_v19 }
 0x68f   : > { %v2087_v60 = vpack.c.bf16 %v2076_v55, %v2075_v62 }
 0x690   : > { %v5909_v28 = vpop.eup %5908 }
 0x691   : > { %v2078_v47 = vmul.f32 %v5909_v28, %v7045_v14  ;;  %5374 = vmatprep.mubr.msk.bf16.mxu1 %vm1342_vm3, %v2087_v60 }
 0x693   : > { %v2088_v61 = vpack.c.bf16 %v2078_v47, %v2077_v21 }
 0x695   : > { %5375 = vmatmul.mubr.msk.bf16.vlgmr.msra.gmra.mrb[56].mxu1 %vm1342_vm3, %v2088_v61 }
 0x696   : > { %5399 = vmatpush3.bf16.xpose.msra.mxu1 %v2411_v57 }
 0x697   : > { %5599 = vmatprep.subr.msk.bf16.mxu1 %vm1163_vm2, %v2393_v33 }
 0x69e   : > { %5401 = vmatpush3.bf16.xpose.msra.mxu1 %v2414_v7 }
 0x6ac   : > { %v2047_v44 = vpop.xlane.xlu0 %2046 }
 0x6b0   : > { %v2041_v16 = vpop.xlane.xlu0 %2040 }
 0x6b4   : > { %v2050_v27 = vpop.xlane.xlu0 %2049 }
 0x6b5   : > { %5910 = vrcp.f32 %v2050_v27 }
 0x6b6   : > { %5912 = vrcp.f32 %v2041_v16 }
 0x6b7   : > { %5914 = vrcp.f32 %v2047_v44 }
 0x6b8   : > { %v2395_v19 = vpop.permute.xlu0 %2394 }
 0x6b9   : > { %5600 = vmatprep.subr.msk.bf16.mxu1 %vm1163_vm2, %v2395_v19  ;;  %v2417_v14 = vsel %vm1163_vm2, %v2395_v19, 0 }
 0x6ba   : > { %5403 = vmatpush3.bf16.xpose.msra.mxu1 %v2417_v14  ;;  %v2044_v23 = vpop.xlane.xlu1 %2043 }
 0x6bb   : > { %5916 = vrcp.f32 %v2044_v23 }
 0x6bc   : > { %v2383_v43 = vpop.permute.xlu0 %2382 }
 0x6be   : > { %v7116_v39 = vpop.f32.mrb[44].mxu0  ;;  %v2397_v15 = vpop.permute.xlu1 %2396 }
 0x6bf   : > { %v7118_v33 = vpop.f32.mrb[45].mxu0  ;;  %5601 = vmatprep.subr.msk.bf16.mxu1 %vm1163_vm2, %v2397_v15  ;;  %v2420_v28 = vsel %vm1163_vm2, %v2397_v15, 0  ;;  %v5911_v21 = vpop.eup %5910 }
 0x6c0   : > { %v7121_v62 = vpop.f32.mrb[46].mxu0  ;;  %v2282_v55 = vpop.permute.xlu0 %2281  ;;  %v2082_v16 = vmul.f32 %v5911_v21, %v7066_v41 }
 0x6c1   : > { %v7125_v60 = vpop.f32.mrb[47].mxu0  ;;  %5394 = vmatprep.mubr.msk.bf16.mxu0 %vm1163_vm2, %v2282_v55  ;;  %v5913_v57 = vpop.eup %5912 }
 0x6c2   : > { %5405 = vmatpush3.bf16.xpose.msra.mxu1 %v2420_v28  ;;  %v2385_v61 = vpop.permute.xlu1 %2384  ;;  %v5915_v7 = vpop.eup %5914  ;;  %v2079_v19 = vmul.f32 %v5913_v57, %v7062_v51 }
 0x6c3   : > { %v2081_v23 = vmul.f32 %v5915_v7, %v7058_v46 }
 0x6c4   : > { %v2387_v28 = vpop.permute.xlu0 %2386 }
 0x6c5   : > { %v5917_v44 = vpop.eup %5916  ;;  %v2090_v55 = vpack.c.bf16 %v2082_v16, %v2081_v23 }
 0x6c6   : > { %v2284_v27 = vpop.permute.xlu1 %2283  ;;  %v2080_v14 = vmul.f32 %v5917_v44, %v7070_v29 }
 0x6c7   : > { %5395 = vmatmul.mubr.msk.bf16.gmra.mrb[52].mxu0 %vm1163_vm2, %v2284_v27 }
 0x6c8   : > { %v2089_v15 = vpack.c.bf16 %v2080_v14, %v2079_v19 }
 0x6ca   : > { %5378 = vmatprep.mubr.msk.bf16.mxu1 %vm1342_vm3, %v2089_v15  ;;  %v2389_v51 = vpop.permute.xlu1 %2388 }
 0x6cb   : > { %5379 = vmatmul.mubr.msk.bf16.gmra.mrb[60].mxu1 %vm1342_vm3, %v2090_v55 }
 0x6cc   : > { %5406 = vmatprep.mubr.msk.bf16.mxu1 %vm1163_vm2, %v2383_v43 }
 0x6d3   : > { %5407 = vmatmul.mubr.msk.bf16.vlgmr.msra.gmra.mrb[64].mxu1 %vm1163_vm2, %v2385_v61 }
 0x6d4   : > { %5410 = vmatprep.mubr.msk.bf16.mxu1 %vm1163_vm2, %v2387_v28 }
 0x6db   : > { %5411 = vmatmul.mubr.msk.bf16.gmra.mrb[68].mxu1 %vm1163_vm2, %v2389_v51 }
 0x75d   : > { %v7142_v41 = vpop.f32.mrb[48].mxu0 }
 0x75e   : > { %v7144_v29 = vpop.f32.mrb[49].mxu0  ;;  %v2493_v61 = vsel %vm1342_vm3, %v7142_v41, -inf }
 0x75f   : > { %v7146_v46 = vpop.f32.mrb[50].mxu0  ;;  %v2487_v21 = vsel %vm1342_vm3, %v7144_v29, -inf }
 0x760   : > { %2488 = vmax.xlane.f32.xlu0 %v2487_v21  ;;  %v7150_v57 = vpop.f32.mrb[51].mxu0  ;;  %v2496_v7 = vsel %vm1342_vm3, %v7146_v46, -inf }
 0x761   : > { %v2490_v43 = vsel %vm1342_vm3, %v7150_v57, -inf }
 0x762   : > { %2491 = vmax.xlane.f32.xlu1 %v2490_v43 }
 0x764   : > { %2494 = vmax.xlane.f32.xlu0 %v2493_v61 }
 0x768   : > { %v7158_v44 = vpop.f32.mrb[56].mxu1  ;;  %2497 = vmax.xlane.f32.xlu0 %v2496_v7 }
 0x769   : > { %v7160_v16 = vpop.f32.mrb[57].mxu1 }
 0x76a   : > { %v7162_v27 = vpop.f32.mrb[58].mxu1 }
 0x76b   : > { %v7166_v14 = vpop.f32.mrb[59].mxu1 }
 0x79a   : > { %v7170_v15 = vpop.f32.mrb[52].mxu0 }
 0x79b   : > { %v7172_v55 = vpop.f32.mrb[53].mxu0  ;;  %v2505_v19 = vsel %vm1342_vm3, %v7170_v15, -inf }
 0x79c   : > { %v7174_v28 = vpop.f32.mrb[54].mxu0  ;;  %v2499_v51 = vsel %vm1342_vm3, %v7172_v55, -inf }
 0x79d   : > { %2500 = vmax.xlane.f32.xlu0 %v2499_v51  ;;  %v7178_v21 = vpop.f32.mrb[55].mxu0  ;;  %v2508_v30 = vsel %vm1342_vm3, %v7174_v28, -inf }
 0x79e   : > { %v7180_v43 = vpop.f32.mrb[60].mxu1  ;;  %v2502_v61 = vsel %vm1342_vm3, %v7178_v21, -inf }
 0x79f   : > { %8424 = vst [vmem:[#allocation22_spill] sm:$0xff] %v7180_v43  ;;  %v7184_v7 = vpop.f32.mrb[61].mxu1  ;;  %2503 = vmax.xlane.f32.xlu1 %v2502_v61 }
 0x7a0   : > { %8425 = vst [vmem:[#allocation23_spill] sm:$0xff] %v7184_v7  ;;  %v7186_v23 = vpop.f32.mrb[62].mxu1 }
 0x7a1   : > { %8426 = vst [vmem:[#allocation24_spill] sm:$0xff] %v7186_v23  ;;  %v7192_v20 = vpop.f32.mrb[63].mxu1  ;;  %2506 = vmax.xlane.f32.xlu0 %v2505_v19 }
 0x7a2   : > { %8427 = vst [vmem:[#allocation25_spill] sm:$0xff] %v7192_v20 }
 0x7a3   : > { %2509 = vmax.xlane.f32.xlu1 %v2508_v30 }
 0x7a6   : > { %v7198_v1 = vpop.f32.mrb[64].mxu1 }
 0x7a7   : > { %v7200_v61 = vpop.f32.mrb[65].mxu1 }
 0x7a8   : > { %v7202_v59 = vpop.f32.mrb[66].mxu1 }
 0x7a9   : > { %v7204_v12 = vpop.f32.mrb[67].mxu1 }
 0x7ae   : > { %v7206_v2 = vpop.f32.mrb[68].mxu1 }
 0x7af   : > { %v7208_v47 = vpop.f32.mrb[69].mxu1 }
 0x7b0   : > { %v7210_v19 = vpop.f32.mrb[70].mxu1 }
 0x7b1   : > { %v7212_v13 = vpop.f32.mrb[71].mxu1 }
 0x7b4   : > { %2673 = vrot.lane.b32.xlu1 %v6629_v24, %s6169_s1 }
 0x7b7   : > { %2671 = vrot.lane.b32.xlu0 %v6631_v26, %s6169_s1 }
 0x7b8   : > { %2677 = vrot.lane.b32.xlu1 %v6635_v40, %s6169_s1 }
 0x7bb   : > { %2675 = vrot.lane.b32.xlu0 %v6638_v42, %s6169_s1 }
 0x7bc   : > { %2762 = vrot.lane.b32.xlu1 %v6641_v58, %s6169_s1 }
 0x7bf   : > { %2760 = vrot.lane.b32.xlu0 %v6644_v63, %s6169_s1 }
 0x7c0   : > { %2857 = vrot.lane.b32.xlu1 %v6538_v11, %s6170_s2 }
 0x7c3   : > { %2766 = vrot.lane.b32.xlu0 %v6647_v4, %s6169_s1 }
 0x7c4   : > { %2764 = vrot.lane.b32.xlu1 %v6650_v6, %s6169_s1 }
 0x7c7   : > { %2861 = vrot.lane.b32.xlu0 %v6566_v37, %s6170_s2 }
 0x7c8   : > { %2859 = vrot.lane.b32.xlu1 %v6534_v9, %s6170_s2 }
 0x7cc   : > { %2962 = vrot.lane.b32.xlu1 %v6580_v56, %s6170_s2 }
 0x7d0   : > { %2863 = vrot.lane.b32.xlu1 %v6562_v35, %s6170_s2 }
 0x7d4   : > { %2964 = vrot.lane.b32.xlu1 %v6578_v52, %s6170_s2 }
 0x7ed   : > { %v2489_v11 = vpop.xlane.xlu0 %2488 }
 0x7ee   : > { %v2535_v30 = vsub.f32 %v7144_v29, %v2489_v11 }
 0x7ef   : > { %v2492_v51 = vpop.xlane.xlu1 %2491 }
 0x7f0   : > { %v2551_v37 = vmul.f32 1.442695, %v2535_v30  ;;  %v2536_v22 = vsub.f32 %v7150_v57, %v2492_v51 }
 0x7f1   : > { %v2495_v25 = vpop.xlane.xlu0 %2494 }
 0x7f2   : > { %v2537_v8 = vsub.f32 %v7142_v41, %v2495_v25  ;;  %v2553_v35 = vmul.f32 1.442695, %v2536_v22 }
 0x7f4   : > { %v2555_v9 = vmul.f32 1.442695, %v2537_v8 }
 0x7f5   : > { %v2498_v48 = vpop.xlane.xlu0 %2497 }
 0x7f6   : > { %5918 = vpow2.f32 %v2555_v9  ;;  %v2538_v56 = vsub.f32 %v7146_v46, %v2498_v48 }
 0x7f7   : > { %5920 = vpow2.f32 %v2551_v37 }
 0x7f8   : > { %v2557_v34 = vmul.f32 1.442695, %v2538_v56 }
 0x7fa   : > { %5922 = vpow2.f32 %v2557_v34 }
 0x7fb   : > { %5924 = vpow2.f32 %v2553_v35 }
 0x800   : > { %v7246_v52 = vpop.eup %5918 }
 0x801   : > { %v2589_v29 = vsel %vm1342_vm3, %v7246_v52, 0.0  ;;  %v7250_v11 = vpop.eup %5920 }
 0x802   : > { %2590 = vadd.xlane.f32.xlu0 %v2589_v29  ;;  %v2583_v8 = vsel %vm1342_vm3, %v7250_v11, 0.0 }
 0x804   : > { %v7252_v25 = vpop.eup %5922 }
 0x805   : > { %v2592_v48 = vsel %vm1342_vm3, %v7252_v25, 0.0  ;;  %v7258_v22 = vpop.eup %5924 }
 0x806   : > { %2584 = vadd.xlane.f32.xlu0 %v2583_v8  ;;  %2593 = vadd.xlane.f32.xlu1 %v2592_v48  ;;  %v2586_v34 = vsel %vm1342_vm3, %v7258_v22, 0.0 }
 0x80a   : > { %2587 = vadd.xlane.f32.xlu1 %v2586_v34 }
 0x82a   : > { %v2501_v41 = vpop.xlane.xlu0 %2500 }
 0x82b   : > { %v2539_v57 = vsub.f32 %v7172_v55, %v2501_v41 }
 0x82c   : > { %v2504_v46 = vpop.xlane.xlu1 %2503 }
 0x82d   : > { %v2540_v51 = vsub.f32 %v7178_v21, %v2504_v46  ;;  %v2559_v35 = vmul.f32 1.442695, %v2539_v57 }
 0x82e   : > { %v2507_v30 = vpop.xlane.xlu0 %2506 }
 0x82f   : > { %v2561_v37 = vmul.f32 1.442695, %v2540_v51  ;;  %v2541_v9 = vsub.f32 %v7170_v15, %v2507_v30 }
 0x830   : > { %v2510_v56 = vpop.xlane.xlu1 %2509 }
 0x831   : > { %5926 = vpow2.f32 %v2561_v37  ;;  %v2563_v29 = vmul.f32 1.442695, %v2541_v9  ;;  %v2542_v8 = vsub.f32 %v7174_v28, %v2510_v56  ;;  %v2520_v37 = vsel %vm1342_vm3, %v7202_v59, -inf }
 0x832   : > { %v2672_v48 = vpop.permute.xlu0 %2671 }
 0x833   : > { %5928 = vpow2.f32 %v2563_v29  ;;  %5414 = vmatprep.subr.bf16.mxu0 %v2672_v48  ;;  %v2565_v17 = vmul.f32 1.442695, %v2542_v8  ;;  %v2514_v29 = vsel %vm1342_vm3, %v7204_v12, -inf }
 0x834   : > { %5415 = vmatpush3.bf16.msra.mxu0 %v2672_v48  ;;  %v2674_v34 = vpop.permute.xlu1 %2673  ;;  %5930 = vpow2.f32 %v2559_v35 }
 0x835   : > { %5416 = vmatprep.subr.bf16.mxu0 %v2674_v34  ;;  %5932 = vpow2.f32 %v2565_v17 }
 0x836   : > { %v2676_v55 = vpop.permute.xlu0 %2675 }
 0x838   : > { %5417 = vmatpush3.bf16.msra.mxu0 %v2674_v34  ;;  %v2678_v21 = vpop.permute.xlu1 %2677 }
 0x839   : > { %5418 = vmatprep.subr.bf16.mxu0 %v2676_v55 }
 0x83a   : > { %v2761_v15 = vpop.permute.xlu0 %2760 }
 0x83b   : > { %v7266_v41 = vpop.eup %5926  ;;  %5430 = vmatprep.subr.bf16.mxu1 %v2761_v15 }
 0x83c   : > { %5419 = vmatpush3.bf16.msra.mxu0 %v2676_v55  ;;  %5431 = vmatpush3.bf16.msra.mxu1 %v2761_v15  ;;  %v2763_v28 = vpop.permute.xlu1 %2762  ;;  %v2598_v46 = vsel %vm1342_vm3, %v7266_v41, 0.0  ;;  %v2532_v55 = vsel %vm1342_vm3, %v7210_v19, -inf }
 0x83d   : > { %v7270_v57 = vpop.eup %5928  ;;  %2599 = vadd.xlane.f32.xlu1 %v2598_v46  ;;  %5420 = vmatprep.subr.bf16.mxu0 %v2678_v21  ;;  %v2511_v46 = vsel %vm1342_vm3, %v7200_v61, -inf }
 0x83e   : > { %5432 = vmatprep.subr.bf16.mxu1 %v2763_v28  ;;  %v2601_v51 = vsel %vm1342_vm3, %v7270_v57, 0.0  ;;  %v7274_v17 = vpop.eup %5930  ;;  %v2767_v8 = vpop.permute.xlu0 %2766 }
 0x83f   : > { %2602 = vadd.xlane.f32.xlu0 %v2601_v51  ;;  %v2595_v9 = vsel %vm1342_vm3, %v7274_v17, 0.0  ;;  %v7281_v56 = vpop.eup %5932  ;;  %v2529_v51 = vsel %vm1342_vm3, %v7206_v2, -inf }
 0x840   : > { %5421 = vmatpush3.bf16.msra.mxu0 %v2678_v21  ;;  %5433 = vmatpush3.bf16.msra.mxu1 %v2763_v28  ;;  %v2858_v30 = vpop.permute.xlu1 %2857  ;;  %v2604_v48 = vsel %vm1342_vm3, %v7281_v56, 0.0  ;;  %v2517_v21 = vsel %vm1342_vm3, %v7198_v1, -inf  ;;  %v2526_v28 = vsel %vm1342_vm3, %v7212_v13, -inf }
 0x841   : > { %2521 = vmax.xlane.f32.xlu1 %v2520_v37  ;;  %5602 = vmatprep.subr.msk.bf16.mxu0 %vm1163_vm2, %v2858_v30  ;;  %v2523_v37 = vsel %vm1342_vm3, %v7208_v47, -inf }
 0x843   : > { %2596 = vadd.xlane.f32.xlu0 %v2595_v9 }
 0x844   : > { %v2765_v35 = vpop.permute.xlu1 %2764 }
 0x845   : > { %2515 = vmax.xlane.f32.xlu1 %v2514_v29  ;;  %5434 = vmatprep.subr.bf16.mxu1 %v2765_v35 }
 0x846   : > { %5435 = vmatpush3.bf16.msra.mxu1 %v2765_v35  ;;  %v2862_v35 = vpop.permute.xlu0 %2861 }
 0x847   : > { %2605 = vadd.xlane.f32.xlu0 %v2604_v48  ;;  %5436 = vmatprep.subr.bf16.mxu1 %v2767_v8 }
 0x848   : > { %v2860_v34 = vpop.permute.xlu1 %2859 }
 0x849   : > { %2533 = vmax.xlane.f32.xlu1 %v2532_v55 }
 0x84a   : > { %5437 = vmatpush3.bf16.msra.mxu1 %v2767_v8 }
 0x84b   : > { %2518 = vmax.xlane.f32.xlu0 %v2517_v21 }
 0x84c   : > { %v7291_v15 = vpop.permute.xlu1 %2962 }
 0x84d   : > { %2527 = vmax.xlane.f32.xlu1 %v2526_v28  ;;  %5606 = vmatprep.subr.msk.bf16.mxu1 %vm1163_vm2, %v7291_v15 }
 0x84f   : > { %2512 = vmax.xlane.f32.xlu0 %v2511_v46 }
 0x850   : > { %v2864_v9 = vpop.permute.xlu1 %2863 }
 0x853   : > { %2530 = vmax.xlane.f32.xlu0 %v2529_v51 }
 0x854   : > { %v7307_v29 = vpop.permute.xlu1 %2964 }
 0x857   : > { %2524 = vmax.xlane.f32.xlu0 %v2523_v37 }
 0x85e   : > { %2851 = vrot.lane.b32.xlu1 %v6536_v10, %s6170_s2 }
 0x86d   : > { %2849 = vrot.lane.b32.xlu0 %v6540_v54, %s6170_s2 }
 0x88f   : > { %v2591_v8 = vpop.xlane.xlu0 %2590 }
 0x893   : > { %v2585_v48 = vpop.xlane.xlu0 %2584  ;;  %v2594_v55 = vpop.xlane.xlu1 %2593 }
 0x894   : > { %5934 = vrcp.f32 %v2594_v55 }
 0x895   : > { %5936 = vrcp.f32 %v2585_v48  ;;  %v2881_v48 = vsel %vm1163_vm2, %v2860_v34, 0 }
 0x896   : > { %5938 = vrcp.f32 %v2591_v8  ;;  %v2878_v8 = vsel %vm1163_vm2, %v2858_v30, 0 }
 0x897   : > { %v2588_v21 = vpop.xlane.xlu1 %2587 }
 0x898   : > { %5940 = vrcp.f32 %v2588_v21 }
 0x89e   : > { %v5935_v28 = vpop.eup %5934 }
 0x89f   : > { %v5937_v46 = vpop.eup %5936  ;;  %v2650_v10 = vmul.f32 %v5935_v28, %v7252_v25 }
 0x8a0   : > { %v5939_v51 = vpop.eup %5938  ;;  %v2647_v54 = vmul.f32 %v5937_v46, %v7250_v11  ;;  %v2884_v11 = vsel %vm1163_vm2, %v2862_v35, 0 }
 0x8a1   : > { %v2649_v20 = vmul.f32 %v5939_v51, %v7246_v52 }
 0x8a2   : > { %v5941_v37 = vpop.eup %5940 }
 0x8a3   : > { %v2648_v7 = vmul.f32 %v5941_v37, %v7258_v22  ;;  %v2664_v23 = vpack.c.bf16 %v2650_v10, %v2649_v20  ;;  %v2887_v20 = vsel %vm1163_vm2, %v2864_v9, 0 }
 0x8a5   : > { %v2663_v43 = vpack.c.bf16 %v2648_v7, %v2647_v54 }
 0x8a7   : > { %5422 = vmatprep.mubr.msk.bf16.mxu0 %vm1342_vm3, %v2663_v43 }
 0x8a8   : > { %5423 = vmatmul.mubr.msk.bf16.vlgmr.msra.gmra.mrb[56].mxu0 %vm1342_vm3, %v2664_v23 }
 0x8a9   : > { %5447 = vmatpush3.bf16.xpose.msra.mxu0 %v2878_v8 }
 0x8aa   : > { %5603 = vmatprep.subr.msk.bf16.mxu0 %vm1163_vm2, %v2860_v34 }
 0x8b1   : > { %5449 = vmatpush3.bf16.xpose.msra.mxu0 %v2881_v48 }
 0x8b2   : > { %5604 = vmatprep.subr.msk.bf16.mxu0 %vm1163_vm2, %v2862_v35 }
 0x8b9   : > { %5451 = vmatpush3.bf16.xpose.msra.mxu0 %v2884_v11 }
 0x8ba   : > { %5605 = vmatprep.subr.msk.bf16.mxu0 %vm1163_vm2, %v2864_v9 }
 0x8c1   : > { %5453 = vmatpush3.bf16.xpose.msra.mxu0 %v2887_v20 }
 0x8ca   : > { %v2600_v43 = vpop.xlane.xlu1 %2599 }
 0x8cb   : > { %5942 = vrcp.f32 %v2600_v43 }
 0x8cc   : > { %v2603_v23 = vpop.xlane.xlu0 %2602 }
 0x8ce   : > { %v2522_v7 = vpop.xlane.xlu1 %2521 }
 0x8cf   : > { %v2546_v28 = vsub.f32 %v7202_v59, %v2522_v7 }
 0x8d0   : > { %v2597_v52 = vpop.xlane.xlu0 %2596 }
 0x8d1   : > { %5944 = vrcp.f32 %v2597_v52  ;;  %v2573_v11 = vmul.f32 1.442695, %v2546_v28 }
 0x8d2   : > { %v2516_v25 = vpop.xlane.xlu1 %2515  ;;  %5946 = vrcp.f32 %v2603_v23 }
 0x8d3   : > { %v2544_v22 = vsub.f32 %v7204_v12, %v2516_v25 }
 0x8d4   : > { %v2606_v30 = vpop.xlane.xlu0 %2605 }
 0x8d5   : > { %v2569_v34 = vmul.f32 1.442695, %v2544_v22  ;;  %5948 = vrcp.f32 %v2606_v30  ;;  %v5943_v55 = vpop.eup %5942 }
 0x8d6   : > { %v2652_v10 = vmul.f32 %v5943_v55, %v7266_v41  ;;  %v2534_v20 = vpop.xlane.xlu1 %2533 }
 0x8d7   : > { %5950 = vpow2.f32 %v2569_v34 }
 0x8d8   : > { %v2519_v35 = vpop.xlane.xlu0 %2518 }
 0x8d9   : > { %v2545_v21 = vsub.f32 %v7198_v1, %v2519_v35 }
 0x8da   : > { %v2528_v52 = vpop.xlane.xlu1 %2527 }
 0x8db   : > { %v5945_v9 = vpop.eup %5944  ;;  %v2571_v46 = vmul.f32 1.442695, %v2545_v21 }
 0x8dc   : > { %v2513_v51 = vpop.xlane.xlu0 %2512  ;;  %v2651_v37 = vmul.f32 %v5945_v9, %v7274_v17  ;;  %v5947_v54 = vpop.eup %5946 }
 0x8dd   : > { %5952 = vpow2.f32 %v2571_v46  ;;  %v2543_v12 = vsub.f32 %v7200_v61, %v2513_v51  ;;  %v2653_v59 = vmul.f32 %v5947_v54, %v7270_v57  ;;  %v2550_v46 = vsub.f32 %v7210_v19, %v2534_v20 }
 0x8de   : > { %v2665_v8 = vpack.c.bf16 %v2652_v10, %v2651_v37  ;;  %v2852_v30 = vpop.permute.xlu1 %2851  ;;  %v2548_v10 = vsub.f32 %v7212_v13, %v2528_v52 }
 0x8df   : > { %v5949_v48 = vpop.eup %5948  ;;  %v2567_v43 = vmul.f32 1.442695, %v2543_v12  ;;  %v2581_v37 = vmul.f32 1.442695, %v2550_v46 }
 0x8e0   : > { %v2531_v23 = vpop.xlane.xlu0 %2530  ;;  %5426 = vmatprep.mubr.msk.bf16.mxu0 %vm1342_vm3, %v2665_v8  ;;  %v2654_v1 = vmul.f32 %v5949_v48, %v7281_v56 }
 0x8e1   : > { %v7331_v7 = vpop.eup %5950  ;;  %5954 = vpow2.f32 %v2567_v43  ;;  %v2549_v21 = vsub.f32 %v7206_v2, %v2531_v23 }
 0x8e2   : > { %v2610_v41 = vsel %vm1342_vm3, %v7331_v7, 0.0  ;;  %v2666_v17 = vpack.c.bf16 %v2654_v1, %v2653_v59  ;;  %5956 = vpow2.f32 %v2573_v11 }
 0x8e3   : > { %2611 = vadd.xlane.f32.xlu0 %v2610_v41  ;;  %v2579_v9 = vmul.f32 1.442695, %v2549_v21 }
 0x8e4   : > { %v2525_v61 = vpop.xlane.xlu0 %2524  ;;  %5427 = vmatmul.mubr.msk.bf16.gmra.mrb[60].mxu0 %vm1342_vm3, %v2666_v17 }
 0x8e5   : > { %v2547_v28 = vsub.f32 %v7208_v47, %v2525_v61  ;;  %5958 = vpow2.f32 %v2579_v9 }
 0x8e7   : > { %v7336_v25 = vpop.eup %5952  ;;  %v2575_v51 = vmul.f32 1.442695, %v2547_v28 }
 0x8e8   : > { %v2850_v22 = vpop.permute.xlu0 %2849  ;;  %v2613_v57 = vsel %vm1342_vm3, %v7336_v25, 0.0 }
 0x8e9   : > { %2614 = vadd.xlane.f32.xlu1 %v2613_v57  ;;  %5454 = vmatprep.mubr.msk.bf16.mxu0 %vm1163_vm2, %v2850_v22  ;;  %5960 = vpow2.f32 %v2575_v51 }
 0x8ea   : > { %5962 = vpow2.f32 %v2581_v37 }
 0x8eb   : > { %v5955_v56 = vpop.eup %5954 }
 0x8ec   : > { %5455 = vmatmul.mubr.msk.bf16.vlgmr.msra.gmra.mrb[64].mxu0 %vm1163_vm2, %v2852_v30  ;;  %v2607_v34 = vsel %vm1342_vm3, %v5955_v56, 0.0  ;;  %v5957_v35 = vpop.eup %5956 }
 0x8ed   : > { %2608 = vadd.xlane.f32.xlu1 %v2607_v34  ;;  %v2616_v55 = vsel %vm1342_vm3, %v5957_v35, 0.0 }
 0x8ef   : > { %v7352_v54 = vpop.eup %5958 }
 0x8f0   : > { %v2625_v2 = vsel %vm1342_vm3, %v7352_v54, 0.0 }
 0x8f1   : > { %2617 = vadd.xlane.f32.xlu1 %v2616_v55  ;;  %v2983_v55 = vsel %vm1163_vm2, %v7291_v15, 0 }
 0x8f3   : > { %v7356_v12 = vpop.eup %5960 }
 0x8f4   : > { %v7360_v47 = vpop.eup %5962 }
 0x8f5   : > { %v2628_v13 = vsel %vm1342_vm3, %v7360_v47, 0.0 }
 0x8f9   : > { %2966 = vrot.lane.b32.xlu0 %v6600_v5, %s6170_s2  ;;  %v2577_v5 = vmul.f32 1.442695, %v2548_v10 }
 0x8fb   : > { %5964 = vpow2.f32 %v2577_v5 }
 0x902   : > { %2853 = vrot.lane.b32.xlu1 %v6568_v38, %s6170_s2  ;;  %v2619_v38 = vsel %vm1342_vm3, %v7356_v12, 0.0 }
 0x905   : > { %v7364_v19 = vpop.eup %5964 }
 0x906   : > { %v2622_v8 = vsel %vm1342_vm3, %v7364_v19, 0.0 }
 0x918   : > { %2626 = vadd.xlane.f32.xlu0 %v2625_v2 }
 0x91c   : > { %2620 = vadd.xlane.f32.xlu0 %v2619_v38 }
 0x920   : > { %2629 = vadd.xlane.f32.xlu0 %v2628_v13 }
 0x926   : > { %2623 = vadd.xlane.f32.xlu1 %v2622_v8 }
 0x936   : > { %2855 = vrot.lane.b32.xlu0 %v6564_v36, %s6170_s2 }
 0x937   : > { %2968 = vrot.lane.b32.xlu1 %v6596_v3, %s6170_s2 }
 0x93a   : > { %2954 = vrot.lane.b32.xlu0 %v6510_v32, %s6170_s2 }
 0x93b   : > { %2956 = vrot.lane.b32.xlu1 %v6508_v31, %s6170_s2 }
 0x93e   : > { %2958 = vrot.lane.b32.xlu0 %v6525_v53, %s6170_s2 }
 0x93f   : > { %2960 = vrot.lane.b32.xlu1 %v6519_v49, %s6170_s2 }
 0x970   : > { %v2612_v48 = vpop.xlane.xlu0 %2611 }
 0x971   : > { %5966 = vrcp.f32 %v2612_v48 }
 0x976   : > { %v2615_v11 = vpop.xlane.xlu1 %2614 }
 0x97a   : > { %v2609_v20 = vpop.xlane.xlu1 %2608 }
 0x97b   : > { %5968 = vrcp.f32 %v2609_v20  ;;  %v7380_v36 = vpop.f32.mrb[56].mxu0  ;;  %v5967_v59 = vpop.eup %5966 }
 0x97c   : > { %v7382_v3 = vpop.f32.mrb[57].mxu0  ;;  %5970 = vrcp.f32 %v2615_v11  ;;  %v2656_v17 = vmul.f32 %v5967_v59, %v7331_v7  ;;  %v2986_v7 = vsel %vm1163_vm2, %v7307_v29, 0 }
 0x97d   : > { %v7384_v32 = vpop.f32.mrb[58].mxu0 }
 0x97e   : > { %v7388_v43 = vpop.f32.mrb[59].mxu0  ;;  %v2618_v53 = vpop.xlane.xlu1 %2617 }
 0x97f   : > { %5972 = vrcp.f32 %v2618_v53 }
 0x982   : > { %v2854_v23 = vpop.permute.xlu1 %2853 }
 0x983   : > { %5458 = vmatprep.mubr.msk.bf16.mxu0 %vm1163_vm2, %v2854_v23 }
 0x985   : > { %v5969_v1 = vpop.eup %5968 }
 0x986   : > { %v2655_v41 = vmul.f32 %v5969_v1, %v5955_v56  ;;  %v5971_v61 = vpop.eup %5970  ;;  %v2967_v56 = vpop.permute.xlu0 %2966 }
 0x987   : > { %v2657_v57 = vmul.f32 %v5971_v61, %v7336_v25  ;;  %v2989_v25 = vsel %vm1163_vm2, %v2967_v56, 0 }
 0x988   : > { %v2667_v52 = vpack.c.bf16 %v2656_v17, %v2655_v41 }
 0x989   : > { %v5973_v22 = vpop.eup %5972 }
 0x98a   : > { %v2658_v30 = vmul.f32 %v5973_v22, %v5957_v35  ;;  %5438 = vmatprep.mubr.msk.bf16.mxu1 %vm1342_vm3, %v2667_v52 }
 0x98c   : > { %v2668_v34 = vpack.c.bf16 %v2658_v30, %v2657_v57 }
 0x98e   : > { %5439 = vmatmul.mubr.msk.bf16.vlgmr.msra.gmra.mrb[72].mxu1 %vm1342_vm3, %v2668_v34 }
 0x98f   : > { %5463 = vmatpush3.bf16.xpose.msra.mxu1 %v2983_v55 }
 0x990   : > { %5607 = vmatprep.subr.msk.bf16.mxu1 %vm1163_vm2, %v7307_v29 }
 0x997   : > { %5465 = vmatpush3.bf16.xpose.msra.mxu1 %v2986_v7 }
 0x998   : > { %5608 = vmatprep.subr.msk.bf16.mxu1 %vm1163_vm2, %v2967_v56 }
 0x99f   : > { %5467 = vmatpush3.bf16.xpose.msra.mxu1 %v2989_v25 }
 0x9a5   : > { %v2627_v35 = vpop.xlane.xlu0 %2626 }
 0x9a9   : > { %v2621_v21 = vpop.xlane.xlu0 %2620 }
 0x9ad   : > { %v2630_v9 = vpop.xlane.xlu0 %2629 }
 0x9ae   : > { %5974 = vrcp.f32 %v2630_v9 }
 0x9af   : > { %5976 = vrcp.f32 %v2621_v21 }
 0x9b0   : > { %5978 = vrcp.f32 %v2627_v35 }
 0x9b1   : > { %v2856_v28 = vpop.permute.xlu0 %2855 }
 0x9b2   : > { %5459 = vmatmul.mubr.msk.bf16.gmra.mrb[68].mxu0 %vm1163_vm2, %v2856_v28 }
 0x9b3   : > { %v2624_v15 = vpop.xlane.xlu1 %2623 }
 0x9b4   : > { %5980 = vrcp.f32 %v2624_v15 }
 0x9b7   : > { %v7406_v46 = vpop.f32.mrb[60].mxu0  ;;  %v2969_v29 = vpop.permute.xlu1 %2968 }
 0x9b8   : > { %v7408_v51 = vpop.f32.mrb[61].mxu0  ;;  %5609 = vmatprep.subr.msk.bf16.mxu1 %vm1163_vm2, %v2969_v29  ;;  %v2992_v37 = vsel %vm1163_vm2, %v2969_v29, 0  ;;  %v5975_v38 = vpop.eup %5974 }
 0x9b9   : > { %v7412_v10 = vpop.f32.mrb[62].mxu0  ;;  %5469 = vmatpush3.bf16.xpose.msra.mxu1 %v2992_v37  ;;  %v5977_v8 = vpop.eup %5976  ;;  %v2662_v20 = vmul.f32 %v5975_v38, %v7360_v47 }
 0x9ba   : > { %v7416_v2 = vpop.f32.mrb[63].mxu0  ;;  %v5979_v48 = vpop.eup %5978  ;;  %v2659_v23 = vmul.f32 %v5977_v8, %v7356_v12 }
 0x9bb   : > { %v2661_v41 = vmul.f32 %v5979_v48, %v7352_v54  ;;  %v2955_v47 = vpop.permute.xlu0 %2954 }
 0x9bd   : > { %v2670_v57 = vpack.c.bf16 %v2662_v20, %v2661_v41 }
 0x9be   : > { %v5981_v11 = vpop.eup %5980 }
 0x9bf   : > { %v5456_v53 = vpop.f32.mrb[64].mxu0  ;;  %v2660_v59 = vmul.f32 %v5981_v11, %v7364_v19  ;;  %v2957_v19 = vpop.permute.xlu1 %2956 }
 0x9c0   : > { %v2923_v1 = vpop.f32.mrb[65].mxu0  ;;  %v3065_v12 = vsel %vm1342_vm3, %v5456_v53, -inf  ;;  %v2959_v34 = vpop.permute.xlu0 %2958 }
 0x9c1   : > { %v5457_v17 = vpop.f32.mrb[66].mxu0  ;;  %v3059_v61 = vsel %vm1342_vm3, %v2923_v1, -inf  ;;  %v2669_v52 = vpack.c.bf16 %v2660_v59, %v2659_v23 }
 0x9c2   : > { %3060 = vmax.xlane.f32.xlu0 %v3059_v61  ;;  %v2926_v22 = vpop.f32.mrb[67].mxu0  ;;  %v3068_v54 = vsel %vm1342_vm3, %v5457_v17, -inf }
 0x9c3   : > { %5442 = vmatprep.mubr.msk.bf16.mxu1 %vm1342_vm3, %v2669_v52  ;;  %v3062_v30 = vsel %vm1342_vm3, %v2926_v22, -inf  ;;  %v2961_v55 = vpop.permute.xlu1 %2960 }
 0x9c4   : > { %3063 = vmax.xlane.f32.xlu1 %v3062_v30  ;;  %5443 = vmatmul.mubr.msk.bf16.gmra.mrb[76].mxu1 %vm1342_vm3, %v2670_v57 }
 0x9c5   : > { %5470 = vmatprep.mubr.msk.bf16.mxu1 %vm1163_vm2, %v2955_v47 }
 0x9c6   : > { %3066 = vmax.xlane.f32.xlu0 %v3065_v12 }
 0x9ca   : > { %3069 = vmax.xlane.f32.xlu0 %v3068_v54 }
 0x9cc   : > { %5471 = vmatmul.mubr.msk.bf16.vlgmr.msra.gmra.mrb[80].mxu1 %vm1163_vm2, %v2957_v19 }
 0x9cd   : > { %5474 = vmatprep.mubr.msk.bf16.mxu1 %vm1163_vm2, %v2959_v34 }
 0x9d4   : > { %5475 = vmatmul.mubr.msk.bf16.gmra.mrb[84].mxu1 %vm1163_vm2, %v2961_v55 }
 0xa4f   : > { %v3061_v28 = vpop.xlane.xlu0 %3060 }
 0xa50   : > { %v3107_v48 = vsub.f32 %v2923_v1, %v3061_v28 }
 0xa51   : > { %v3064_v8 = vpop.xlane.xlu1 %3063 }
 0xa52   : > { %v3108_v20 = vsub.f32 %v2926_v22, %v3064_v8  ;;  %v3123_v59 = vmul.f32 1.442695, %v3107_v48 }
 0xa53   : > { %v3067_v15 = vpop.xlane.xlu0 %3066 }
 0xa54   : > { %v3109_v37 = vsub.f32 %v5456_v53, %v3067_v15  ;;  %v3125_v41 = vmul.f32 1.442695, %v3108_v20 }
 0xa56   : > { %v3127_v11 = vmul.f32 1.442695, %v3109_v37 }
 0xa57   : > { %v3070_v29 = vpop.xlane.xlu0 %3069 }
 0xa58   : > { %v3110_v38 = vsub.f32 %v5457_v17, %v3070_v29  ;;  %5982 = vpow2.f32 %v3127_v11 }
 0xa5a   : > { %v3129_v23 = vmul.f32 1.442695, %v3110_v38 }
 0xa5c   : > { %5984 = vpow2.f32 %v3129_v23 }
 0xa5d   : > { %5986 = vpow2.f32 %v3123_v59 }
 0xa5e   : > { %5988 = vpow2.f32 %v3125_v41 }
 0xa61   : > { %v7434_v7 = vpop.f32.mrb[72].mxu1 }
 0xa62   : > { %v7436_v56 = vpop.f32.mrb[73].mxu1  ;;  %v7452_v22 = vpop.eup %5982 }
 0xa63   : > { %v7438_v25 = vpop.f32.mrb[74].mxu1  ;;  %v3161_v54 = vsel %vm1342_vm3, %v7452_v22, 0.0 }
 0xa64   : > { %v7442_v21 = vpop.f32.mrb[75].mxu1 }
 0xa66   : > { %v7455_v12 = vpop.eup %5984 }
 0xa67   : > { %v5987_v19 = vpop.eup %5986  ;;  %v3164_v34 = vsel %vm1342_vm3, %v7455_v12, 0.0 }
 0xa68   : > { %v5989_v55 = vpop.eup %5988  ;;  %v3155_v28 = vsel %vm1342_vm3, %v5987_v19, 0.0 }
 0xa69   : > { %v3158_v15 = vsel %vm1342_vm3, %v5989_v55, 0.0 }
 0xa85   : > { %v7446_v61 = vpop.f32.mrb[68].mxu0 }
 0xa86   : > { %v2939_v52 = vpop.f32.mrb[69].mxu0  ;;  %v3077_v1 = vsel %vm1342_vm3, %v7446_v61, -inf }
 0xa87   : > { %v5461_v57 = vpop.f32.mrb[70].mxu0  ;;  %v3071_v30 = vsel %vm1342_vm3, %v2939_v52, -inf }
 0xa88   : > { %3072 = vmax.xlane.f32.xlu0 %v3071_v30  ;;  %v2942_v53 = vpop.f32.mrb[71].mxu0  ;;  %v3080_v47 = vsel %vm1342_vm3, %v5461_v57, -inf }
 0xa89   : > { %v3074_v17 = vsel %vm1342_vm3, %v2942_v53, -inf }
 0xa8a   : > { %3075 = vmax.xlane.f32.xlu1 %v3074_v17 }
 0xa8c   : > { %3078 = vmax.xlane.f32.xlu0 %v3077_v1 }
 0xa8e   : > { %3081 = vmax.xlane.f32.xlu1 %v3080_v47 }
 0xa90   : > { %3162 = vadd.xlane.f32.xlu0 %v3161_v54 }
 0xa92   : > { %3165 = vadd.xlane.f32.xlu1 %v3164_v34 }
 0xa94   : > { %3156 = vadd.xlane.f32.xlu0 %v3155_v28 }
 0xa96   : > { %3159 = vadd.xlane.f32.xlu1 %v3158_v15 }
 0xa97   : > { %v7463_v29 = vpop.f32.mrb[76].mxu1 }
 0xa98   : > { %8428 = vst [vmem:[#allocation26_spill] sm:$0xff] %v7463_v29  ;;  %v7465_v37 = vpop.f32.mrb[77].mxu1 }
 0xa99   : > { %8429 = vst [vmem:[#allocation27_spill] sm:$0xff] %v7465_v37  ;;  %v7467_v38 = vpop.f32.mrb[78].mxu1 }
 0xa9a   : > { %v7471_v48 = vpop.f32.mrb[79].mxu1 }
 0xa9b   : > { %8430 = vst [vmem:[#allocation28_spill] sm:$0xff] %v7471_v48 }
 0xa9f   : > { %v7475_v20 = vpop.f32.mrb[80].mxu1 }
 0xaa0   : > { %v7477_v23 = vpop.f32.mrb[81].mxu1 }
 0xaa1   : > { %v7479_v59 = vpop.f32.mrb[82].mxu1 }
 0xaa2   : > { %v7481_v41 = vpop.f32.mrb[83].mxu1 }
 0xaa7   : > { %v7483_v30 = vpop.f32.mrb[84].mxu1 }
 0xaa8   : > { %v7485_v17 = vpop.f32.mrb[85].mxu1 }
 0xaa9   : > { %v7487_v1 = vpop.f32.mrb[86].mxu1 }
 0xaaa   : > { %v7489_v47 = vpop.f32.mrb[87].mxu1 }
 0xb15   : > { %v3073_v54 = vpop.xlane.xlu0 %3072 }
 0xb16   : > { %v3111_v34 = vsub.f32 %v2939_v52, %v3073_v54 }
 0xb17   : > { %v3076_v28 = vpop.xlane.xlu1 %3075 }
 0xb18   : > { %v3131_v15 = vmul.f32 1.442695, %v3111_v34  ;;  %v3112_v11 = vsub.f32 %v2942_v53, %v3076_v28  ;;  %v3101_v28 = vsel %vm1342_vm3, %v7483_v30, -inf }
 0xb19   : > { %v3079_v8 = vpop.xlane.xlu0 %3078 }
 0xb1a   : > { %5990 = vpow2.f32 %v3131_v15  ;;  %v3133_v9 = vmul.f32 1.442695, %v3112_v11  ;;  %v3113_v52 = vsub.f32 %v7446_v61, %v3079_v8  ;;  %v3086_v8 = vsel %vm1342_vm3, %v7481_v41, -inf }
 0xb1b   : > { %v3082_v35 = vpop.xlane.xlu1 %3081 }
 0xb1c   : > { %5992 = vpow2.f32 %v3133_v9  ;;  %v3114_v5 = vsub.f32 %v5461_v57, %v3082_v35  ;;  %v3135_v9 = vmul.f32 1.442695, %v3113_v52  ;;  %v3083_v57 = vsel %vm1342_vm3, %v7477_v23, -inf }
 0xb1d   : > { %v7491_v13 = vpop.xlane.xlu0 %3162 }
 0xb1e   : > { %v3137_v37 = vmul.f32 1.442695, %v3114_v5  ;;  %v3092_v5 = vsel %vm1342_vm3, %v7479_v59, -inf }
 0xb1f   : > { %v7493_v49 = vpop.xlane.xlu1 %3165 }
 0xb21   : > { %v3157_v31 = vpop.xlane.xlu0 %3156 }
 0xb22   : > { %5994 = vrcp.f32 %v3157_v31  ;;  %v3089_v31 = vsel %vm1342_vm3, %v7475_v20, -inf }
 0xb23   : > { %v3160_v48 = vpop.xlane.xlu1 %3159 }
 0xb24   : > { %v7495_v29 = vpop.eup %5990  ;;  %5996 = vrcp.f32 %v3160_v48 }
 0xb25   : > { %v3167_v53 = vsel %vm1342_vm3, %v7495_v29, 0.0  ;;  %5998 = vpow2.f32 %v3137_v37 }
 0xb26   : > { %v7500_v11 = vpop.eup %5992  ;;  %3168 = vadd.xlane.f32.xlu0 %v3167_v53  ;;  %6000 = vpow2.f32 %v3135_v9  ;;  %v3095_v53 = vsel %vm1342_vm3, %v7485_v17, -inf  ;;  %v3098_v9 = vsel %vm1342_vm3, %v7489_v47, -inf }
 0xb27   : > { %v3170_v35 = vsel %vm1342_vm3, %v7500_v11, 0.0 }
 0xb28   : > { %3171 = vadd.xlane.f32.xlu1 %v3170_v35 }
 0xb2a   : > { %3090 = vmax.xlane.f32.xlu0 %v3089_v31 }
 0xb2c   : > { %v5995_v61 = vpop.eup %5994  ;;  %3093 = vmax.xlane.f32.xlu1 %v3092_v5 }
 0xb2d   : > { %v3219_v48 = vmul.f32 %v5995_v61, %v5987_v19 }
 0xb2e   : > { %v5997_v37 = vpop.eup %5996  ;;  %3084 = vmax.xlane.f32.xlu0 %v3083_v57 }
 0xb2f   : > { %v3220_v54 = vmul.f32 %v5997_v37, %v5989_v55  ;;  %v7512_v34 = vpop.eup %5998  ;;  %v3104_v55 = vsel %vm1342_vm3, %v7487_v1, -inf }
 0xb30   : > { %3087 = vmax.xlane.f32.xlu1 %v3086_v8  ;;  %v3176_v52 = vsel %vm1342_vm3, %v7512_v34, 0.0  ;;  %v7521_v35 = vpop.eup %6000 }
 0xb31   : > { %v3235_v15 = vpack.c.bf16 %v3220_v54, %v3219_v48  ;;  %v3173_v19 = vsel %vm1342_vm3, %v7521_v35, 0.0 }
 0xb32   : > { %3102 = vmax.xlane.f32.xlu0 %v3101_v28 }
 0xb33   : > { %5486 = vmatprep.mubr.msk.bf16.mxu0 %vm1342_vm3, %v3235_v15 }
 0xb34   : > { %3177 = vadd.xlane.f32.xlu1 %v3176_v52 }
 0xb36   : > { %3096 = vmax.xlane.f32.xlu0 %v3095_v53 }
 0xb3a   : > { %3174 = vadd.xlane.f32.xlu0 %v3173_v19 }
 0xb45   : > { %3245 = vrot.lane.b32.xlu1 %v6629_v24, %s6170_s2 }
 0xb50   : > { %3243 = vrot.lane.b32.xlu0 %v6631_v26, %s6170_s2 }
 0xb54   : > { %3247 = vrot.lane.b32.xlu0 %v6638_v42, %s6170_s2 }
 0xb58   : > { %3249 = vrot.lane.b32.xlu0 %v6635_v40, %s6170_s2 }
 0xb69   : > { %3105 = vmax.xlane.f32.xlu1 %v3104_v55 }
 0xb6d   : > { %3099 = vmax.xlane.f32.xlu1 %v3098_v9 }
 0xb7e   : > { %3332 = vrot.lane.b32.xlu1 %v6644_v63, %s6170_s2 }
 0xb82   : > { %3334 = vrot.lane.b32.xlu1 %v6641_v58, %s6170_s2 }
 0xbb3   : > { %v3169_v24 = vpop.xlane.xlu0 %3168 }
 0xbb5   : > { %v3172_v26 = vpop.xlane.xlu1 %3171 }
 0xbb7   : > { %v3091_v42 = vpop.xlane.xlu0 %3090 }
 0xbb8   : > { %v3117_v31 = vsub.f32 %v7475_v20, %v3091_v42 }
 0xbb9   : > { %v3094_v40 = vpop.xlane.xlu1 %3093 }
 0xbba   : > { %v3143_v5 = vmul.f32 1.442695, %v3117_v31  ;;  %v3118_v61 = vsub.f32 %v7479_v59, %v3094_v40 }
 0xbbb   : > { %v3085_v57 = vpop.xlane.xlu0 %3084 }
 0xbbc   : > { %6002 = vpow2.f32 %v3143_v5  ;;  %v3115_v37 = vsub.f32 %v7477_v23, %v3085_v57  ;;  %v3145_v48 = vmul.f32 1.442695, %v3118_v61 }
 0xbbd   : > { %v3088_v8 = vpop.xlane.xlu1 %3087 }
 0xbbe   : > { %v3139_v54 = vmul.f32 1.442695, %v3115_v37  ;;  %v3116_v63 = vsub.f32 %v7481_v41, %v3088_v8 }
 0xbbf   : > { %v3103_v28 = vpop.xlane.xlu0 %3102 }
 0xbc0   : > { %6004 = vpow2.f32 %v3139_v54  ;;  %v3121_v58 = vsub.f32 %v7483_v30, %v3103_v28  ;;  %v3141_v15 = vmul.f32 1.442695, %v3116_v63 }
 0xbc1   : > { %6006 = vpow2.f32 %v3145_v48  ;;  %v3178_v19 = vpop.xlane.xlu1 %3177 }
 0xbc2   : > { %v3151_v20 = vmul.f32 1.442695, %v3121_v58 }
 0xbc3   : > { %v3097_v52 = vpop.xlane.xlu0 %3096 }
 0xbc4   : > { %6008 = vpow2.f32 %v3151_v20  ;;  %v3119_v59 = vsub.f32 %v7485_v17, %v3097_v52 }
 0xbc5   : > { %6010 = vpow2.f32 %v3141_v15  ;;  %v3246_v31 = vpop.permute.xlu1 %3245 }
 0xbc6   : > { %v7547_v53 = vpop.eup %6002  ;;  %v3147_v23 = vmul.f32 1.442695, %v3119_v59 }
 0xbc7   : > { %v3175_v55 = vpop.xlane.xlu0 %3174  ;;  %v3185_v41 = vsel %vm1342_vm3, %v7547_v53, 0.0 }
 0xbc8   : > { %6012 = vpow2.f32 %v3147_v23  ;;  %3186 = vadd.xlane.f32.xlu1 %v3185_v41 }
 0xbc9   : > { %6014 = vrcp.f32 %v7493_v49 }
 0xbca   : > { %v7552_v30 = vpop.eup %6004  ;;  %6016 = vrcp.f32 %v3172_v26 }
 0xbcb   : > { %6018 = vrcp.f32 %v7491_v13  ;;  %v3244_v9 = vpop.permute.xlu0 %3243  ;;  %v3179_v17 = vsel %vm1342_vm3, %v7552_v30, 0.0  ;;  %v7557_v42 = vpop.eup %6006 }
 0xbcc   : > { %6020 = vrcp.f32 %v3169_v24  ;;  %5478 = vmatprep.subr.bf16.mxu0 %v3244_v9  ;;  %3180 = vadd.xlane.f32.xlu1 %v3179_v17  ;;  %v3188_v13 = vsel %vm1342_vm3, %v7557_v42, 0.0 }
 0xbcd   : > { %5479 = vmatpush3.bf16.msra.mxu0 %v3244_v9  ;;  %6022 = vrcp.f32 %v3175_v55 }
 0xbce   : > { %v7559_v40 = vpop.eup %6008  ;;  %5480 = vmatprep.subr.bf16.mxu0 %v3246_v31  ;;  %6024 = vrcp.f32 %v3178_v19 }
 0xbcf   : > { %v3248_v49 = vpop.permute.xlu0 %3247  ;;  %v3197_v26 = vsel %vm1342_vm3, %v7559_v40, 0.0  ;;  %v7565_v5 = vpop.eup %6010 }
 0xbd0   : > { %3198 = vadd.xlane.f32.xlu0 %v3197_v26  ;;  %3189 = vadd.xlane.f32.xlu1 %v3188_v13  ;;  %v3182_v37 = vsel %vm1342_vm3, %v7565_v5, 0.0 }
 0xbd1   : > { %5481 = vmatpush3.bf16.msra.mxu0 %v3246_v31 }
 0xbd2   : > { %v7567_v24 = vpop.eup %6012  ;;  %5482 = vmatprep.subr.bf16.mxu0 %v3248_v49 }
 0xbd3   : > { %v6015_v61 = vpop.eup %6014  ;;  %v3191_v57 = vsel %vm1342_vm3, %v7567_v24, 0.0  ;;  %v3250_v54 = vpop.permute.xlu0 %3249 }
 0xbd4   : > { %v6017_v8 = vpop.eup %6016  ;;  %3192 = vadd.xlane.f32.xlu0 %v3191_v57  ;;  %3183 = vadd.xlane.f32.xlu1 %v3182_v37  ;;  %v3222_v28 = vmul.f32 %v6015_v61, %v7455_v12  ;;  %v8432_v61 = vpack.i.bf16 %v7099_v50, %v7093_v0  ;;  %v8433_v57 = vpack.i.bf16 %v7384_v32, %v7380_v36 }
 0xbd5   : > { %v6019_v48 = vpop.eup %6018  ;;  %5483 = vmatpush3.bf16.msra.mxu0 %v3248_v49  ;;  %v3224_v58 = vmul.f32 %v6017_v8, %v7500_v11 }
 0xbd6   : > { %v6021_v63 = vpop.eup %6020  ;;  %5484 = vmatprep.subr.bf16.mxu0 %v3250_v54  ;;  %v3221_v15 = vmul.f32 %v6019_v48, %v7452_v22 }
 0xbd7   : > { %v3223_v20 = vmul.f32 %v6021_v63, %v7495_v29  ;;  %v6023_v59 = vpop.eup %6022 }
 0xbd8   : > { %v3236_v52 = vpack.c.bf16 %v3222_v28, %v3221_v15  ;;  %v6025_v19 = vpop.eup %6024  ;;  %v3225_v55 = vmul.f32 %v6023_v59, %v7521_v35 }
 0xbd9   : > { %5485 = vmatpush3.bf16.msra.mxu0 %v3250_v54  ;;  %v3237_v23 = vpack.c.bf16 %v3224_v58, %v3223_v20  ;;  %v3226_v12 = vmul.f32 %v6025_v19, %v7512_v34 }
 0xbdb   : > { %v3238_v41 = vpack.c.bf16 %v3226_v12, %v3225_v55 }
 0xbdc   : > { %5487 = vmatmul.mubr.msk.bf16.vlgmr.msra.gmra.mrb[72].mxu0 %vm1342_vm3, %v3236_v52 }
 0xbdd   : > { %5490 = vmatprep.mubr.msk.bf16.mxu0 %vm1342_vm3, %v3237_v23 }
 0xbe4   : > { %5491 = vmatmul.mubr.msk.bf16.gmra.mrb[76].mxu0 %vm1342_vm3, %v3238_v41 }
 0xbf6   : > { %v3106_v11 = vpop.xlane.xlu1 %3105 }
 0xbf7   : > { %v3122_v22 = vsub.f32 %v7487_v1, %v3106_v11 }
 0xbf9   : > { %v3153_v9 = vmul.f32 1.442695, %v3122_v22 }
 0xbfa   : > { %v3100_v29 = vpop.xlane.xlu1 %3099 }
 0xbfb   : > { %6026 = vpow2.f32 %v3153_v9  ;;  %v3120_v17 = vsub.f32 %v7489_v47, %v3100_v29  ;;  %v8431_v47 = vpack.i.bf16 %v7095_v18, %v7091_v45 }
 0xbfd   : > { %v3149_v31 = vmul.f32 1.442695, %v3120_v17 }
 0xbfe   : > { %v3333_v49 = vpop.permute.xlu1 %3332 }
 0xbff   : > { %6028 = vpow2.f32 %v3149_v31  ;;  %5494 = vmatprep.subr.bf16.mxu1 %v3333_v49 }
 0xc00   : > { %5495 = vmatpush3.bf16.msra.mxu1 %v3333_v49 }
 0xc02   : > { %v3335_v26 = vpop.permute.xlu1 %3334 }
 0xc03   : > { %5496 = vmatprep.subr.bf16.mxu1 %v3335_v26 }
 0xc04   : > { %5497 = vmatpush3.bf16.msra.mxu1 %v3335_v26 }
 0xc05   : > { %v6027_v34 = vpop.eup %6026 }
 0xc06   : > { %v3200_v35 = vsel %vm1342_vm3, %v6027_v34, 0.0 }
 0xc07   : > { %3201 = vadd.xlane.f32.xlu0 %v3200_v35  ;;  %v8435_v35 = vpack.i.bf16 %v7121_v62, %v7116_v39  ;;  %v8439_v39 = vpack.i.bf16 %v7162_v27, %v7158_v44  ;;  %v8441_v62 = vpack.i.bf16 %v7438_v25, %v7434_v7  ;;  %v8446_v27 = vld [vmem:[#allocation25_spill] sm:$0xff] }
 0xc09   : > { %v6029_v13 = vpop.eup %6028 }
 0xc0a   : > { %v3194_v1 = vsel %vm1342_vm3, %v6029_v13, 0.0 }
 0xc0b   : > { %3195 = vadd.xlane.f32.xlu1 %v3194_v1  ;;  %v8436_v1 = vpack.i.bf16 %v7125_v60, %v7118_v33  ;;  %v8440_v33 = vpack.i.bf16 %v7166_v14, %v7160_v16  ;;  %v8442_v60 = vpack.i.bf16 %v7442_v21, %v7436_v56 }
 0xc1c   : > { %3338 = vrot.lane.b32.xlu1 %v6647_v4, %s6170_s2  ;;  %v8434_v4 = vpack.i.bf16 %v7388_v43, %v7382_v3 }
 0xc1d   : > { %3336 = vrot.lane.b32.xlu0 %v6650_v6, %s6170_s2  ;;  %v5782_v6 = vld [vmem:[%s6265_s23 + $0x30] sm:$0xff]  }
 0xc1e   : > { %5510 = vmatprep.subr.bf16.mxu0 %v5782_v6 }
 0xc1f   : > { %5511 = vmatpush3.bf16.msra.mxu0 %v5782_v6  ;;  %v8438_v6 = vpack.i.bf16 %v7416_v2, %v7408_v51  ;;  %v8444_v51 = vld [vmem:[#allocation22_spill] sm:$0xff] }
 0xc20   : > { %5662 = vrot.lane.b32.xlu1 %v8431_v47, %s6171_s3 }
 0xc21   : > { %5657 = vrot.lane.b32.xlu0 %v8432_v61, %s6171_s3 }
 0xc24   : > { %5672 = vrot.lane.b32.xlu1 %v8433_v57, %s6172_s4 }
 0xc25   : > { %5667 = vrot.lane.b32.xlu0 %v8434_v4, %s6172_s4  ;;  %v8437_v4 = vpack.i.bf16 %v7412_v10, %v7406_v46  ;;  %v8443_v46 = vld [vmem:[#allocation24_spill] sm:$0xff]  ;;  %v8447_v10 = vld [vmem:[#allocation23_spill] sm:$0xff] }
 0xc26   : > { %v8445_v44 = vpack.i.bf16 %v8443_v46, %v8444_v51  ;;  %v8448_v16 = vpack.i.bf16 %v8446_v27, %v8447_v10 }
 0xc55   : > { %v3187_v45 = vpop.xlane.xlu1 %3186 }
 0xc59   : > { %v3181_v18 = vpop.xlane.xlu1 %3180 }
 0xc5a   : > { %6030 = vrcp.f32 %v3181_v18 }
 0xc5d   : > { %v3190_v37 = vpop.xlane.xlu1 %3189  ;;  %v3199_v3 = vpop.xlane.xlu0 %3198 }
 0xc61   : > { %v3184_v0 = vpop.xlane.xlu1 %3183  ;;  %v3193_v43 = vpop.xlane.xlu0 %3192 }
 0xc62   : > { %6032 = vrcp.f32 %v3184_v0 }
 0xc63   : > { %6034 = vrcp.f32 %v3190_v37 }
 0xc64   : > { %v6031_v50 = vpop.eup %6030  ;;  %6036 = vrcp.f32 %v3187_v45 }
 0xc65   : > { %v3227_v48 = vmul.f32 %v6031_v50, %v7552_v30 }
 0xc6c   : > { %v6033_v8 = vpop.eup %6032 }
 0xc6d   : > { %v3228_v36 = vmul.f32 %v6033_v8, %v7565_v5  ;;  %v6035_v63 = vpop.eup %6034 }
 0xc6e   : > { %v6037_v15 = vpop.eup %6036  ;;  %v3230_v30 = vmul.f32 %v6035_v63, %v7557_v42 }
 0xc6f   : > { %v3239_v32 = vpack.c.bf16 %v3228_v36, %v3227_v48  ;;  %v3229_v20 = vmul.f32 %v6037_v15, %v7547_v53  ;;  %v5783_v53 = vld [vmem:[%s6265_s23 + $0x38] sm:$0xff]   ;;  %v8449_v48 = vld [vmem:[#allocation9_spill] sm:$0xff] }
 0xc70   : > { %5512 = vmatprep.subr.bf16.mxu0 %v5783_v53 }
 0xc71   : > { %5502 = vmatprep.mubr.msk.bf16.mxu1 %vm1342_vm3, %v3239_v32  ;;  %v3240_v52 = vpack.c.bf16 %v3230_v30, %v3229_v20  ;;  %5513 = vmatpush3.bf16.msra.mxu0 %v5783_v53  ;;  %v8450_v32 = vld [vmem:[#allocation7_spill] sm:$0xff] }
 0xc94   : > { %v3202_v54 = vpop.xlane.xlu0 %3201 }
 0xc95   : > { %6038 = vrcp.f32 %v3202_v54  ;;  %v8451_v54 = vld [vmem:[#allocation8_spill] sm:$0xff] }
 0xc96   : > { %6040 = vrcp.f32 %v3193_v43 }
 0xc97   : > { %6042 = vrcp.f32 %v3199_v3 }
 0xc98   : > { %v3337_v28 = vpop.permute.xlu0 %3336  ;;  %v3196_v58 = vpop.xlane.xlu1 %3195 }
 0xc99   : > { %6044 = vrcp.f32 %v3196_v58  ;;  %5498 = vmatprep.subr.bf16.mxu1 %v3337_v28 }
 0xc9a   : > { %5499 = vmatpush3.bf16.msra.mxu1 %v3337_v28  ;;  %v8452_v28 = vld [vmem:[#allocation6_spill] sm:$0xff] }
 0xc9c   : > { %v3339_v5 = vpop.permute.xlu1 %3338  ;;  %v5658_v2 = vpop.permute.xlu0 %5657 }
 0xc9d   : > { %5500 = vmatprep.subr.bf16.mxu1 %v3339_v5  ;;  %v5660_v7 = vunpack.i.h.bf16 %v5658_v2  ;;  %v5659_v25 = vunpack.i.l.bf16 %v5658_v2 }
 0xc9e   : > { %5501 = vmatpush3.bf16.msra.mxu1 %v3339_v5 }
 0xc9f   : > { %v6039_v59 = vpop.eup %6038  ;;  %v3614_v36 = vsel %vm1163_vm2, %v8449_v48, %v5660_v7  ;;  %v3613_v3 = vsel %vm1163_vm2, %v8450_v32, %v5659_v25 }
 0xca0   : > { %v6041_v23 = vpop.eup %6040  ;;  %v3234_v12 = vmul.f32 %v6039_v59, %v6027_v34  ;;  %v5663_v14 = vpop.permute.xlu1 %5662 }
 0xca1   : > { %5503 = vmatmul.mubr.msk.bf16.vlgmr.msra.gmra.mrb[88].mxu1 %vm1342_vm3, %v3240_v52  ;;  %v6043_v19 = vpop.eup %6042  ;;  %v3231_v41 = vmul.f32 %v6041_v23, %v7567_v24  ;;  %v5668_v18 = vpop.permute.xlu0 %5667  ;;  %v5665_v37 = vunpack.i.h.bf16 %v5663_v14  ;;  %v5664_v0 = vunpack.i.l.bf16 %v5663_v14 }
 0xca2   : > { %v3233_v22 = vmul.f32 %v6043_v19, %v7559_v40  ;;  %v5670_v50 = vunpack.i.h.bf16 %v5668_v18  ;;  %v5669_v8 = vunpack.i.l.bf16 %v5668_v18 }
 0xca3   : > { %v6045_v55 = vpop.eup %6044  ;;  %v3616_v63 = vsel %vm1163_vm2, %v8451_v54, %v5665_v37  ;;  %v3615_v58 = vsel %vm1163_vm2, %v8452_v28, %v5664_v0  ;;  %v8459_v28 = vld [vmem:[#allocation28_spill] sm:$0xff] }
 0xca4   : > { %v3232_v11 = vmul.f32 %v6045_v55, %v6029_v13  ;;  %v3242_v9 = vpack.c.bf16 %v3234_v12, %v3233_v22  ;;  %v5673_v45 = vpop.permute.xlu1 %5672  ;;  %v3630_v19 = vsel %vm3629_vm4, %v3613_v3, %v5669_v8  ;;  %v3631_v55 = vsel %vm3629_vm4, %v3614_v36, %v5670_v50 }
 0xca5   : > { %v5675_v56 = vunpack.i.h.bf16 %v5673_v45  ;;  %v5674_v21 = vunpack.i.l.bf16 %v5673_v45 }
 0xca6   : > { %v3241_v42 = vpack.c.bf16 %v3232_v11, %v3231_v41 }
 0xca7   : > { %v3632_v20 = vsel %vm3629_vm4, %v3615_v58, %v5674_v21  ;;  %v3633_v52 = vsel %vm3629_vm4, %v3616_v63, %v5675_v56  ;;  %v8460_v58 = vld [vmem:[#allocation27_spill] sm:$0xff] }
 0xca8   : > { %5506 = vmatprep.mubr.msk.bf16.mxu1 %vm1342_vm3, %v3241_v42 }
 0xca9   : > { %5507 = vmatmul.mubr.msk.bf16.gmra.mrb[92].mxu1 %vm1342_vm3, %v3242_v9 }
 0xcaf   : > { %v5488_v29 = vpop.f32.mrb[72].mxu0 }
 0xcb0   : > { %v3301_v17 = vpop.f32.mrb[73].mxu0 }
 0xcb1   : > { %v5489_v31 = vpop.f32.mrb[74].mxu0 }
 0xcb2   : > { %v5681_v49 = vpack.i.bf16 %v5489_v31, %v5488_v29  ;;  %v3304_v26 = vpop.f32.mrb[75].mxu0 }
 0xcb3   : > { %v5676_v34 = vpack.i.bf16 %v3304_v26, %v3301_v17 }
 0xcb4   : > { %5682 = vrot.lane.b32.xlu1 %v5681_v49, %s6173_s30 }
 0xcb5   : > { %5677 = vrot.lane.b32.xlu0 %v5676_v34, %s6173_s30 }
 0xcb7   : > { %v5492_v40 = vpop.f32.mrb[76].mxu0 }
 0xcb8   : > { %v3317_v24 = vpop.f32.mrb[77].mxu0  ;;  %5692 = vrot.lane.b32.xlu1 %v8435_v35, %s6171_s3 }
 0xcb9   : > { %v5493_v13 = vpop.f32.mrb[78].mxu0  ;;  %5687 = vrot.lane.b32.xlu0 %v8436_v1, %s6171_s3 }
 0xcba   : > { %v5711_v47 = vpack.i.bf16 %v5493_v13, %v5492_v40  ;;  %v3320_v61 = vpop.f32.mrb[79].mxu0 }
 0xcbb   : > { %v5706_v57 = vpack.i.bf16 %v3320_v61, %v3317_v24 }
 0xcbc   : > { %5702 = vrot.lane.b32.xlu1 %v8437_v4, %s6172_s4 }
 0xcbd   : > { %5697 = vrot.lane.b32.xlu0 %v8438_v6, %s6172_s4 }
 0xcc0   : > { %5712 = vrot.lane.b32.xlu1 %v5711_v47, %s6173_s30  ;;  %v8453_v47 = vld [vmem:[#allocation12_spill] sm:$0xff] }
 0xcc1   : > { %5707 = vrot.lane.b32.xlu0 %v5706_v57, %s6173_s30  ;;  %v8454_v57 = vld [vmem:[#allocation10_spill] sm:$0xff] }
 0xcc4   : > { %5722 = vrot.lane.b32.xlu1 %v8439_v39, %s6171_s3  ;;  %v8455_v39 = vld [vmem:[#allocation13_spill] sm:$0xff] }
 0xcc5   : > { %5717 = vrot.lane.b32.xlu0 %v8440_v33, %s6171_s3 }
 0xcc8   : > { %5732 = vrot.lane.b32.xlu1 %v8441_v62, %s6172_s4  ;;  %v8456_v62 = vld [vmem:[#allocation11_spill] sm:$0xff] }
 0xcc9   : > { %5727 = vrot.lane.b32.xlu0 %v8442_v60, %s6172_s4 }
 0xccc   : > { %5742 = vrot.lane.b32.xlu1 %v8445_v44, %s6171_s3 }
 0xccd   : > { %5737 = vrot.lane.b32.xlu0 %v8448_v16, %s6171_s3 }
 0xd26   : > { %v5683_v43 = vpop.permute.xlu1 %5682 }
 0xd27   : > { %v5685_v15 = vunpack.i.h.bf16 %v5683_v43  ;;  %v5684_v30 = vunpack.i.l.bf16 %v5683_v43  ;;  %v5678_v5 = vpop.permute.xlu0 %5677  ;;  %v8457_v43 = vld [vmem:[#allocation26_spill] sm:$0xff] }
 0xd28   : > { %v5680_v59 = vunpack.i.h.bf16 %v5678_v5  ;;  %v5679_v23 = vunpack.i.l.bf16 %v5678_v5  ;;  %v8458_v54 = vpack.i.bf16 %v7467_v38, %v8457_v43 }
 0xd29   : > { %v3649_v12 = vsel %vm3646_vm5, %v3632_v20, %v5684_v30  ;;  %v3650_v41 = vsel %vm3646_vm5, %v3633_v52, %v5685_v15  ;;  %v8461_v15 = vpack.i.bf16 %v8459_v28, %v8460_v58 }
 0xd2a   : > { %v3664_v11 = vpack.c.bf16 %v3650_v41, %v3649_v12  ;;  %v3647_v22 = vsel %vm3646_vm5, %v3630_v19, %v5679_v23  ;;  %v3648_v42 = vsel %vm3646_vm5, %v3631_v55, %v5680_v59  ;;  %v5693_v9 = vpop.permute.xlu1 %5692 }
 0xd2b   : > { %v3663_v53 = vpack.c.bf16 %v3648_v42, %v3647_v22  ;;  %v5688_v29 = vpop.permute.xlu0 %5687  ;;  %v5695_v17 = vunpack.i.h.bf16 %v5693_v9  ;;  %v5694_v31 = vunpack.i.l.bf16 %v5693_v9 }
 0xd2c   : > { %v5690_v26 = vunpack.i.h.bf16 %v5688_v29  ;;  %v5689_v34 = vunpack.i.l.bf16 %v5688_v29 }
 0xd2d   : > { %5514 = vmatprep.mubr.msk.bf16.mxu0 %vm727_vm1, %v3663_v53  ;;  %v3620_v61 = vsel %vm1163_vm2, %v8453_v47, %v5695_v17  ;;  %v3619_v4 = vsel %vm1163_vm2, %v8454_v57, %v5694_v31  ;;  %v8462_v31 = vld [vmem:[#allocation16_spill] sm:$0xff] }
 0xd2e   : > { %v5703_v49 = vpop.permute.xlu1 %5702  ;;  %5515 = vmatmul.mubr.msk.bf16.vlgmr.msra.gmra.mrb[80].mxu0 %vm727_vm1, %v3664_v11  ;;  %v3618_v33 = vsel %vm1163_vm2, %v8455_v39, %v5690_v26  ;;  %v3617_v60 = vsel %vm1163_vm2, %v8456_v62, %v5689_v34  ;;  %v8463_v26 = vld [vmem:[#allocation14_spill] sm:$0xff] }
 0xd2f   : > { %v5698_v40 = vpop.permute.xlu0 %5697  ;;  %v5705_v24 = vunpack.i.h.bf16 %v5703_v49  ;;  %v5704_v35 = vunpack.i.l.bf16 %v5703_v49 }
 0xd30   : > { %v5700_v13 = vunpack.i.h.bf16 %v5698_v40  ;;  %v5699_v1 = vunpack.i.l.bf16 %v5698_v40  ;;  %v8464_v40 = vld [vmem:[#allocation17_spill] sm:$0xff] }
 0xd31   : > { %v3636_v27 = vsel %vm3629_vm4, %v3619_v4, %v5704_v35  ;;  %v3637_v10 = vsel %vm3629_vm4, %v3620_v61, %v5705_v24 }
 0xd32   : > { %v5713_v6 = vpop.permute.xlu1 %5712  ;;  %v3634_v2 = vsel %vm3629_vm4, %v3617_v60, %v5699_v1  ;;  %v3635_v45 = vsel %vm3629_vm4, %v3618_v33, %v5700_v13  ;;  %v8465_v13 = vld [vmem:[#allocation15_spill] sm:$0xff] }
 0xd33   : > { %v5715_v46 = vunpack.i.h.bf16 %v5713_v6  ;;  %v5714_v51 = vunpack.i.l.bf16 %v5713_v6  ;;  %v5708_v44 = vpop.permute.xlu0 %5707 }
 0xd34   : > { %v5710_v16 = vunpack.i.h.bf16 %v5708_v44  ;;  %v5709_v14 = vunpack.i.l.bf16 %v5708_v44 }
 0xd35   : > { %v3653_v7 = vsel %vm3646_vm5, %v3636_v27, %v5714_v51  ;;  %v3654_v25 = vsel %vm3646_vm5, %v3637_v10, %v5715_v46 }
 0xd36   : > { %v3666_v18 = vpack.c.bf16 %v3654_v25, %v3653_v7  ;;  %v3651_v37 = vsel %vm3646_vm5, %v3634_v2, %v5709_v14  ;;  %v3652_v0 = vsel %vm3646_vm5, %v3635_v45, %v5710_v16  ;;  %v5723_v59 = vpop.permute.xlu1 %5722 }
 0xd37   : > { %v3665_v56 = vpack.c.bf16 %v3652_v0, %v3651_v37  ;;  %v5718_v23 = vpop.permute.xlu0 %5717  ;;  %v5725_v38 = vunpack.i.h.bf16 %v5723_v59  ;;  %v5724_v12 = vunpack.i.l.bf16 %v5723_v59 }
 0xd38   : > { %v5720_v41 = vunpack.i.h.bf16 %v5718_v23  ;;  %v5719_v22 = vunpack.i.l.bf16 %v5718_v23 }
 0xd39   : > { %5518 = vmatprep.mubr.msk.bf16.mxu0 %vm727_vm1, %v3665_v56  ;;  %v3624_v49 = vsel %vm1163_vm2, %v8462_v31, %v5725_v38  ;;  %v3623_v34 = vsel %vm1163_vm2, %v8463_v26, %v5724_v12 }
 0xd3a   : > { %5519 = vmatmul.mubr.msk.bf16.gmra.mrb[84].mxu0 %vm727_vm1, %v3666_v18  ;;  %v5733_v19 = vpop.permute.xlu1 %5732  ;;  %v3622_v24 = vsel %vm1163_vm2, %v8464_v40, %v5720_v41  ;;  %v3621_v1 = vsel %vm1163_vm2, %v8465_v13, %v5719_v22  ;;  %v8470_v22 = vld [vmem:[#allocation5_spill] sm:$0xff]  ;;  %v6112_v13 = vld [vmem:[%s6310_s21 + $0x10] sm:$0xff] }
 0xd3b   : > { %v5728_v55 = vpop.permute.xlu0 %5727  ;;  %v5734_v42 = vunpack.i.l.bf16 %v5733_v19  ;;  %v5735_v53 = vunpack.i.h.bf16 %v5733_v19  ;;  %v6111_v40 = vld [vmem:[%s6310_s21] sm:$0xff] }
 0xd3c   : > { %v5729_v29 = vunpack.i.l.bf16 %v5728_v55  ;;  %v5730_v17 = vunpack.i.h.bf16 %v5728_v55 }
 0xd3d   : > { %v3640_v47 = vsel %vm3629_vm4, %v3623_v34, %v5734_v42  ;;  %v3641_v6 = vsel %vm3629_vm4, %v3624_v49, %v5735_v53  ;;  %v3673_v42 = vsub.s32 3, %v8470_v22 }
 0xd3e   : > { %v5743_v11 = vpop.permute.xlu1 %5742  ;;  %v3638_v39 = vsel %vm3629_vm4, %v3621_v1, %v5729_v29  ;;  %v3639_v60 = vsel %vm3629_vm4, %v3622_v24, %v5730_v17 }
 0xd3f   : > { %v5738_v9 = vpop.permute.xlu0 %5737  ;;  %v5745_v46 = vunpack.i.h.bf16 %v5743_v11  ;;  %v5744_v27 = vunpack.i.l.bf16 %v5743_v11 }
 0xd40   : > { %v5740_v45 = vunpack.i.h.bf16 %v5738_v9  ;;  %v5739_v7 = vunpack.i.l.bf16 %v5738_v9  ;;  %v7748_v9 = vld [vmem:[%s6301_s10] sm:$0xff] }
 0xd41   : > { %v7751_v53 = vrot.slane %v7748_v9, %v3673_v42 }
 0xd74   : > { %v5504_v21 = vpop.f32.mrb[88].mxu1 }
 0xd75   : > { %v3390_v50 = vpop.f32.mrb[89].mxu1 }
 0xd76   : > { %v5505_v8 = vpop.f32.mrb[90].mxu1 }
 0xd77   : > { %v5746_v48 = vpack.i.bf16 %v5505_v8, %v5504_v21  ;;  %v3393_v36 = vpop.f32.mrb[91].mxu1 }
 0xd78   : > { %v5751_v32 = vpack.i.bf16 %v3393_v36, %v3390_v50  ;;  %v8466_v50 = vld [vmem:[#allocation20_spill] sm:$0xff] }
 0xd79   : > { %5747 = vrot.lane.b32.xlu1 %v5746_v48, %s6173_s30  ;;  %v3628_v8 = vsel %vm1163_vm2, %v8466_v50, %v5745_v46  ;;  %v8467_v48 = vld [vmem:[#allocation18_spill] sm:$0xff] }
 0xd7a   : > { %5752 = vrot.lane.b32.xlu0 %v5751_v32, %s6173_s30  ;;  %v3627_v36 = vsel %vm1163_vm2, %v8467_v48, %v5744_v27 }
 0xd7c   : > { %v5508_v3 = vpop.f32.mrb[92].mxu1 }
 0xd7d   : > { %5762 = vrot.lane.b32.xlu1 %v8458_v54, %s6172_s4  ;;  %v3406_v63 = vpop.f32.mrb[93].mxu1  ;;  %v8469_v54 = vld [vmem:[#allocation19_spill] sm:$0xff] }
 0xd7e   : > { %5757 = vrot.lane.b32.xlu0 %v8461_v15, %s6172_s4  ;;  %v5509_v30 = vpop.f32.mrb[94].mxu1 }
 0xd7f   : > { %v5771_v5 = vpack.i.bf16 %v5509_v30, %v5508_v3  ;;  %v3409_v20 = vpop.f32.mrb[95].mxu1  ;;  %v8468_v3 = vld [vmem:[#allocation21_spill] sm:$0xff] }
 0xd80   : > { %v5766_v52 = vpack.i.bf16 %v3409_v20, %v3406_v63  ;;  %v3626_v43 = vsel %vm1163_vm2, %v8468_v3, %v5740_v45  ;;  %v3625_v63 = vsel %vm1163_vm2, %v8469_v54, %v5739_v7 }
 0xd81   : > { %5772 = vrot.lane.b32.xlu1 %v5771_v5, %s6173_s30 }
 0xd82   : > { %5767 = vrot.lane.b32.xlu0 %v5766_v52, %s6173_s30 }
 0xdeb   : > { %v5748_v35 = vpop.permute.xlu1 %5747 }
 0xdec   : > { %v5750_v61 = vunpack.i.h.bf16 %v5748_v35  ;;  %v5749_v57 = vunpack.i.l.bf16 %v5748_v35  ;;  %v5753_v4 = vpop.permute.xlu0 %5752 }
 0xded   : > { %v5755_v33 = vunpack.i.h.bf16 %v5753_v4  ;;  %v5754_v62 = vunpack.i.l.bf16 %v5753_v4 }
 0xdee   : > { %v3657_v51 = vsel %vm3646_vm5, %v3640_v47, %v5749_v57  ;;  %v3658_v44 = vsel %vm3646_vm5, %v3641_v6, %v5750_v61  ;;  %v6113_v61 = vld [vmem:[%s6310_s21 + $0x8] sm:$0xff] }
 0xdef   : > { %v3668_v10 = vpack.c.bf16 %v3658_v44, %v3657_v51  ;;  %v3656_v16 = vsel %vm3646_vm5, %v3639_v60, %v5755_v33  ;;  %v3655_v14 = vsel %vm3646_vm5, %v3638_v39, %v5754_v62  ;;  %v5763_v2 = vpop.permute.xlu1 %5762  ;;  %v6114_v39 = vld [vmem:[%s6310_s21 + $0x18] sm:$0xff] }
 0xdf0   : > { %v3667_v25 = vpack.c.bf16 %v3656_v16, %v3655_v14  ;;  %v5758_v18 = vpop.permute.xlu0 %5757  ;;  %v5765_v37 = vunpack.i.h.bf16 %v5763_v2  ;;  %v5764_v0 = vunpack.i.l.bf16 %v5763_v2  ;;  %v6115_v14 = vld [vmem:[%s6310_s21 + $0x20] sm:$0xff] }
 0xdf1   : > { %v5760_v56 = vunpack.i.h.bf16 %v5758_v18  ;;  %v5759_v21 = vunpack.i.l.bf16 %v5758_v18 }
 0xdf2   : > { %5522 = vmatprep.mubr.msk.bf16.mxu0 %vm727_vm1, %v3667_v25  ;;  %v3644_v30 = vsel %vm3629_vm4, %v3627_v36, %v5764_v0  ;;  %v3645_v5 = vsel %vm3629_vm4, %v3628_v8, %v5765_v37  ;;  %v6116_v25 = vld [vmem:[%s6310_s21 + $0x30] sm:$0xff]  ;;  %v6117_v37 = vld [vmem:[%s6310_s21 + $0x28] sm:$0xff] }
 0xdf3   : > { %v5773_v32 = vpop.permute.xlu1 %5772  ;;  %5523 = vmatmul.mubr.msk.bf16.gmra.mrb[88].mxu0 %vm727_vm1, %v3668_v10  ;;  %v3643_v59 = vsel %vm3629_vm4, %v3626_v43, %v5760_v56  ;;  %v3642_v23 = vsel %vm3629_vm4, %v3625_v63, %v5759_v21  ;;  %v6118_v21 = vld [vmem:[%s6310_s21 + $0x38] sm:$0xff] }
 0xdf4   : > { %v5775_v28 = vunpack.i.h.bf16 %v5773_v32  ;;  %v5774_v58 = vunpack.i.l.bf16 %v5773_v32  ;;  %v5768_v15 = vpop.permute.xlu0 %5767 }
 0xdf5   : > { %v5770_v20 = vunpack.i.h.bf16 %v5768_v15  ;;  %v5769_v52 = vunpack.i.l.bf16 %v5768_v15 }
 0xdf6   : > { %v3661_v19 = vsel %vm3646_vm5, %v3644_v30, %v5774_v58  ;;  %v3662_v55 = vsel %vm3646_vm5, %v3645_v5, %v5775_v28  ;;  %v6119_v30 = vld [vmem:[%s6310_s21 + $0x40] sm:$0xff] }
 0xdf7   : > { %v3670_v38 = vpack.c.bf16 %v3662_v55, %v3661_v19  ;;  %v3660_v12 = vsel %vm3646_vm5, %v3643_v59, %v5770_v20  ;;  %v3659_v41 = vsel %vm3646_vm5, %v3642_v23, %v5769_v52  ;;  %v6120_v59 = vld [vmem:[%s6310_s21 + $0x50] sm:$0xff]  ;;  %v6121_v19 = vld [vmem:[%s6310_s21 + $0x48] sm:$0xff] }
 0xdf8   : > { %v3669_v11 = vpack.c.bf16 %v3660_v12, %v3659_v41 }
 0xdfa   : > { %5526 = vmatprep.mubr.msk.bf16.mxu0 %vm727_vm1, %v3669_v11  ;;  %v6122_v11 = vld [vmem:[%s6310_s21 + $0x58] sm:$0xff] }
 0xdfb   : > { %5527 = vmatmul.mubr.msk.bf16.gmra.mrb[92].mxu0 %vm727_vm1, %v3670_v38 }
 0xe01   : > { %v5516_v29 = vpop.f32.mrb[80].mxu0 }
 0xe02   : > { %v3745_v17 = vpop.f32.mrb[81].mxu0  ;;  %v3754_v31 = vadd.f32 %v5516_v29, %v7751_v53 }
 0xe03   : > { %v3746_v49 = vadd.f32 %v3745_v17, %v7751_v53  ;;  %v5517_v26 = vpop.f32.mrb[82].mxu0 }
 0xe04   : > { %v3748_v34 = vpop.f32.mrb[83].mxu0  ;;  %v7760_v1 = vadd.f32 %v6112_v13, %v3754_v31  ;;  %v3757_v47 = vadd.f32 %v5517_v26, %v7751_v53 }
 0xe05   : > { %v7756_v24 = vadd.f32 %v6111_v40, %v3746_v49  ;;  %v3749_v35 = vadd.f32 %v3748_v34, %v7751_v53 }
 0xe06   : > { %v7771_v33 = vadd.f32 %v6114_v39, %v3757_v47  ;;  %v3830_v62 = vsel %vm727_vm1, %v7760_v1, 0.0 }
 0xe07   : > { %v7764_v57 = vadd.f32 %v6113_v61, %v3749_v35  ;;  %v3824_v4 = vsel %vm727_vm1, %v7756_v24, 0.0  ;;  %v6123_v61 = vld [vmem:[%s6310_s21 + $0x60] sm:$0xff] }
 0xe08   : > { %3825 = vadd.xlane.f32.xlu0 %v3824_v4  ;;  %v3833_v10 = vsel %vm727_vm1, %v7771_v33, 0.0 }
 0xe09   : > { %v3827_v6 = vsel %vm727_vm1, %v7764_v57, 0.0 }
 0xe0a   : > { %3828 = vadd.xlane.f32.xlu1 %v3827_v6 }
 0xe0c   : > { %3831 = vadd.xlane.f32.xlu0 %v3830_v62 }
 0xe0d   : > { %v5520_v60 = vpop.f32.mrb[84].mxu0 }
 0xe0e   : > { %v3761_v46 = vpop.f32.mrb[85].mxu0  ;;  %v3770_v51 = vadd.f32 %v5520_v60, %v7751_v53 }
 0xe0f   : > { %v3762_v44 = vadd.f32 %v3761_v46, %v7751_v53  ;;  %v5521_v27 = vpop.f32.mrb[86].mxu0 }
 0xe10   : > { %v3764_v16 = vpop.f32.mrb[87].mxu0  ;;  %3834 = vadd.xlane.f32.xlu0 %v3833_v10  ;;  %v3773_v45 = vadd.f32 %v5521_v27, %v7751_v53  ;;  %v7785_v18 = vadd.f32 %v6116_v25, %v3770_v51  ;;  %v6125_v10 = vld [vmem:[%s6310_s21 + $0x68] sm:$0xff] }
 0xe11   : > { %v7780_v2 = vadd.f32 %v6115_v14, %v3762_v44  ;;  %v3765_v7 = vadd.f32 %v3764_v16, %v7751_v53  ;;  %v6124_v44 = vld [vmem:[%s6310_s21 + $0x70] sm:$0xff] }
 0xe12   : > { %v7793_v50 = vadd.f32 %v6118_v21, %v3773_v45  ;;  %v3842_v48 = vsel %vm727_vm1, %v7785_v18, 0.0 }
 0xe13   : > { %v7788_v0 = vadd.f32 %v6117_v37, %v3765_v7  ;;  %v3836_v56 = vsel %vm727_vm1, %v7780_v2, 0.0 }
 0xe14   : > { %3837 = vadd.xlane.f32.xlu0 %v3836_v56  ;;  %v3845_v36 = vsel %vm727_vm1, %v7793_v50, 0.0 }
 0xe15   : > { %v3839_v8 = vsel %vm727_vm1, %v7788_v0, 0.0 }
 0xe16   : > { %3840 = vadd.xlane.f32.xlu1 %v3839_v8 }
 0xe18   : > { %3843 = vadd.xlane.f32.xlu0 %v3842_v48 }
 0xe1a   : > { %3846 = vadd.xlane.f32.xlu1 %v3845_v36 }
 0xe95   : > { %v3826_v32 = vpop.xlane.xlu0 %3825 }
 0xe96   : > { %v3873_v31 = vmul.f32 0.03125, %v3826_v32 }
 0xe97   : > { %v3829_v41 = vpop.xlane.xlu1 %3828 }
 0xe98   : > { %v3874_v13 = vmul.f32 0.03125, %v3829_v41  ;;  %v7833_v60 = vsub.f32 %v7756_v24, %v3873_v31  ;;  %v6126_v24 = vld [vmem:[%s6310_s21 + $0x78] sm:$0xff]  ;;  %v5785_v31 = vld [vmem:[%s6290_s24 + $0x8] sm:$0xff]  }
 0xe99   : > { %v3832_v43 = vpop.xlane.xlu0 %3831 }
 0xe9a   : > { %v3875_v51 = vmul.f32 0.03125, %v3832_v43  ;;  %v3905_v48 = vmul.f32 %v7833_v60, %v7833_v60 }
 0xe9c   : > { %v7852_v56 = vsub.f32 %v7760_v1, %v3875_v51 }
 0xe9d   : > { %v3835_v12 = vpop.xlane.xlu0 %3834 }
 0xe9e   : > { %v3876_v7 = vmul.f32 0.03125, %v3835_v12 }
 0xea0   : > { %v7859_v36 = vsub.f32 %v7771_v33, %v3876_v7 }
 0xea1   : > { %v3838_v46 = vpop.xlane.xlu0 %3837 }
 0xea2   : > { %v3877_v21 = vmul.f32 0.03125, %v3838_v46 }
 0xea3   : > { %v3841_v45 = vpop.xlane.xlu1 %3840 }
 0xea4   : > { %v3878_v32 = vmul.f32 0.03125, %v3841_v45 }
 0xea6   : > { %v7872_v33 = vsub.f32 %v7788_v0, %v3878_v32 }
 0xea7   : > { %v3847_v43 = vpop.xlane.xlu1 %3846 }
 0xec6   : > { %v5524_v3 = vpop.f32.mrb[88].mxu0 }
 0xec7   : > { %v3777_v54 = vpop.f32.mrb[89].mxu0  ;;  %v3786_v63 = vadd.f32 %v5524_v3, %v7751_v53 }
 0xec8   : > { %v3778_v28 = vadd.f32 %v3777_v54, %v7751_v53  ;;  %v5525_v58 = vpop.f32.mrb[90].mxu0  ;;  %v7866_v54 = vsub.f32 %v7780_v2, %v3877_v21 }
 0xec9   : > { %v3780_v15 = vpop.f32.mrb[91].mxu0  ;;  %v3789_v20 = vadd.f32 %v5525_v58, %v7751_v53  ;;  %v7809_v23 = vadd.f32 %v6120_v59, %v3786_v63  ;;  %v3907_v58 = vmul.f32 %v7852_v56, %v7852_v56 }
 0xeca   : > { %v7804_v5 = vadd.f32 %v6119_v30, %v3778_v28  ;;  %v3781_v52 = vadd.f32 %v3780_v15, %v7751_v53  ;;  %v3921_v28 = vsel %vm727_vm1, %v3905_v48, 0.0  ;;  %v3880_v15 = vmul.f32 0.03125, %v3847_v43 }
 0xecb   : > { %v7817_v42 = vadd.f32 %v6122_v11, %v3789_v20  ;;  %v3854_v35 = vsel %vm727_vm1, %v7809_v23, 0.0  ;;  %v3908_v20 = vmul.f32 %v7859_v36, %v7859_v36  ;;  %v3909_v59 = vmul.f32 %v7866_v54, %v7866_v54 }
 0xecc   : > { %v7812_v55 = vadd.f32 %v6121_v19, %v3781_v52  ;;  %v3848_v38 = vsel %vm727_vm1, %v7804_v5, 0.0  ;;  %v3927_v52 = vsel %vm727_vm1, %v3907_v58, 0.0  ;;  %v7884_v0 = vsub.f32 %v7793_v50, %v3880_v15 }
 0xecd   : > { %3849 = vadd.xlane.f32.xlu0 %v3848_v38  ;;  %v3857_v62 = vsel %vm727_vm1, %v7817_v42, 0.0  ;;  %v3930_v19 = vsel %vm727_vm1, %v3908_v20, 0.0  ;;  %v3910_v38 = vmul.f32 %v7872_v33, %v7872_v33 }
 0xece   : > { %v5528_v29 = vpop.f32.mrb[92].mxu0  ;;  %v3851_v17 = vsel %vm727_vm1, %v7812_v55, 0.0  ;;  %v3912_v11 = vmul.f32 %v7884_v0, %v7884_v0 }
 0xecf   : > { %v3793_v49 = vpop.f32.mrb[93].mxu0  ;;  %3852 = vadd.xlane.f32.xlu1 %v3851_v17  ;;  %v3802_v26 = vadd.f32 %v5528_v29, %v7751_v53  ;;  %v3936_v41 = vsel %vm727_vm1, %v3910_v38, 0.0  ;;  %v5784_v17 = vld [vmem:[%s6290_s24] sm:$0xff]  }
 0xed0   : > { %v3794_v34 = vadd.f32 %v3793_v49, %v7751_v53  ;;  %v5529_v40 = vpop.f32.mrb[94].mxu0  ;;  %v3942_v29 = vsel %vm727_vm1, %v3912_v11, 0.0  ;;  %5530 = vmatprep.subr.bf16.mxu1 %v5784_v17 }
 0xed1   : > { %v3796_v47 = vpop.f32.mrb[95].mxu0  ;;  %3855 = vadd.xlane.f32.xlu0 %v3854_v35  ;;  %v3805_v6 = vadd.f32 %v5529_v40, %v7751_v53  ;;  %v7836_v27 = vadd.f32 %v6124_v44, %v3802_v26  ;;  %5531 = vmatpush3.bf16.msra.mxu1 %v5784_v17 }
 0xed2   : > { %v7826_v4 = vadd.f32 %v6123_v61, %v3794_v34  ;;  %v3797_v39 = vadd.f32 %v3796_v47, %v7751_v53  ;;  %v7844_v53 = vsub.f32 %v7764_v57, %v3874_v13  ;;  %v3844_v57 = vpop.xlane.xlu0 %3843  ;;  %5532 = vmatprep.subr.bf16.mxu1 %v5785_v31 }
 0xed3   : > { %3858 = vadd.xlane.f32.xlu1 %v3857_v62  ;;  %v7847_v25 = vadd.f32 %v6126_v24, %v3805_v6  ;;  %v3866_v8 = vsel %vm727_vm1, %v7836_v27, 0.0  ;;  %v3879_v63 = vmul.f32 0.03125, %v3844_v57 }
 0xed4   : > { %v7839_v16 = vadd.f32 %v6125_v10, %v3797_v39  ;;  %v3860_v14 = vsel %vm727_vm1, %v7826_v4, 0.0  ;;  %v3906_v1 = vmul.f32 %v7844_v53, %v7844_v53 }
 0xed5   : > { %3861 = vadd.xlane.f32.xlu0 %v3860_v14  ;;  %v3869_v3 = vsel %vm727_vm1, %v7847_v25, 0.0  ;;  %v7878_v2 = vsub.f32 %v7785_v18, %v3879_v63  ;;  %v3933_v18 = vsel %vm727_vm1, %v3909_v59, 0.0  ;;  %5533 = vmatpush3.bf16.msra.mxu1 %v5785_v31 }
 0xed6   : > { %v3863_v37 = vsel %vm727_vm1, %v7839_v16, 0.0  ;;  %v3924_v30 = vsel %vm727_vm1, %v3906_v1, 0.0 }
 0xed7   : > { %3864 = vadd.xlane.f32.xlu1 %v3863_v37  ;;  %v3911_v12 = vmul.f32 %v7878_v2, %v7878_v2 }
 0xed9   : > { %3867 = vadd.xlane.f32.xlu0 %v3866_v8  ;;  %v3939_v50 = vsel %vm727_vm1, %v3911_v12, 0.0 }
 0xedb   : > { %3870 = vadd.xlane.f32.xlu1 %v3869_v3 }
 0xedd   : > { %3922 = vadd.xlane.f32.xlu0 %v3921_v28 }
 0xedf   : > { %3925 = vadd.xlane.f32.xlu1 %v3924_v30 }
 0xee1   : > { %3928 = vadd.xlane.f32.xlu0 %v3927_v52 }
 0xee3   : > { %3931 = vadd.xlane.f32.xlu1 %v3930_v19 }
 0xee5   : > { %3934 = vadd.xlane.f32.xlu0 %v3933_v18 }
 0xee7   : > { %3937 = vadd.xlane.f32.xlu1 %v3936_v41 }
 0xee9   : > { %3940 = vadd.xlane.f32.xlu0 %v3939_v50 }
 0xeeb   : > { %3943 = vadd.xlane.f32.xlu1 %v3942_v29 }
 0xf5a   : > { %v3850_v49 = vpop.xlane.xlu0 %3849 }
 0xf5b   : > { %v3881_v26 = vmul.f32 0.03125, %v3850_v49  ;;  %v4035_v49 = vsub.s32 4, %v8470_v22 }
 0xf5c   : > { %v3853_v34 = vpop.xlane.xlu1 %3852 }
 0xf5d   : > { %v7900_v40 = vsub.f32 %v7804_v5, %v3881_v26  ;;  %v3882_v35 = vmul.f32 0.03125, %v3853_v34 }
 0xf5e   : > { %v3856_v13 = vpop.xlane.xlu0 %3855 }
 0xf5f   : > { %v7903_v47 = vsub.f32 %v7812_v55, %v3882_v35  ;;  %v3883_v61 = vmul.f32 0.03125, %v3856_v13  ;;  %v3913_v6 = vmul.f32 %v7900_v40, %v7900_v40 }
 0xf60   : > { %v3859_v39 = vpop.xlane.xlu1 %3858 }
 0xf61   : > { %v7908_v62 = vsub.f32 %v7809_v23, %v3883_v61  ;;  %v3884_v46 = vmul.f32 0.03125, %v3859_v39  ;;  %v3945_v51 = vsel %vm727_vm1, %v3913_v6, 0.0  ;;  %v3914_v5 = vmul.f32 %v7903_v47, %v7903_v47 }
 0xf62   : > { %3946 = vadd.xlane.f32.xlu0 %v3945_v51  ;;  %v3862_v44 = vpop.xlane.xlu0 %3861  ;;  %v7949_v39 = vrot.slane %v7748_v9, %v4035_v49 }
 0xf63   : > { %v7914_v10 = vsub.f32 %v7817_v42, %v3884_v46  ;;  %v3885_v55 = vmul.f32 0.03125, %v3862_v44  ;;  %v3948_v14 = vsel %vm727_vm1, %v3914_v5, 0.0  ;;  %v3915_v45 = vmul.f32 %v7908_v62, %v7908_v62 }
 0xf64   : > { %v3865_v7 = vpop.xlane.xlu1 %3864  ;;  %3949 = vadd.xlane.f32.xlu1 %v3948_v14  ;;  %v4055_v46 = vsub.s32 5, %v8470_v22 }
 0xf65   : > { %v7920_v23 = vsub.f32 %v7826_v4, %v3885_v55  ;;  %v3886_v24 = vmul.f32 0.03125, %v3865_v7  ;;  %v3951_v37 = vsel %vm727_vm1, %v3915_v45, 0.0  ;;  %v3916_v21 = vmul.f32 %v7914_v10, %v7914_v10 }
 0xf66   : > { %3952 = vadd.xlane.f32.xlu0 %v3951_v37  ;;  %v3868_v42 = vpop.xlane.xlu0 %3867  ;;  %v7955_v37 = vrot.slane %v7748_v9, %v4055_v46 }
 0xf67   : > { %v7926_v8 = vsub.f32 %v7839_v16, %v3886_v24  ;;  %v3887_v48 = vmul.f32 0.03125, %v3868_v42  ;;  %v3954_v57 = vsel %vm727_vm1, %v3916_v21, 0.0  ;;  %v3917_v32 = vmul.f32 %v7920_v23, %v7920_v23 }
 0xf68   : > { %v3871_v3 = vpop.xlane.xlu1 %3870  ;;  %3955 = vadd.xlane.f32.xlu1 %v3954_v57 }
 0xf69   : > { %v7932_v4 = vsub.f32 %v7836_v27, %v3887_v48  ;;  %v3888_v1 = vmul.f32 0.03125, %v3871_v3  ;;  %v3957_v43 = vsel %vm727_vm1, %v3917_v32, 0.0  ;;  %v3918_v63 = vmul.f32 %v7926_v8, %v7926_v8 }
 0xf6a   : > { %3958 = vadd.xlane.f32.xlu0 %v3957_v43  ;;  %v3923_v16 = vpop.xlane.xlu0 %3922 }
 0xf6b   : > { %v7938_v28 = vsub.f32 %v7847_v25, %v3888_v1  ;;  %v3969_v58 = vmul.f32 0.03125, %v3923_v16  ;;  %v3960_v15 = vsel %vm727_vm1, %v3918_v63, 0.0  ;;  %v3919_v30 = vmul.f32 %v7932_v4, %v7932_v4 }
 0xf6c   : > { %v3926_v20 = vpop.xlane.xlu1 %3925  ;;  %3961 = vadd.xlane.f32.xlu1 %v3960_v15 }
 0xf6d   : > { %v3985_v27 = vadd.f32 1e-05, %v3969_v58  ;;  %v3970_v52 = vmul.f32 0.03125, %v3926_v20  ;;  %v3963_v59 = vsel %vm727_vm1, %v3919_v30, 0.0  ;;  %v3920_v19 = vmul.f32 %v7938_v28, %v7938_v28 }
 0xf6e   : > { %3964 = vadd.xlane.f32.xlu0 %v3963_v59  ;;  %v3929_v38 = vpop.xlane.xlu0 %3928 }
 0xf6f   : > { %6046 = vrsqrt.f32 %v3985_v27  ;;  %v3986_v25 = vadd.f32 1e-05, %v3970_v52  ;;  %v3971_v18 = vmul.f32 0.03125, %v3929_v38  ;;  %v3966_v12 = vsel %vm727_vm1, %v3920_v19, 0.0 }
 0xf70   : > { %3967 = vadd.xlane.f32.xlu1 %v3966_v12  ;;  %v3932_v41 = vpop.xlane.xlu1 %3931 }
 0xf71   : > { %6048 = vrsqrt.f32 %v3986_v25  ;;  %v3987_v11 = vadd.f32 1e-05, %v3971_v18  ;;  %v3972_v50 = vmul.f32 0.03125, %v3932_v41 }
 0xf72   : > { %v3935_v29 = vpop.xlane.xlu0 %3934 }
 0xf73   : > { %6050 = vrsqrt.f32 %v3987_v11  ;;  %v3988_v17 = vadd.f32 1e-05, %v3972_v50  ;;  %v3973_v31 = vmul.f32 0.03125, %v3935_v29  ;;  %v5786_v50 = vld [vmem:[%s6296_s28] sm:$0xff]   ;;  %v5787_v29 = vld [vmem:[%s6296_s28 + $0x8] sm:$0xff]  }
 0xf74   : > { %v3938_v26 = vpop.xlane.xlu1 %3937  ;;  %5550 = vmatprep.subr.bf16.mxu0 %v5786_v50 }
 0xf75   : > { %6052 = vrsqrt.f32 %v3988_v17  ;;  %v3989_v34 = vadd.f32 1e-05, %v3973_v31  ;;  %v3974_v35 = vmul.f32 0.03125, %v3938_v26  ;;  %5551 = vmatpush3.bf16.msra.mxu0 %v5786_v50  ;;  %v5788_v17 = vld [vmem:[%s6296_s28 + $0x10] sm:$0xff]   ;;  %v5789_v31 = vld [vmem:[%s6296_s28 + $0x18] sm:$0xff]  }
 0xf76   : > { %v3941_v13 = vpop.xlane.xlu0 %3940  ;;  %5552 = vmatprep.subr.bf16.mxu0 %v5787_v29 }
 0xf77   : > { %6054 = vrsqrt.f32 %v3989_v34  ;;  %v3990_v61 = vadd.f32 1e-05, %v3974_v35  ;;  %v3975_v6 = vmul.f32 0.03125, %v3941_v13 }
 0xf78   : > { %v3944_v51 = vpop.xlane.xlu1 %3943 }
 0xf79   : > { %v6047_v5 = vpop.eup %6046  ;;  %6056 = vrsqrt.f32 %v3990_v61  ;;  %v3991_v44 = vadd.f32 1e-05, %v3975_v6  ;;  %v3976_v55 = vmul.f32 0.03125, %v3944_v51  ;;  %5553 = vmatpush3.bf16.msra.mxu0 %v5787_v29 }
 0xf7a   : > { %v4017_v14 = vmul.f32 %v6047_v5, %v7833_v60  ;;  %5554 = vmatprep.subr.bf16.mxu0 %v5788_v17 }
 0xf7b   : > { %v6049_v45 = vpop.eup %6048  ;;  %6058 = vrsqrt.f32 %v3991_v44  ;;  %v3992_v7 = vadd.f32 1e-05, %v3976_v55 }
 0xf7c   : > { %v4018_v24 = vmul.f32 %v6049_v45, %v7844_v53  ;;  %v4037_v21 = vmul.f32 %v7949_v39, %v4017_v14 }
 0xf7d   : > { %v6051_v42 = vpop.eup %6050  ;;  %6060 = vrsqrt.f32 %v3992_v7  ;;  %5555 = vmatpush3.bf16.msra.mxu0 %v5788_v17 }
 0xf7e   : > { %v4019_v48 = vmul.f32 %v6051_v42, %v7852_v56  ;;  %v4038_v57 = vmul.f32 %v7949_v39, %v4018_v24  ;;  %v7963_v1 = vadd.f32 %v7955_v37, %v4037_v21  ;;  %5556 = vmatprep.subr.bf16.mxu0 %v5789_v31 }
 0xf7f   : > { %v6053_v32 = vpop.eup %6052 }
 0xf80   : > { %v4039_v3 = vmul.f32 %v7949_v39, %v4019_v48  ;;  %v4020_v60 = vmul.f32 %v6053_v32, %v7859_v36  ;;  %v7966_v53 = vadd.f32 %v7955_v37, %v4038_v57 }
 0xf81   : > { %v6055_v43 = vpop.eup %6054  ;;  %5557 = vmatpush3.bf16.msra.mxu0 %v5789_v31 }
 0xf82   : > { %v4040_v63 = vmul.f32 %v7949_v39, %v4020_v60  ;;  %v4021_v16 = vmul.f32 %v6055_v43, %v7866_v54  ;;  %v4073_v56 = vpack.c.bf16 %v7966_v53, %v7963_v1  ;;  %v7973_v15 = vadd.f32 %v7955_v37, %v4039_v3 }
 0xf83   : > { %v6057_v58 = vpop.eup %6056 }
 0xf84   : > { %v7976_v36 = vadd.f32 %v7955_v37, %v4040_v63  ;;  %v4022_v30 = vmul.f32 %v6057_v58, %v7872_v33  ;;  %5534 = vmatprep.mubr.msk.bf16.mxu1 %vm727_vm1, %v4073_v56  ;;  %v4041_v20 = vmul.f32 %v7949_v39, %v4021_v16 }
 0xf85   : > { %v6059_v27 = vpop.eup %6058 }
 0xf86   : > { %v4023_v52 = vmul.f32 %v6059_v27, %v7878_v2  ;;  %v4074_v54 = vpack.c.bf16 %v7976_v36, %v7973_v15  ;;  %v4042_v59 = vmul.f32 %v7949_v39, %v4022_v30  ;;  %v7988_v33 = vadd.f32 %v7955_v37, %v4041_v20 }
 0xf87   : > { %v6061_v19 = vpop.eup %6060 }
 0xf88   : > { %v4024_v38 = vmul.f32 %v6061_v19, %v7884_v0  ;;  %5535 = vmatmul.mubr.msk.bf16.vlgmr.msra.gmra.mrb[96].mxu1 %vm727_vm1, %v4074_v54  ;;  %v7991_v25 = vadd.f32 %v7955_v37, %v4042_v59  ;;  %v4043_v2 = vmul.f32 %v7949_v39, %v4023_v52 }
 0xf8a   : > { %v4075_v18 = vpack.c.bf16 %v7991_v25, %v7988_v33  ;;  %v4044_v12 = vmul.f32 %v7949_v39, %v4024_v38  ;;  %v7999_v0 = vadd.f32 %v7955_v37, %v4043_v2 }
 0xf8c   : > { %5538 = vmatprep.mubr.msk.bf16.mxu1 %vm727_vm1, %v4075_v18  ;;  %v8002_v41 = vadd.f32 %v7955_v37, %v4044_v12 }
 0xf8e   : > { %v4076_v11 = vpack.c.bf16 %v8002_v41, %v7999_v0 }
 0xf90   : > { %5539 = vmatmul.mubr.msk.bf16.gmra.mrb[100].mxu1 %vm727_vm1, %v4076_v11 }
 0xfef   : > { %v3947_v49 = vpop.xlane.xlu0 %3946 }
 0xff0   : > { %v3977_v26 = vmul.f32 0.03125, %v3947_v49 }
 0xff1   : > { %v3950_v34 = vpop.xlane.xlu1 %3949 }
 0xff2   : > { %v3993_v35 = vadd.f32 1e-05, %v3977_v26  ;;  %v3978_v13 = vmul.f32 0.03125, %v3950_v34 }
 0xff3   : > { %v3953_v61 = vpop.xlane.xlu0 %3952 }
 0xff4   : > { %6062 = vrsqrt.f32 %v3993_v35  ;;  %v3994_v6 = vadd.f32 1e-05, %v3978_v13  ;;  %v3979_v46 = vmul.f32 0.03125, %v3953_v61 }
 0xff5   : > { %v3956_v51 = vpop.xlane.xlu1 %3955 }
 0xff6   : > { %6064 = vrsqrt.f32 %v3994_v6  ;;  %v3995_v5 = vadd.f32 1e-05, %v3979_v46  ;;  %v3980_v44 = vmul.f32 0.03125, %v3956_v51  ;;  %v4969_v51 = vld [vmem:[%s514_s16] ss:$0 sm:$0xff] }
 0xff7   : > { %v3959_v55 = vpop.xlane.xlu0 %3958 }
 0xff8   : > { %6066 = vrsqrt.f32 %v3995_v5  ;;  %v3996_v14 = vadd.f32 1e-05, %v3980_v44  ;;  %v3981_v45 = vmul.f32 0.03125, %v3959_v55 }
 0xff9   : > { %v3962_v7 = vpop.xlane.xlu1 %3961 }
 0xffa   : > { %6068 = vrsqrt.f32 %v3996_v14  ;;  %v3997_v24 = vadd.f32 1e-05, %v3981_v45  ;;  %v3982_v21 = vmul.f32 0.03125, %v3962_v7 }
 0xffb   : > { %v3965_v42 = vpop.xlane.xlu0 %3964 }
 0xffc   : > { %6070 = vrsqrt.f32 %v3997_v24  ;;  %v3998_v48 = vadd.f32 1e-05, %v3982_v21  ;;  %v3983_v57 = vmul.f32 0.03125, %v3965_v42 }
 0xffd   : > { %v3968_v32 = vpop.xlane.xlu1 %3967 }
 0xffe   : > { %v6063_v3 = vpop.eup %6062  ;;  %6072 = vrsqrt.f32 %v3998_v48  ;;  %v3999_v60 = vadd.f32 1e-05, %v3983_v57  ;;  %v3984_v43 = vmul.f32 0.03125, %v3968_v32 }
 0xfff   : > { %v4025_v63 = vmul.f32 %v6063_v3, %v7900_v40 }
0x1000   : > { %v6065_v16 = vpop.eup %6064  ;;  %6074 = vrsqrt.f32 %v3999_v60  ;;  %v4000_v56 = vadd.f32 1e-05, %v3984_v43 }
0x1001   : > { %v4026_v58 = vmul.f32 %v6065_v16, %v7903_v47  ;;  %v4045_v30 = vmul.f32 %v7949_v39, %v4025_v63 }
0x1002   : > { %v6067_v20 = vpop.eup %6066  ;;  %6076 = vrsqrt.f32 %v4000_v56 }
0x1003   : > { %v4027_v27 = vmul.f32 %v6067_v20, %v7908_v62  ;;  %v4046_v52 = vmul.f32 %v7949_v39, %v4026_v58  ;;  %v8018_v19 = vadd.f32 %v7955_v37, %v4045_v30 }
0x1004   : > { %v6069_v54 = vpop.eup %6068 }
0x1005   : > { %v4028_v59 = vmul.f32 %v6069_v54, %v7914_v10  ;;  %v8021_v40 = vadd.f32 %v7955_v37, %v4046_v52  ;;  %v4047_v38 = vmul.f32 %v7949_v39, %v4027_v27 }
0x1006   : > { %v6071_v47 = vpop.eup %6070 }
0x1007   : > { %v4029_v2 = vmul.f32 %v6071_v47, %v7920_v23  ;;  %v4077_v18 = vpack.c.bf16 %v8021_v40, %v8018_v19  ;;  %v4048_v62 = vmul.f32 %v7949_v39, %v4028_v59  ;;  %v8031_v10 = vadd.f32 %v7955_v37, %v4047_v38 }
0x1008   : > { %v6073_v12 = vpop.eup %6072 }
0x1009   : > { %v4030_v11 = vmul.f32 %v6073_v12, %v7926_v8  ;;  %5542 = vmatprep.mubr.msk.bf16.mxu1 %vm727_vm1, %v4077_v18  ;;  %v8034_v50 = vadd.f32 %v7955_v37, %v4048_v62  ;;  %v4049_v29 = vmul.f32 %v7949_v39, %v4029_v2 }
0x100a   : > { %v6075_v17 = vpop.eup %6074 }
0x100b   : > { %v4031_v23 = vmul.f32 %v6075_v17, %v7932_v4  ;;  %v4078_v31 = vpack.c.bf16 %v8034_v50, %v8031_v10  ;;  %v4050_v49 = vmul.f32 %v7949_v39, %v4030_v11  ;;  %v8044_v34 = vadd.f32 %v7955_v37, %v4049_v29 }
0x100c   : > { %v6077_v8 = vpop.eup %6076 }
0x100d   : > { %v4032_v26 = vmul.f32 %v6077_v8, %v7938_v28  ;;  %5543 = vmatmul.mubr.msk.bf16.gmra.mrb[104].mxu1 %vm727_vm1, %v4078_v31  ;;  %v8047_v35 = vadd.f32 %v7955_v37, %v4050_v49  ;;  %v4051_v13 = vmul.f32 %v7949_v39, %v4031_v23 }
0x100f   : > { %v4079_v4 = vpack.c.bf16 %v8047_v35, %v8044_v34  ;;  %v4052_v61 = vmul.f32 %v7949_v39, %v4032_v26  ;;  %v8055_v6 = vadd.f32 %v7955_v37, %v4051_v13 }
0x1011   : > { %5546 = vmatprep.mubr.msk.bf16.mxu1 %vm727_vm1, %v4079_v4  ;;  %v8058_v28 = vadd.f32 %v7955_v37, %v4052_v61 }
0x1013   : > { %v4080_v46 = vpack.c.bf16 %v8058_v28, %v8055_v6 }
0x1015   : > { %5547 = vmatmul.mubr.msk.bf16.gmra.mrb[108].mxu1 %vm727_vm1, %v4080_v46 }
0x105b   : > { %v5536_v5 = vpop.f32.mrb[96].mxu1 }
0x105c   : > { %v4166_v39 = vadd.f32 %v5536_v5, %v4969_v51  ;;  %v4157_v44 = vpop.f32.mrb[97].mxu1 }
0x105d   : > { %v4158_v55 = vadd.f32 %v4969_v51, %v4157_v44  ;;  %v5537_v14 = vpop.f32.mrb[98].mxu1 }
0x105e   : > { %v4169_v45 = vadd.f32 %v5537_v14, %v4969_v51  ;;  %v4160_v7 = vpop.f32.mrb[99].mxu1  ;;  %v4222_v37 = vmax.f32 %v4166_v39, 0.0 }
0x105f   : > { %v4161_v24 = vadd.f32 %v4969_v51, %v4160_v7  ;;  %v4220_v42 = vmax.f32 %v4158_v55, 0.0 }
0x1060   : > { %v4223_v21 = vmax.f32 %v4169_v45, 0.0 }
0x1061   : > { %v4221_v48 = vmax.f32 %v4161_v24, 0.0 }
0x1062   : > { %v4237_v57 = vpack.c.bf16 %v4223_v21, %v4222_v37 }
0x1063   : > { %v4236_v32 = vpack.c.bf16 %v4221_v48, %v4220_v42  ;;  %v5540_v3 = vpop.f32.mrb[100].mxu1  ;;  %v4246_v48 = vsub.s32 6, %v8470_v22 }
0x1064   : > { %v4182_v60 = vadd.f32 %v5540_v3, %v4969_v51  ;;  %v4173_v43 = vpop.f32.mrb[101].mxu1 }
0x1065   : > { %v4174_v63 = vadd.f32 %v4969_v51, %v4173_v43  ;;  %v5541_v16 = vpop.f32.mrb[102].mxu1  ;;  %5558 = vmatprep.mubr.msk.bf16.mxu0 %vm1342_vm3, %v4236_v32 }
0x1066   : > { %v4185_v56 = vadd.f32 %v5541_v16, %v4969_v51  ;;  %v4176_v58 = vpop.f32.mrb[103].mxu1  ;;  %5559 = vmatmul.mubr.msk.bf16.vlgmr.msra.gmra.mrb[96].mxu0 %vm1342_vm3, %v4237_v57  ;;  %v4226_v20 = vmax.f32 %v4182_v60, 0.0  ;;  %v8078_v57 = vrot.slane %v7748_v9, %v4246_v48 }
0x1067   : > { %v4177_v30 = vadd.f32 %v4969_v51, %v4176_v58  ;;  %v4224_v52 = vmax.f32 %v4174_v63, 0.0 }
0x1068   : > { %v4227_v27 = vmax.f32 %v4185_v56, 0.0 }
0x1069   : > { %v4225_v54 = vmax.f32 %v4177_v30, 0.0 }
0x106a   : > { %v4239_v59 = vpack.c.bf16 %v4227_v27, %v4226_v20 }
0x106b   : > { %v4238_v38 = vpack.c.bf16 %v4225_v54, %v4224_v52 }
0x106d   : > { %5562 = vmatprep.mubr.msk.bf16.mxu0 %vm1342_vm3, %v4238_v38 }
0x106e   : > { %5563 = vmatmul.mubr.msk.bf16.gmra.mrb[100].mxu0 %vm1342_vm3, %v4239_v59 }
0x10e0   : > { %v5544_v47 = vpop.f32.mrb[104].mxu1 }
0x10e1   : > { %v4198_v2 = vadd.f32 %v5544_v47, %v4969_v51  ;;  %v4189_v18 = vpop.f32.mrb[105].mxu1 }
0x10e2   : > { %v4190_v62 = vadd.f32 %v4969_v51, %v4189_v18  ;;  %v5545_v12 = vpop.f32.mrb[106].mxu1 }
0x10e3   : > { %v4201_v11 = vadd.f32 %v5545_v12, %v4969_v51  ;;  %v4192_v29 = vpop.f32.mrb[107].mxu1  ;;  %v4230_v23 = vmax.f32 %v4198_v2, 0.0 }
0x10e4   : > { %v4193_v17 = vadd.f32 %v4969_v51, %v4192_v29  ;;  %v4228_v49 = vmax.f32 %v4190_v62, 0.0 }
0x10e5   : > { %v4231_v31 = vmax.f32 %v4201_v11, 0.0 }
0x10e6   : > { %v4229_v8 = vmax.f32 %v4193_v17, 0.0 }
0x10e7   : > { %v4241_v26 = vpack.c.bf16 %v4231_v31, %v4230_v23 }
0x10e8   : > { %v4240_v13 = vpack.c.bf16 %v4229_v8, %v4228_v49  ;;  %v5548_v4 = vpop.f32.mrb[108].mxu1 }
0x10e9   : > { %v4214_v61 = vadd.f32 %v5548_v4, %v4969_v51  ;;  %v4205_v46 = vpop.f32.mrb[109].mxu1 }
0x10ea   : > { %v4206_v5 = vadd.f32 %v4969_v51, %v4205_v46  ;;  %v5549_v39 = vpop.f32.mrb[110].mxu1  ;;  %5566 = vmatprep.mubr.msk.bf16.mxu0 %vm1342_vm3, %v4240_v13 }
0x10eb   : > { %v4217_v44 = vadd.f32 %v5549_v39, %v4969_v51  ;;  %v4208_v55 = vpop.f32.mrb[111].mxu1  ;;  %5567 = vmatmul.mubr.msk.bf16.gmra.mrb[104].mxu0 %vm1342_vm3, %v4241_v26  ;;  %v4234_v45 = vmax.f32 %v4214_v61, 0.0 }
0x10ec   : > { %v4209_v14 = vadd.f32 %v4969_v51, %v4208_v55  ;;  %v4232_v24 = vmax.f32 %v4206_v5, 0.0 }
0x10ed   : > { %v4235_v7 = vmax.f32 %v4217_v44, 0.0 }
0x10ee   : > { %v4233_v37 = vmax.f32 %v4209_v14, 0.0 }
0x10ef   : > { %v4243_v21 = vpack.c.bf16 %v4235_v7, %v4234_v45 }
0x10f0   : > { %v4242_v42 = vpack.c.bf16 %v4233_v37, %v4232_v24 }
0x10f2   : > { %5570 = vmatprep.mubr.msk.bf16.mxu0 %vm1342_vm3, %v4242_v42 }
0x10f3   : > { %5571 = vmatmul.mubr.msk.bf16.gmra.mrb[108].mxu0 %vm1342_vm3, %v4243_v21 }
0x1139   : > { %v5560_v32 = vpop.f32.mrb[96].mxu0 }
0x113a   : > { %v4339_v3 = vadd.f32 %v5560_v32, %v8078_v57  ;;  %v4330_v60 = vpop.f32.mrb[97].mxu0 }
0x113b   : > { %v4331_v51 = vadd.f32 %v4330_v60, %v8078_v57  ;;  %v5561_v43 = vpop.f32.mrb[98].mxu0 }
0x113c   : > { %v8083_v63 = vadd.f32 %v4339_v3, %v7973_v15  ;;  %v4342_v16 = vadd.f32 %v5561_v43, %v8078_v57  ;;  %v4333_v56 = vpop.f32.mrb[99].mxu0 }
0x113d   : > { %v4334_v58 = vadd.f32 %v4333_v56, %v8078_v57  ;;  %v8088_v30 = vadd.f32 %v4331_v51, %v7963_v1 }
0x113e   : > { %v8091_v9 = vadd.f32 %v4342_v16, %v7976_v36  ;;  %v4415_v20 = vsel %vm727_vm1, %v8083_v63, 0.0 }
0x113f   : > { %4416 = vadd.xlane.f32.xlu0 %v4415_v20  ;;  %v8096_v27 = vadd.f32 %v4334_v58, %v7966_v53  ;;  %v4409_v1 = vsel %vm727_vm1, %v8088_v30, 0.0 }
0x1140   : > { %v4418_v15 = vsel %vm727_vm1, %v8091_v9, 0.0 }
0x1141   : > { %4419 = vadd.xlane.f32.xlu1 %v4418_v15  ;;  %v5564_v52 = vpop.f32.mrb[100].mxu0  ;;  %v4412_v18 = vsel %vm727_vm1, %v8096_v27, 0.0 }
0x1142   : > { %v4355_v54 = vadd.f32 %v5564_v52, %v8078_v57  ;;  %v4346_v59 = vpop.f32.mrb[101].mxu0 }
0x1143   : > { %v4347_v36 = vadd.f32 %v4346_v59, %v8078_v57  ;;  %4410 = vadd.xlane.f32.xlu0 %v4409_v1  ;;  %v5565_v38 = vpop.f32.mrb[102].mxu0 }
0x1144   : > { %v8105_v47 = vadd.f32 %v4355_v54, %v7999_v0  ;;  %v4358_v53 = vadd.f32 %v5565_v38, %v8078_v57  ;;  %v4349_v2 = vpop.f32.mrb[103].mxu0 }
0x1145   : > { %v4350_v62 = vadd.f32 %v4349_v2, %v8078_v57  ;;  %4413 = vadd.xlane.f32.xlu1 %v4412_v18  ;;  %v8112_v12 = vadd.f32 %v4347_v36, %v7988_v33 }
0x1146   : > { %v8115_v11 = vadd.f32 %v4358_v53, %v8002_v41  ;;  %v4427_v29 = vsel %vm727_vm1, %v8105_v47, 0.0 }
0x1147   : > { %4428 = vadd.xlane.f32.xlu0 %v4427_v29  ;;  %v8120_v0 = vadd.f32 %v4350_v62, %v7991_v25  ;;  %v4421_v23 = vsel %vm727_vm1, %v8112_v12, 0.0 }
0x1148   : > { %v4430_v17 = vsel %vm727_vm1, %v8115_v11, 0.0 }
0x1149   : > { %4431 = vadd.xlane.f32.xlu1 %v4430_v17  ;;  %v4424_v33 = vsel %vm727_vm1, %v8120_v0, 0.0 }
0x114b   : > { %4422 = vadd.xlane.f32.xlu0 %v4421_v23 }
0x114d   : > { %4425 = vadd.xlane.f32.xlu1 %v4424_v33 }
0x11be   : > { %v5568_v41 = vpop.f32.mrb[104].mxu0 }
0x11bf   : > { %v4371_v31 = vadd.f32 %v5568_v41, %v8078_v57  ;;  %v4362_v49 = vpop.f32.mrb[105].mxu0 }
0x11c0   : > { %v4363_v8 = vadd.f32 %v4362_v49, %v8078_v57  ;;  %v5569_v25 = vpop.f32.mrb[106].mxu0 }
0x11c1   : > { %v8131_v26 = vadd.f32 %v4371_v31, %v8031_v10  ;;  %v4374_v13 = vadd.f32 %v5569_v25, %v8078_v57  ;;  %v4365_v4 = vpop.f32.mrb[107].mxu0 }
0x11c2   : > { %v4366_v61 = vadd.f32 %v4365_v4, %v8078_v57  ;;  %v8136_v46 = vadd.f32 %v4363_v8, %v8018_v19 }
0x11c3   : > { %v8139_v5 = vadd.f32 %v4374_v13, %v8034_v50  ;;  %v4439_v39 = vsel %vm727_vm1, %v8131_v26, 0.0 }
0x11c4   : > { %4440 = vadd.xlane.f32.xlu0 %v4439_v39  ;;  %v8144_v44 = vadd.f32 %v4366_v61, %v8021_v40  ;;  %v4433_v19 = vsel %vm727_vm1, %v8136_v46, 0.0 }
0x11c5   : > { %v4442_v10 = vsel %vm727_vm1, %v8139_v5, 0.0 }
0x11c6   : > { %4443 = vadd.xlane.f32.xlu1 %v4442_v10  ;;  %v5572_v55 = vpop.f32.mrb[108].mxu0  ;;  %v4436_v40 = vsel %vm727_vm1, %v8144_v44, 0.0 }
0x11c7   : > { %v4378_v14 = vpop.f32.mrb[109].mxu0  ;;  %v4387_v45 = vadd.f32 %v5572_v55, %v8078_v57 }
0x11c8   : > { %v4379_v50 = vadd.f32 %v4378_v14, %v8078_v57  ;;  %4434 = vadd.xlane.f32.xlu0 %v4433_v19  ;;  %v5573_v7 = vpop.f32.mrb[110].mxu0 }
0x11c9   : > { %v4381_v24 = vpop.f32.mrb[111].mxu0  ;;  %v4390_v21 = vadd.f32 %v5573_v7, %v8078_v57  ;;  %v8160_v48 = vadd.f32 %v4387_v45, %v8055_v6 }
0x11ca   : > { %v8155_v37 = vadd.f32 %v4379_v50, %v8044_v34  ;;  %v4382_v42 = vadd.f32 %v4381_v24, %v8078_v57  ;;  %4437 = vadd.xlane.f32.xlu1 %v4436_v40 }
0x11cb   : > { %v8168_v51 = vadd.f32 %v4390_v21, %v8058_v28  ;;  %v4451_v6 = vsel %vm727_vm1, %v8160_v48, 0.0 }
0x11cc   : > { %v8163_v32 = vadd.f32 %v4382_v42, %v8047_v35  ;;  %v4417_v3 = vpop.xlane.xlu0 %4416  ;;  %v4445_v60 = vsel %vm727_vm1, %v8155_v37, 0.0 }
0x11cd   : > { %4446 = vadd.xlane.f32.xlu0 %v4445_v60  ;;  %v4459_v57 = vmul.f32 0.03125, %v4417_v3  ;;  %v4454_v20 = vsel %vm727_vm1, %v8168_v51, 0.0 }
0x11ce   : > { %v4420_v34 = vpop.xlane.xlu1 %4419  ;;  %v4448_v43 = vsel %vm727_vm1, %v8163_v32, 0.0 }
0x11cf   : > { %4449 = vadd.xlane.f32.xlu1 %v4448_v43  ;;  %v4460_v35 = vmul.f32 0.03125, %v4420_v34  ;;  %v8177_v28 = vsub.f32 %v8083_v63, %v4459_v57 }
0x11d0   : > { %v4411_v16 = vpop.xlane.xlu0 %4410 }
0x11d1   : > { %v4457_v56 = vmul.f32 0.03125, %v4411_v16  ;;  %4452 = vadd.xlane.f32.xlu0 %v4451_v6  ;;  %v8183_v59 = vsub.f32 %v8091_v9, %v4460_v35  ;;  %v4491_v2 = vmul.f32 %v8177_v28, %v8177_v28 }
0x11d2   : > { %v4414_v58 = vpop.xlane.xlu1 %4413 }
0x11d3   : > { %v8180_v15 = vsub.f32 %v8088_v30, %v4457_v56  ;;  %v4458_v52 = vmul.f32 0.03125, %v4414_v58  ;;  %4455 = vadd.xlane.f32.xlu1 %v4454_v20  ;;  %v4492_v29 = vmul.f32 %v8183_v59, %v8183_v59  ;;  %v4511_v31 = vsel %vm727_vm1, %v4491_v2, 0.0 }
0x11d4   : > { %v4429_v54 = vpop.xlane.xlu0 %4428 }
0x11d5   : > { %v8186_v1 = vsub.f32 %v8096_v27, %v4458_v52  ;;  %v4489_v36 = vmul.f32 %v8180_v15, %v8180_v15  ;;  %v4463_v53 = vmul.f32 0.03125, %v4429_v54  ;;  %v4514_v25 = vsel %vm727_vm1, %v4492_v29, 0.0 }
0x11d6   : > { %v4432_v38 = vpop.xlane.xlu1 %4431 }
0x11d7   : > { %v4505_v63 = vsel %vm727_vm1, %v4489_v36, 0.0  ;;  %v4490_v30 = vmul.f32 %v8186_v1, %v8186_v1  ;;  %v4464_v9 = vmul.f32 0.03125, %v4432_v38  ;;  %v8199_v23 = vsub.f32 %v8105_v47, %v4463_v53 }
0x11d8   : > { %4506 = vadd.xlane.f32.xlu0 %v4505_v63  ;;  %v4423_v18 = vpop.xlane.xlu0 %4422 }
0x11d9   : > { %v4461_v62 = vmul.f32 0.03125, %v4423_v18  ;;  %v4508_v27 = vsel %vm727_vm1, %v4490_v30, 0.0  ;;  %v8206_v49 = vsub.f32 %v8115_v11, %v4464_v9  ;;  %v4495_v4 = vmul.f32 %v8199_v23, %v8199_v23 }
0x11da   : > { %v4426_v17 = vpop.xlane.xlu1 %4425  ;;  %4509 = vadd.xlane.f32.xlu1 %v4508_v27 }
0x11db   : > { %v8202_v33 = vsub.f32 %v8112_v12, %v4461_v62  ;;  %v4462_v41 = vmul.f32 0.03125, %v4426_v17  ;;  %v4523_v61 = vsel %vm727_vm1, %v4495_v4, 0.0 }
0x11dc   : > { %4512 = vadd.xlane.f32.xlu0 %v4511_v31 }
0x11dd   : > { %v8209_v8 = vsub.f32 %v8120_v0, %v4462_v41  ;;  %v4493_v13 = vmul.f32 %v8202_v33, %v8202_v33  ;;  %v4496_v0 = vmul.f32 %v8206_v49, %v8206_v49 }
0x11de   : > { %4515 = vadd.xlane.f32.xlu1 %v4514_v25 }
0x11df   : > { %v4517_v47 = vsel %vm727_vm1, %v4493_v13, 0.0  ;;  %v4494_v12 = vmul.f32 %v8209_v8, %v8209_v8  ;;  %v4526_v39 = vsel %vm727_vm1, %v4496_v0, 0.0 }
0x11e0   : > { %4518 = vadd.xlane.f32.xlu0 %v4517_v47 }
0x11e1   : > { %v4520_v11 = vsel %vm727_vm1, %v4494_v12, 0.0 }
0x11e2   : > { %4521 = vadd.xlane.f32.xlu1 %v4520_v11 }
0x11e4   : > { %4524 = vadd.xlane.f32.xlu0 %v4523_v61 }
0x11e6   : > { %4527 = vadd.xlane.f32.xlu1 %v4526_v39  ;;  %v4619_v39 = vsub.s32 7, %v8470_v22 }
0x1251   : > { %v4441_v10 = vpop.xlane.xlu0 %4440 }
0x1252   : > { %v4467_v55 = vmul.f32 0.03125, %v4441_v10 }
0x1253   : > { %v4444_v14 = vpop.xlane.xlu1 %4443 }
0x1254   : > { %v8225_v19 = vsub.f32 %v8131_v26, %v4467_v55  ;;  %v4468_v45 = vmul.f32 0.03125, %v4444_v14 }
0x1255   : > { %v4435_v50 = vpop.xlane.xlu0 %4434 }
0x1256   : > { %v8228_v7 = vsub.f32 %v8139_v5, %v4468_v45  ;;  %v4465_v24 = vmul.f32 0.03125, %v4435_v50  ;;  %v4499_v40 = vmul.f32 %v8225_v19, %v8225_v19 }
0x1257   : > { %v4438_v21 = vpop.xlane.xlu1 %4437 }
0x1258   : > { %v8233_v42 = vsub.f32 %v8136_v46, %v4465_v24  ;;  %v4466_v3 = vmul.f32 0.03125, %v4438_v21  ;;  %v4535_v60 = vsel %vm727_vm1, %v4499_v40, 0.0  ;;  %v4500_v26 = vmul.f32 %v8228_v7, %v8228_v7  ;;  %v6127_v40 = vld [vmem:[%s6301_s10] sm:$0xff] }
0x1259   : > { %4536 = vadd.xlane.f32.xlu0 %v4535_v60  ;;  %v8274_v21 = vrot.slane %v6127_v40, %v4619_v39 }
0x125a   : > { %v8239_v34 = vsub.f32 %v8144_v44, %v4466_v3  ;;  %v4447_v5 = vpop.xlane.xlu0 %4446  ;;  %v4538_v43 = vsel %vm727_vm1, %v4500_v26, 0.0  ;;  %v4497_v57 = vmul.f32 %v8233_v42, %v8233_v42 }
0x125b   : > { %v4469_v16 = vmul.f32 0.03125, %v4447_v5  ;;  %4539 = vadd.xlane.f32.xlu1 %v4538_v43 }
0x125c   : > { %v4450_v46 = vpop.xlane.xlu1 %4449  ;;  %v4529_v6 = vsel %vm727_vm1, %v4497_v57, 0.0  ;;  %v4498_v35 = vmul.f32 %v8239_v34, %v8239_v34  ;;  %v8278_v57 = vld [vmem:[%s6301_s10 + $0x8] ss:$0 sm:$0xff] }
0x125d   : > { %v8248_v56 = vsub.f32 %v8155_v37, %v4469_v16  ;;  %v4470_v58 = vmul.f32 0.03125, %v4450_v46  ;;  %4530 = vadd.xlane.f32.xlu0 %v4529_v6 }
0x125e   : > { %v4453_v44 = vpop.xlane.xlu0 %4452  ;;  %v4532_v20 = vsel %vm727_vm1, %v4498_v35, 0.0 }
0x125f   : > { %v8252_v52 = vsub.f32 %v8163_v32, %v4470_v58  ;;  %v4471_v54 = vmul.f32 0.03125, %v4453_v44  ;;  %4533 = vadd.xlane.f32.xlu1 %v4532_v20  ;;  %v4501_v36 = vmul.f32 %v8248_v56, %v8248_v56 }
0x1260   : > { %v4456_v38 = vpop.xlane.xlu1 %4455 }
0x1261   : > { %v8257_v53 = vsub.f32 %v8160_v48, %v4471_v54  ;;  %v4472_v63 = vmul.f32 0.03125, %v4456_v38  ;;  %v4541_v37 = vsel %vm727_vm1, %v4501_v36, 0.0  ;;  %v4502_v30 = vmul.f32 %v8252_v52, %v8252_v52 }
0x1262   : > { %4542 = vadd.xlane.f32.xlu0 %v4541_v37 }
0x1263   : > { %v8263_v2 = vsub.f32 %v8168_v51, %v4472_v63  ;;  %v4544_v32 = vsel %vm727_vm1, %v4502_v30, 0.0  ;;  %v4503_v18 = vmul.f32 %v8257_v53, %v8257_v53 }
0x1264   : > { %4545 = vadd.xlane.f32.xlu1 %v4544_v32 }
0x1265   : > { %v4507_v9 = vpop.xlane.xlu0 %4506  ;;  %v4547_v48 = vsel %vm727_vm1, %v4503_v18, 0.0  ;;  %v4504_v62 = vmul.f32 %v8263_v2, %v8263_v2 }
0x1266   : > { %v4553_v27 = vmul.f32 0.03125, %v4507_v9  ;;  %4548 = vadd.xlane.f32.xlu0 %v4547_v48 }
0x1267   : > { %v4510_v29 = vpop.xlane.xlu1 %4509  ;;  %v4550_v17 = vsel %vm727_vm1, %v4504_v62, 0.0 }
0x1268   : > { %v4569_v41 = vadd.f32 1e-05, %v4553_v27  ;;  %v4554_v51 = vmul.f32 0.03125, %v4510_v29  ;;  %4551 = vadd.xlane.f32.xlu1 %v4550_v17 }
0x1269   : > { %v4513_v31 = vpop.xlane.xlu0 %4512 }
0x126a   : > { %6078 = vrsqrt.f32 %v4569_v41  ;;  %v4570_v25 = vadd.f32 1e-05, %v4554_v51  ;;  %v4555_v13 = vmul.f32 0.03125, %v4513_v31 }
0x126b   : > { %v4516_v47 = vpop.xlane.xlu1 %4515 }
0x126c   : > { %6080 = vrsqrt.f32 %v4570_v25  ;;  %v4571_v12 = vadd.f32 1e-05, %v4555_v13  ;;  %v4556_v4 = vmul.f32 0.03125, %v4516_v47 }
0x126d   : > { %v4519_v11 = vpop.xlane.xlu0 %4518 }
0x126e   : > { %6082 = vrsqrt.f32 %v4571_v12  ;;  %v4572_v0 = vadd.f32 1e-05, %v4556_v4  ;;  %v4557_v61 = vmul.f32 0.03125, %v4519_v11 }
0x126f   : > { %v4522_v10 = vpop.xlane.xlu1 %4521 }
0x1270   : > { %6084 = vrsqrt.f32 %v4572_v0  ;;  %v4573_v55 = vadd.f32 1e-05, %v4557_v61  ;;  %v4558_v14 = vmul.f32 0.03125, %v4522_v10 }
0x1271   : > { %v4525_v45 = vpop.xlane.xlu0 %4524 }
0x1272   : > { %6086 = vrsqrt.f32 %v4573_v55  ;;  %v4574_v50 = vadd.f32 1e-05, %v4558_v14  ;;  %v4559_v24 = vmul.f32 0.03125, %v4525_v45 }
0x1273   : > { %v4528_v3 = vpop.xlane.xlu1 %4527 }
0x1274   : > { %v6079_v60 = vpop.eup %6078  ;;  %6088 = vrsqrt.f32 %v4574_v50  ;;  %v4575_v26 = vadd.f32 1e-05, %v4559_v24  ;;  %v4560_v5 = vmul.f32 0.03125, %v4528_v3 }
0x1275   : > { %v4601_v22 = vmul.f32 %v6079_v60, %v8180_v15 }
0x1276   : > { %v6081_v43 = vpop.eup %6080  ;;  %6090 = vrsqrt.f32 %v4575_v26  ;;  %v4576_v16 = vadd.f32 1e-05, %v4560_v5 }
0x1277   : > { %v4621_v46 = vmul.f32 %v8274_v21, %v4601_v22  ;;  %v4602_v6 = vmul.f32 %v6081_v43, %v8186_v1 }
0x1278   : > { %v6083_v35 = vpop.eup %6082  ;;  %6092 = vrsqrt.f32 %v4576_v16 }
0x1279   : > { %v4641_v58 = vadd.f32 %v8278_v57, %v4621_v46  ;;  %v4622_v44 = vmul.f32 %v8274_v21, %v4602_v6  ;;  %v4603_v20 = vmul.f32 %v6083_v35, %v8177_v28 }
0x127a   : > { %v6085_v15 = vpop.eup %6084 }
0x127b   : > { %4657 = vst.msk [vmem:[%s6310_s21] sm:$0xff] %vm727_vm1, %v4641_v58  ;;  %v4642_v54 = vadd.f32 %v8278_v57, %v4622_v44  ;;  %v4623_v36 = vmul.f32 %v8274_v21, %v4603_v20  ;;  %v4604_v38 = vmul.f32 %v6085_v15, %v8183_v59 }
0x127c   : > { %v6087_v1 = vpop.eup %6086 }
0x127d   : > { %4658 = vst.msk [vmem:[%s6310_s21 + $0x8] sm:$0xff] %vm727_vm1, %v4642_v54  ;;  %v4643_v63 = vadd.f32 %v8278_v57, %v4623_v36  ;;  %v4624_v37 = vmul.f32 %v8274_v21, %v4604_v38  ;;  %v4605_v28 = vmul.f32 %v6087_v1, %v8202_v33 }
0x127e   : > { %v6089_v30 = vpop.eup %6088 }
0x127f   : > { %4659 = vst.msk [vmem:[%s6310_s21 + $0x10] sm:$0xff] %vm727_vm1, %v4643_v63  ;;  %v4644_v32 = vadd.f32 %v8278_v57, %v4624_v37  ;;  %v4625_v18 = vmul.f32 %v8274_v21, %v4605_v28  ;;  %v4606_v59 = vmul.f32 %v6089_v30, %v8209_v8 }
0x1280   : > { %v6091_v9 = vpop.eup %6090 }
0x1281   : > { %4660 = vst.msk [vmem:[%s6310_s21 + $0x18] sm:$0xff] %vm727_vm1, %v4644_v32  ;;  %v4645_v48 = vadd.f32 %v8278_v57, %v4625_v18  ;;  %v4626_v62 = vmul.f32 %v8274_v21, %v4606_v59  ;;  %v4607_v33 = vmul.f32 %v6091_v9, %v8199_v23 }
0x1282   : > { %v6093_v27 = vpop.eup %6092 }
0x1283   : > { %4661 = vst.msk [vmem:[%s6310_s21 + $0x20] sm:$0xff] %vm727_vm1, %v4645_v48  ;;  %v4646_v29 = vadd.f32 %v8278_v57, %v4626_v62  ;;  %v4627_v17 = vmul.f32 %v8274_v21, %v4607_v33  ;;  %v4608_v41 = vmul.f32 %v6093_v27, %v8206_v49 }
0x1285   : > { %4662 = vst.msk [vmem:[%s6310_s21 + $0x28] sm:$0xff] %vm727_vm1, %v4646_v29  ;;  %v4647_v8 = vadd.f32 %v8278_v57, %v4627_v17  ;;  %v4628_v51 = vmul.f32 %v8274_v21, %v4608_v41 }
0x1287   : > { %4663 = vst.msk [vmem:[%s6310_s21 + $0x30] sm:$0xff] %vm727_vm1, %v4647_v8  ;;  %v4648_v31 = vadd.f32 %v8278_v57, %v4628_v51 }
0x1289   : > { %4664 = vst.msk [vmem:[%s6310_s21 + $0x38] sm:$0xff] %vm727_vm1, %v4648_v31 }
0x12e6   : > { %v4537_v23 = vpop.xlane.xlu0 %4536 }
0x12e7   : > { %v4563_v25 = vmul.f32 0.03125, %v4537_v23 }
0x12e8   : > { %v4540_v13 = vpop.xlane.xlu1 %4539 }
0x12e9   : > { %v4579_v47 = vadd.f32 1e-05, %v4563_v25  ;;  %v4564_v12 = vmul.f32 0.03125, %v4540_v13 }
0x12ea   : > { %v4531_v4 = vpop.xlane.xlu0 %4530 }
0x12eb   : > { %6094 = vrsqrt.f32 %v4579_v47  ;;  %v4580_v49 = vadd.f32 1e-05, %v4564_v12  ;;  %v4561_v11 = vmul.f32 0.03125, %v4531_v4 }
0x12ec   : > { %v4534_v0 = vpop.xlane.xlu1 %4533 }
0x12ed   : > { %6096 = vrsqrt.f32 %v4580_v49  ;;  %v4577_v61 = vadd.f32 1e-05, %v4561_v11  ;;  %v4562_v39 = vmul.f32 0.03125, %v4534_v0 }
0x12ef   : > { %6098 = vrsqrt.f32 %v4577_v61  ;;  %v4578_v10 = vadd.f32 1e-05, %v4562_v39  ;;  %v4543_v55 = vpop.xlane.xlu0 %4542 }
0x12f0   : > { %v4565_v14 = vmul.f32 0.03125, %v4543_v55 }
0x12f1   : > { %6100 = vrsqrt.f32 %v4578_v10  ;;  %v4546_v45 = vpop.xlane.xlu1 %4545 }
0x12f2   : > { %v4581_v50 = vadd.f32 1e-05, %v4565_v14  ;;  %v4566_v24 = vmul.f32 0.03125, %v4546_v45 }
0x12f3   : > { %v4549_v40 = vpop.xlane.xlu0 %4548 }
0x12f4   : > { %6102 = vrsqrt.f32 %v4581_v50  ;;  %v4582_v3 = vadd.f32 1e-05, %v4566_v24  ;;  %v4567_v60 = vmul.f32 0.03125, %v4549_v40 }
0x12f5   : > { %v6095_v26 = vpop.eup %6094  ;;  %v4552_v5 = vpop.xlane.xlu1 %4551 }
0x12f6   : > { %v4611_v22 = vmul.f32 %v6095_v26, %v8225_v19  ;;  %6104 = vrsqrt.f32 %v4582_v3  ;;  %v4583_v43 = vadd.f32 1e-05, %v4567_v60  ;;  %v4568_v16 = vmul.f32 0.03125, %v4552_v5 }
0x12f7   : > { %v6097_v46 = vpop.eup %6096 }
0x12f8   : > { %v4631_v6 = vmul.f32 %v8274_v21, %v4611_v22  ;;  %v4612_v35 = vmul.f32 %v6097_v46, %v8228_v7  ;;  %6106 = vrsqrt.f32 %v4583_v43  ;;  %v4584_v58 = vadd.f32 1e-05, %v4568_v16 }
0x12f9   : > { %v6099_v44 = vpop.eup %6098 }
0x12fa   : > { %v4651_v20 = vadd.f32 %v8278_v57, %v4631_v6  ;;  %v4632_v15 = vmul.f32 %v8274_v21, %v4612_v35  ;;  %v4609_v54 = vmul.f32 %v6099_v44, %v8233_v42  ;;  %6108 = vrsqrt.f32 %v4584_v58 }
0x12fb   : > { %v6101_v19 = vpop.eup %6100 }
0x12fc   : > { %4667 = vst.msk [vmem:[%s6310_s21 + $0x50] sm:$0xff] %vm727_vm1, %v4651_v20  ;;  %v4652_v36 = vadd.f32 %v8278_v57, %v4632_v15  ;;  %v4629_v38 = vmul.f32 %v8274_v21, %v4609_v54  ;;  %v4610_v7 = vmul.f32 %v6101_v19, %v8239_v34 }
0x12fe   : > { %v6103_v1 = vpop.eup %6102  ;;  %4668 = vst.msk [vmem:[%s6310_s21 + $0x58] sm:$0xff] %vm727_vm1, %v4652_v36  ;;  %v4649_v63 = vadd.f32 %v8278_v57, %v4629_v38  ;;  %v4630_v37 = vmul.f32 %v8274_v21, %v4610_v7 }
0x12ff   : > { %v4613_v42 = vmul.f32 %v6103_v1, %v8248_v56 }
0x1300   : > { %v6105_v28 = vpop.eup %6104  ;;  %4665 = vst.msk [vmem:[%s6310_s21 + $0x40] sm:$0xff] %vm727_vm1, %v4649_v63  ;;  %v4650_v30 = vadd.f32 %v8278_v57, %v4630_v37 }
0x1301   : > { %v4633_v32 = vmul.f32 %v8274_v21, %v4613_v42  ;;  %v4614_v34 = vmul.f32 %v6105_v28, %v8252_v52 }
0x1302   : > { %v6107_v18 = vpop.eup %6106  ;;  %4666 = vst.msk [vmem:[%s6310_s21 + $0x48] sm:$0xff] %vm727_vm1, %v4650_v30 }
0x1303   : > { %v4653_v59 = vadd.f32 %v8278_v57, %v4633_v32  ;;  %v4634_v9 = vmul.f32 %v8274_v21, %v4614_v34  ;;  %v4615_v56 = vmul.f32 %v6107_v18, %v8257_v53 }
0x1304   : > { %v6109_v48 = vpop.eup %6108 }
0x1305   : > { %4669 = vst.msk [vmem:[%s6310_s21 + $0x60] sm:$0xff] %vm727_vm1, %v4653_v59  ;;  %v4654_v62 = vadd.f32 %v8278_v57, %v4634_v9  ;;  %v4635_v33 = vmul.f32 %v8274_v21, %v4615_v56  ;;  %v4616_v27 = vmul.f32 %v6109_v48, %v8263_v2 }
0x1307   : > { %4670 = vst.msk [vmem:[%s6310_s21 + $0x68] sm:$0xff] %vm727_vm1, %v4654_v62  ;;  %v4655_v52 = vadd.f32 %v8278_v57, %v4635_v33  ;;  %v4636_v29 = vmul.f32 %v8274_v21, %v4616_v27 }
0x1309   : > { %4671 = vst.msk [vmem:[%s6310_s21 + $0x70] sm:$0xff] %vm727_vm1, %v4655_v52  ;;  %v4656_v17 = vadd.f32 %v8278_v57, %v4636_v29 }
0x130b   : > { %4672 = vst.msk [vmem:[%s6310_s21 + $0x78] sm:$0xff] %vm727_vm1, %v4656_v17 }
0x130c PF: > { %s19_s13 = sadd.s32 1, %s6166_s13   ;;  %s8471_s10 = sld [smem:[#allocation2_spill]] }
0x130d   : > { %p16_p8 = scmp.ge.s32.totalorder %s19_s13, 6   ;;  %s8472_s17 = sld [smem:[#allocation3_spill]] }
0x130e   : > { %s8473_s12 = sld [smem:[#allocation4_spill]]  ;;  %s8474_s30 = smov %s6158_s11 }
0x130f   :  { %18 = sbr.rel (!%p16_p8) target bundleno = 6 (0x6), region = 114 }
0x1313   : > { %s8475_s11 = smov %s8472_s17 }

</bundles_post_ra>
